<compile_context>
chip_gen: v7x
topology: tpu7x:2x2x1
jax: 0.10.0
libtpu: 0.0.40
codegen_flags: <defaults>
</compile_context>

<pallas_src>
import numpy as np
import jax
import jax.numpy as jnp
from jax.experimental import pallas as pl
from jax.experimental.pallas import tpu as pltpu

SUBLANE = 8

# MXU operand dtype.  bf16 operands (f32 accumulation) hit the fast MXU path on v6e/v7x and
# halve weight DMA / VMEM; set to jnp.float32 for a bit-tighter match to the f32 reference.
MXU_DTYPE = jnp.bfloat16


def _round_up(n, m):
    return (n + m - 1) // m * m


# ---------------------------------------------------------------------------
# Fused kernel: 2-layer BiLSTM (merged fwd/bwd) + attention pooling + linear head
# ---------------------------------------------------------------------------
def _att_bilstm_kernel(x_ref,                    # (T*Bp, d_model) time-major, MXU_DTYPE
                       wih0, whh0, b0,           # layer 0: (d_model,8H) (2H,8H) (1,8H)
                       wih1, whh1, b1,           # layer 1: (2H,8H)     (2H,8H) (1,8H)
                       watt, batt,               # attention: (2H,2H) (1,2H)
                       wlin, blin,               # head: (1,2H) (1,1)
                       res_ref,                  # (Bp, 1) f32
                       o0_ref, o1_ref,           # (T*Bp, 2H) f32  per-layer [fwd|bwd] outputs
                       xg_ref):                  # (T*Bp, 8H) f32  [fwd i,f,g,o | bwd i,f,g,o]
    Bp = res_ref.shape[0]
    H = whh0.shape[0] // 2
    TB = x_ref.shape[0]
    T = TB // Bp
    G = 4 * H                                    # per-direction gate width (aligned: 4H=128 here)

    def run_layer(whh_ref, out_ref):
        """Merged fwd+bwd recurrence over xg_ref; writes (T*Bp, 2H) [fwd|bwd] into out_ref."""
        whh = whh_ref[...]                       # (2H, 8H) block-diagonal, hoisted out of loop

        def gate_math(g4, c):                    # g4: (Bp, 4H) PyTorch gate order i,f,g,o
            i = jax.nn.sigmoid(g4[:, 0 * H:1 * H])
            f = jax.nn.sigmoid(g4[:, 1 * H:2 * H])
            g = jnp.tanh(g4[:, 2 * H:3 * H])
            o = jax.nn.sigmoid(g4[:, 3 * H:4 * H])
            c_new = f * c + i * g
            h_new = o * jnp.tanh(c_new)
            return h_new, c_new

        def step(s, carry):
            h_cat, c_f, c_b = carry              # (Bp,2H), (Bp,H), (Bp,H) -- live in vregs
            row_f = pl.multiple_of(s * Bp, Bp)               # fwd walks forward in time
            row_b = pl.multiple_of((T - 1 - s) * Bp, Bp)     # bwd walks backward in time
            # One MXU push per step for BOTH directions (block-diagonal Whh).
            hh = jnp.dot(h_cat.astype(MXU_DTYPE), whh,
                         preferred_element_type=jnp.float32)          # (Bp, 8H)
            g_f = xg_ref[pl.ds(row_f, Bp), 0:G] + hh[:, 0:G]
            g_b = xg_ref[pl.ds(row_b, Bp), G:2 * G] + hh[:, G:2 * G]
            h_f, c_f = gate_math(g_f, c_f)
            h_b, c_b = gate_math(g_b, c_b)
            out_ref[pl.ds(row_f, Bp), 0:H] = h_f
            out_ref[pl.ds(row_b, Bp), H:2 * H] = h_b
            return jnp.concatenate([h_f, h_b], axis=-1), c_f, c_b

        init = (jnp.zeros((Bp, 2 * H), jnp.float32),
                jnp.zeros((Bp, H), jnp.float32),
                jnp.zeros((Bp, H), jnp.float32))
        # Full unroll only because T is small & static; use partial unroll / time grid for big T.
        jax.lax.fori_loop(0, T, step, init, unroll=True)

    # ----- layer 0: ONE batched input projection + merged fwd/bwd recurrence -----
    xg_ref[...] = jnp.dot(x_ref[...], wih0[...],
                          preferred_element_type=jnp.float32) + b0[...]
    run_layer(whh0, o0_ref)

    # ----- layer 1: input is the lane-concatenated [fwd|bwd] layer-0 output (ONE matmul) -----
    xg_ref[...] = jnp.dot(o0_ref[...].astype(MXU_DTYPE), wih1[...],
                          preferred_element_type=jnp.float32) + b1[...]
    run_layer(whh1, o1_ref)

    # ----- attention scores: ONE matmul; result reuses the (no longer needed) o0 buffer -----
    D = 2 * H
    scores_ref = o0_ref
    scores_ref[...] = jnp.dot(o1_ref[...].astype(MXU_DTYPE), watt[...],
                              preferred_element_type=jnp.float32) + batt[...]

    # ----- softmax over time + pooling on the flat (T*Bp, D) buffer (no (T,Bp,D) relayout) ----
    def max_step(t, m):
        return jnp.maximum(m, scores_ref[pl.ds(pl.multiple_of(t * Bp, Bp), Bp), :])

    m = jax.lax.fori_loop(0, T, max_step,
                          jnp.full((Bp, D), -jnp.inf, jnp.float32), unroll=True)

    def acc_step(t, carry):
        denom, num = carry
        s_t = scores_ref[pl.ds(pl.multiple_of(t * Bp, Bp), Bp), :]
        e = jnp.exp(s_t - m)
        return denom + e, num + e * s_t

    denom, num = jax.lax.fori_loop(
        0, T, acc_step,
        (jnp.zeros((Bp, D), jnp.float32), jnp.zeros((Bp, D), jnp.float32)),
        unroll=True)
    pooled = num / denom                         # exact divide (tiny tensor; avoids approx error)

    # ----- linear head -----
    res_ref[...] = jnp.sum(pooled * wlin[...], axis=1, keepdims=True) + blin[...]


# ---------------------------------------------------------------------------
# Parameters (PyTorch layout) + packing for the fused kernel
# ---------------------------------------------------------------------------
def init_params(key, d_model, hidden_size, num_layers):
    H = hidden_size
    k = 1.0 / np.sqrt(H)

    def u(key, shape):
        return jax.random.uniform(key, shape, jnp.float32, -k, k)

    params = {"hidden_size": H, "num_layers": num_layers, "lstm": []}
    for layer in range(num_layers):
        din = d_model if layer == 0 else 2 * H
        layer_p = {}
        for tag in ("fwd", "bwd"):
            key, k1, k2, k3, k4 = jax.random.split(key, 5)
            wih = u(k1, (4 * H, din))
            whh = u(k2, (4 * H, H))
            bias = u(k3, (4 * H,)) + u(k4, (4 * H,))          # bias_ih + bias_hh
            layer_p[tag] = (wih, whh, bias)
        params["lstm"].append(layer_p)

    D = 2 * H
    key, k1, k2, k3, k4 = jax.random.split(key, 5)
    ka = 1.0 / np.sqrt(D)
    params["W_att"] = jax.random.uniform(k1, (D, D), jnp.float32, -ka, ka)
    params["b_att"] = jax.random.uniform(k2, (D,), jnp.float32, -ka, ka)
    params["W_lin"] = jax.random.uniform(k3, (1, D), jnp.float32, -ka, ka)
    params["b_lin"] = jax.random.uniform(k4, (1,), jnp.float32, -ka, ka)
    return params


def pack_params(params):
    """Pack weights so both directions of a layer are handled by single matmuls:
       * Wih_cat  (Din, 8H): column-concat [Wih_f^T | Wih_b^T]  (gate order i,f,g,o per dir)
       * Whh_blk  (2H, 8H): block-diagonal; rows [0:H] feed fwd cols, rows [H:2H] feed bwd cols
       * b_cat    (1, 8H):  [b_f | b_b]  (bias_ih + bias_hh already summed)
       * W_att^T  (2H, D) so scores = [o_f|o_b] @ W_att^T is one matmul.
       Matmul operands stored as MXU_DTYPE; biases / head weights kept f32."""
    assert params["num_layers"] == 2, "torch AttBiLSTM forward requires num_layers == 2"
    H = params["hidden_size"]
    D = 2 * H
    out = []
    for layer in range(2):
        wih_f, whh_f, b_f = params["lstm"][layer]["fwd"]
        wih_b, whh_b, b_b = params["lstm"][layer]["bwd"]
        wih_cat = jnp.concatenate([jnp.asarray(wih_f).T, jnp.asarray(wih_b).T], axis=1)
        whh_blk = jnp.zeros((2 * H, 8 * H), jnp.float32)
        whh_blk = whh_blk.at[0:H, 0:4 * H].set(jnp.asarray(whh_f).T)
        whh_blk = whh_blk.at[H:2 * H, 4 * H:8 * H].set(jnp.asarray(whh_b).T)
        b_cat = jnp.concatenate([jnp.asarray(b_f), jnp.asarray(b_b)]).reshape(1, 8 * H)
        out += [wih_cat.astype(MXU_DTYPE), whh_blk.astype(MXU_DTYPE), b_cat]
    out += [jnp.asarray(params["W_att"]).T.astype(MXU_DTYPE),        # (D, D) = W_att^T
            jnp.asarray(params["b_att"]).reshape(1, D),
            jnp.asarray(params["W_lin"]).reshape(1, D),
            jnp.asarray(params["b_lin"]).reshape(1, 1)]
    return tuple(out)


# ---------------------------------------------------------------------------
# Forward wrapper: one pallas_call for the whole network
# ---------------------------------------------------------------------------
def att_bilstm_forward(x, packed):
    (wih0, whh0, b0, wih1, whh1, b1, watt, batt, wlin, blin) = packed
    B, T, d_model = x.shape
    H = whh0.shape[0] // 2
    D = 2 * H
    Bp = _round_up(B, SUBLANE)                   # sublane-align the batch

    # Time-major, batch padded, flattened once on the host side; cast to the MXU operand dtype.
    x_tm = jnp.transpose(x, (1, 0, 2))           # (T, B, d_model)
    x_tm = jnp.pad(x_tm, ((0, 0), (0, Bp - B), (0, 0)))
    x_flat = x_tm.reshape(T * Bp, d_model).astype(MXU_DTYPE)

    flops = int(2 * T * Bp * d_model * 8 * H          # layer-0 input projection
                + 2 * T * Bp * 2 * H * 8 * H          # layer-1 input projection
                + 2 * 2 * T * Bp * 2 * H * 8 * H      # two merged recurrences
                + 2 * T * Bp * D * D                  # attention scores
                + 2 * Bp * D)                         # linear head
    transcendentals = int(2 * T * Bp * 12 * H + T * Bp * D)
    bytes_accessed = int(x_flat.size * x_flat.dtype.itemsize
                         + sum(int(np.prod(a.shape)) * a.dtype.itemsize for a in packed)
                         + Bp * 4)

    res = pl.pallas_call(
        _att_bilstm_kernel,
        out_shape=jax.ShapeDtypeStruct((Bp, 1), jnp.float32),
        scratch_shapes=[
            pltpu.VMEM((T * Bp, 2 * H), jnp.float32),   # layer-0 [fwd|bwd] output (reused: scores)
            pltpu.VMEM((T * Bp, 2 * H), jnp.float32),   # layer-1 [fwd|bwd] output
            pltpu.VMEM((T * Bp, 8 * H), jnp.float32),   # merged input projections [fwd 4H|bwd 4H]
        ],
        cost_estimate=pl.CostEstimate(flops=flops,
                                      transcendentals=transcendentals,
                                      bytes_accessed=bytes_accessed),
    )(x_flat, wih0, whh0, b0, wih1, whh1, b1, watt, batt, wlin, blin)
    return res[:B]


# ---------------------------------------------------------------------------
# Pure-JAX reference (correctness check only)
# ---------------------------------------------------------------------------
def ref_forward(x, params):
    H = params["hidden_size"]

    def lstm_dir(xs, wih, whh, b, reverse):
        B = xs.shape[0]

        def cell(carry, x_t):
            h, c = carry
            g = x_t @ wih.T + h @ whh.T + b
            i = jax.nn.sigmoid(g[:, :H])
            f = jax.nn.sigmoid(g[:, H:2 * H])
            gg = jnp.tanh(g[:, 2 * H:3 * H])
            o = jax.nn.sigmoid(g[:, 3 * H:])
            c = f * c + i * gg
            h = o * jnp.tanh(c)
            return (h, c), h

        xs_tm = jnp.transpose(xs, (1, 0, 2))
        if reverse:
            xs_tm = jnp.flip(xs_tm, 0)
        _, hs = jax.lax.scan(cell, (jnp.zeros((B, H)), jnp.zeros((B, H))), xs_tm)
        if reverse:
            hs = jnp.flip(hs, 0)
        return jnp.transpose(hs, (1, 0, 2))

    h_in = x
    for layer in range(params["num_layers"]):
        f = lstm_dir(h_in, *params["lstm"][layer]["fwd"], False)
        bwd = lstm_dir(h_in, *params["lstm"][layer]["bwd"], True)
        h_in = jnp.concatenate([f, bwd], axis=-1)

    scores = h_in @ params["W_att"].T + params["b_att"]
    w = jax.nn.softmax(scores, axis=1)
    pooled = jnp.sum(w * scores, axis=1)
    return pooled @ params["W_lin"].T + params["b_lin"]


if __name__ == "__main__":
    d_model, hidden_size, num_layers = 16, 32, 2   # num_layers must be 2 for the torch forward
    B, T = 2, 8

    key = jax.random.PRNGKey(0)
    kx, kp = jax.random.split(key)
    x = jax.random.normal(kx, (B, T, d_model), jnp.float32)
    params = init_params(kp, d_model, hidden_size, num_layers)
    packed = pack_params(params)

    out = jax.jit(att_bilstm_forward)(x, packed)
    out = jax.block_until_ready(out)

    ref = jax.block_until_ready(ref_forward(x, params))
    assert out.shape == (B, 1)
    # bf16 MXU operands (f32 accumulation) vs. an all-f32 reference needs a looser tolerance.
    tol = 2e-3 if MXU_DTYPE == jnp.float32 else 5e-2
    np.testing.assert_allclose(np.asarray(out), np.asarray(ref), rtol=tol, atol=tol)

    print("KERNEL_OK")
</pallas_src>

<mosaic_0001>
module attributes {stable_mosaic.version = 11 : i64} {
  func.func @_att_bilstm_kernel(%arg0: memref<64x16xbf16, #tpu.memory_space<vmem>>, %arg1: memref<16x256xbf16, #tpu.memory_space<vmem>>, %arg2: memref<64x256xbf16, #tpu.memory_space<vmem>>, %arg3: memref<1x256xf32, #tpu.memory_space<vmem>>, %arg4: memref<64x256xbf16, #tpu.memory_space<vmem>>, %arg5: memref<64x256xbf16, #tpu.memory_space<vmem>>, %arg6: memref<1x256xf32, #tpu.memory_space<vmem>>, %arg7: memref<64x64xbf16, #tpu.memory_space<vmem>>, %arg8: memref<1x64xf32, #tpu.memory_space<vmem>>, %arg9: memref<1x64xf32, #tpu.memory_space<vmem>>, %arg10: memref<1x1xf32, #tpu.memory_space<vmem>>, %arg11: memref<8x1xf32, #tpu.memory_space<vmem>>, %arg12: memref<64x64xf32, #tpu.memory_space<vmem>>, %arg13: memref<64x64xf32, #tpu.memory_space<vmem>>, %arg14: memref<64x256xf32, #tpu.memory_space<vmem>>) attributes {dimension_semantics = [], scalar_prefetch = 0 : i64, scratch_operands = 3 : i64, tpu.core_type = #tpu.core_type<tc>} {
    %c0 = arith.constant 0 : index
    %c0_0 = arith.constant 0 : index
    %0 = vector.load %arg0[%c0, %c0_0] : memref<64x16xbf16, #tpu.memory_space<vmem>>, vector<64x16xbf16>
    %c0_1 = arith.constant 0 : index
    %c0_2 = arith.constant 0 : index
    %1 = vector.load %arg1[%c0_1, %c0_2] : memref<16x256xbf16, #tpu.memory_space<vmem>>, vector<16x256xbf16>
    %cst = arith.constant dense<0.000000e+00> : vector<64x256xf32>
    %2 = tpu.matmul %0, %1, %cst {dimension_numbers = #tpu.dot_dimension_numbers<[1], [0], [0], [1], [0, 0, 1, 1], [], []>} : vector<64x16xbf16>, vector<16x256xbf16>, vector<64x256xf32> -> vector<64x256xf32>
    %c0_3 = arith.constant 0 : index
    %c0_4 = arith.constant 0 : index
    %3 = vector.load %arg3[%c0_3, %c0_4] : memref<1x256xf32, #tpu.memory_space<vmem>>, vector<1x256xf32>
    %4 = vector.broadcast %3 : vector<1x256xf32> to vector<64x256xf32>
    %5 = arith.addf %2, %4 : vector<64x256xf32>
    %c0_5 = arith.constant 0 : index
    %c0_6 = arith.constant 0 : index
    %6 = vector.load %arg14[%c0_5, %c0_6] : memref<64x256xf32, #tpu.memory_space<vmem>>, vector<64x256xf32>
    tpu.vector_store %arg14[%c0_5, %c0_6], %5 {strides = array<i32>} : memref<64x256xf32, #tpu.memory_space<vmem>>, vector<64x256xf32>,
    %c0_7 = arith.constant 0 : index
    %c0_8 = arith.constant 0 : index
    %7 = vector.load %arg2[%c0_7, %c0_8] : memref<64x256xbf16, #tpu.memory_space<vmem>>, vector<64x256xbf16>
    %cst_9 = arith.constant 0.000000e+00 : f32
    %8 = vector.broadcast %cst_9 : f32 to vector<8x64xf32>
    %cst_10 = arith.constant 0.000000e+00 : f32
    %9 = vector.broadcast %cst_10 : f32 to vector<8x32xf32>
    %cst_11 = arith.constant 0.000000e+00 : f32
    %10 = vector.broadcast %cst_11 : f32 to vector<8x32xf32>
    %c0_i32 = arith.constant 0 : i32
    %c8_i32 = arith.constant 8 : i32
    %11 = arith.muli %c0_i32, %c8_i32 : i32
    %12 = tpu.assume_multiple %11, 8 : i32
    %c7_i32 = arith.constant 7 : i32
    %13 = arith.subi %c7_i32, %c0_i32 : i32
    %c8_i32_12 = arith.constant 8 : i32
    %14 = arith.muli %13, %c8_i32_12 : i32
    %15 = tpu.assume_multiple %14, 8 : i32
    %16 = arith.truncf %8 : vector<8x64xf32> to vector<8x64xbf16>
    %cst_13 = arith.constant dense<0.000000e+00> : vector<8x256xf32>
    %17 = tpu.matmul %16, %7, %cst_13 {dimension_numbers = #tpu.dot_dimension_numbers<[1], [0], [0], [1], [0, 0, 1, 1], [], []>} : vector<8x64xbf16>, vector<64x256xbf16>, vector<8x256xf32> -> vector<8x256xf32>
    %18 = arith.index_cast %12 : i32 to index
    %c0_14 = arith.constant 0 : index
    %19 = vector.load %arg14[%18, %c0_14] : memref<64x256xf32, #tpu.memory_space<vmem>>, vector<8x128xf32>
    %20 = vector.extract_strided_slice %17 {offsets = [0, 0], sizes = [8, 128], strides = [1, 1]} : vector<8x256xf32> to vector<8x128xf32>
    %21 = arith.addf %19, %20 : vector<8x128xf32>
    %22 = arith.index_cast %15 : i32 to index
    %c128 = arith.constant 128 : index
    %23 = vector.load %arg14[%22, %c128] : memref<64x256xf32, #tpu.memory_space<vmem>>, vector<8x128xf32>
    %24 = vector.extract_strided_slice %17 {offsets = [0, 128], sizes = [8, 128], strides = [1, 1]} : vector<8x256xf32> to vector<8x128xf32>
    %25 = arith.addf %23, %24 : vector<8x128xf32>
    %26 = vector.extract_strided_slice %21 {offsets = [0, 0], sizes = [8, 32], strides = [1, 1]} : vector<8x128xf32> to vector<8x32xf32>
    %27 = arith.negf %26 : vector<8x32xf32>
    %28 = math.exp %27 : vector<8x32xf32>
    %cst_15 = arith.constant 1.000000e+00 : f32
    %29 = vector.broadcast %cst_15 : f32 to vector<8x32xf32>
    %30 = arith.addf %29, %28 : vector<8x32xf32>
    %31 = arith.divf %29, %30 : vector<8x32xf32>
    %32 = vector.extract_strided_slice %21 {offsets = [0, 32], sizes = [8, 32], strides = [1, 1]} : vector<8x128xf32> to vector<8x32xf32>
    %33 = arith.negf %32 : vector<8x32xf32>
    %34 = math.exp %33 : vector<8x32xf32>
    %cst_16 = arith.constant 1.000000e+00 : f32
    %35 = vector.broadcast %cst_16 : f32 to vector<8x32xf32>
    %36 = arith.addf %35, %34 : vector<8x32xf32>
    %37 = arith.divf %35, %36 : vector<8x32xf32>
    %38 = vector.extract_strided_slice %21 {offsets = [0, 64], sizes = [8, 32], strides = [1, 1]} : vector<8x128xf32> to vector<8x32xf32>
    %39 = math.tanh %38 : vector<8x32xf32>
    %40 = vector.extract_strided_slice %21 {offsets = [0, 96], sizes = [8, 32], strides = [1, 1]} : vector<8x128xf32> to vector<8x32xf32>
    %41 = arith.negf %40 : vector<8x32xf32>
    %42 = math.exp %41 : vector<8x32xf32>
    %cst_17 = arith.constant 1.000000e+00 : f32
    %43 = vector.broadcast %cst_17 : f32 to vector<8x32xf32>
    %44 = arith.addf %43, %42 : vector<8x32xf32>
    %45 = arith.divf %43, %44 : vector<8x32xf32>
    %46 = arith.mulf %37, %9 : vector<8x32xf32>
    %47 = arith.mulf %31, %39 : vector<8x32xf32>
    %48 = arith.addf %46, %47 : vector<8x32xf32>
    %49 = math.tanh %48 : vector<8x32xf32>
    %50 = arith.mulf %45, %49 : vector<8x32xf32>
    %51 = vector.extract_strided_slice %25 {offsets = [0, 0], sizes = [8, 32], strides = [1, 1]} : vector<8x128xf32> to vector<8x32xf32>
    %52 = arith.negf %51 : vector<8x32xf32>
    %53 = math.exp %52 : vector<8x32xf32>
    %cst_18 = arith.constant 1.000000e+00 : f32
    %54 = vector.broadcast %cst_18 : f32 to vector<8x32xf32>
    %55 = arith.addf %54, %53 : vector<8x32xf32>
    %56 = arith.divf %54, %55 : vector<8x32xf32>
    %57 = vector.extract_strided_slice %25 {offsets = [0, 32], sizes = [8, 32], strides = [1, 1]} : vector<8x128xf32> to vector<8x32xf32>
    %58 = arith.negf %57 : vector<8x32xf32>
    %59 = math.exp %58 : vector<8x32xf32>
    %cst_19 = arith.constant 1.000000e+00 : f32
    %60 = vector.broadcast %cst_19 : f32 to vector<8x32xf32>
    %61 = arith.addf %60, %59 : vector<8x32xf32>
    %62 = arith.divf %60, %61 : vector<8x32xf32>
    %63 = vector.extract_strided_slice %25 {offsets = [0, 64], sizes = [8, 32], strides = [1, 1]} : vector<8x128xf32> to vector<8x32xf32>
    %64 = math.tanh %63 : vector<8x32xf32>
    %65 = vector.extract_strided_slice %25 {offsets = [0, 96], sizes = [8, 32], strides = [1, 1]} : vector<8x128xf32> to vector<8x32xf32>
    %66 = arith.negf %65 : vector<8x32xf32>
    %67 = math.exp %66 : vector<8x32xf32>
    %cst_20 = arith.constant 1.000000e+00 : f32
    %68 = vector.broadcast %cst_20 : f32 to vector<8x32xf32>
    %69 = arith.addf %68, %67 : vector<8x32xf32>
    %70 = arith.divf %68, %69 : vector<8x32xf32>
    %71 = arith.mulf %62, %10 : vector<8x32xf32>
    %72 = arith.mulf %56, %64 : vector<8x32xf32>
    %73 = arith.addf %71, %72 : vector<8x32xf32>
    %74 = math.tanh %73 : vector<8x32xf32>
    %75 = arith.mulf %70, %74 : vector<8x32xf32>
    %76 = arith.index_cast %12 : i32 to index
    %c0_21 = arith.constant 0 : index
    %77 = vector.load %arg12[%76, %c0_21] : memref<64x64xf32, #tpu.memory_space<vmem>>, vector<8x32xf32>
    tpu.vector_store %arg12[%76, %c0_21], %50 {strides = array<i32>} : memref<64x64xf32, #tpu.memory_space<vmem>>, vector<8x32xf32>,
    %78 = arith.index_cast %15 : i32 to index
    %c32 = arith.constant 32 : index
    %79 = vector.load %arg12[%78, %c32] : memref<64x64xf32, #tpu.memory_space<vmem>>, vector<8x32xf32>
    tpu.vector_store %arg12[%78, %c32], %75 {strides = array<i32>} : memref<64x64xf32, #tpu.memory_space<vmem>>, vector<8x32xf32>,
    %80 = tpu.concatenate %50, %75 in 1 : vector<8x32xf32>, vector<8x32xf32> -> vector<8x64xf32>
    %c1_i32 = arith.constant 1 : i32
    %c8_i32_22 = arith.constant 8 : i32
    %81 = arith.muli %c1_i32, %c8_i32_22 : i32
    %82 = tpu.assume_multiple %81, 8 : i32
    %c7_i32_23 = arith.constant 7 : i32
    %83 = arith.subi %c7_i32_23, %c1_i32 : i32
    %c8_i32_24 = arith.constant 8 : i32
    %84 = arith.muli %83, %c8_i32_24 : i32
    %85 = tpu.assume_multiple %84, 8 : i32
    %86 = arith.truncf %80 : vector<8x64xf32> to vector<8x64xbf16>
    %cst_25 = arith.constant dense<0.000000e+00> : vector<8x256xf32>
    %87 = tpu.matmul %86, %7, %cst_25 {dimension_numbers = #tpu.dot_dimension_numbers<[1], [0], [0], [1], [0, 0, 1, 1], [], []>} : vector<8x64xbf16>, vector<64x256xbf16>, vector<8x256xf32> -> vector<8x256xf32>
    %88 = arith.index_cast %82 : i32 to index
    %c0_26 = arith.constant 0 : index
    %89 = vector.load %arg14[%88, %c0_26] : memref<64x256xf32, #tpu.memory_space<vmem>>, vector<8x128xf32>
    %90 = vector.extract_strided_slice %87 {offsets = [0, 0], sizes = [8, 128], strides = [1, 1]} : vector<8x256xf32> to vector<8x128xf32>
    %91 = arith.addf %89, %90 : vector<8x128xf32>
    %92 = arith.index_cast %85 : i32 to index
    %c128_27 = arith.constant 128 : index
    %93 = vector.load %arg14[%92, %c128_27] : memref<64x256xf32, #tpu.memory_space<vmem>>, vector<8x128xf32>
    %94 = vector.extract_strided_slice %87 {offsets = [0, 128], sizes = [8, 128], strides = [1, 1]} : vector<8x256xf32> to vector<8x128xf32>
    %95 = arith.addf %93, %94 : vector<8x128xf32>
    %96 = vector.extract_strided_slice %91 {offsets = [0, 0], sizes = [8, 32], strides = [1, 1]} : vector<8x128xf32> to vector<8x32xf32>
    %97 = arith.negf %96 : vector<8x32xf32>
    %98 = math.exp %97 : vector<8x32xf32>
    %cst_28 = arith.constant 1.000000e+00 : f32
    %99 = vector.broadcast %cst_28 : f32 to vector<8x32xf32>
    %100 = arith.addf %99, %98 : vector<8x32xf32>
    %101 = arith.divf %99, %100 : vector<8x32xf32>
    %102 = vector.extract_strided_slice %91 {offsets = [0, 32], sizes = [8, 32], strides = [1, 1]} : vector<8x128xf32> to vector<8x32xf32>
    %103 = arith.negf %102 : vector<8x32xf32>
    %104 = math.exp %103 : vector<8x32xf32>
    %cst_29 = arith.constant 1.000000e+00 : f32
    %105 = vector.broadcast %cst_29 : f32 to vector<8x32xf32>
    %106 = arith.addf %105, %104 : vector<8x32xf32>
    %107 = arith.divf %105, %106 : vector<8x32xf32>
    %108 = vector.extract_strided_slice %91 {offsets = [0, 64], sizes = [8, 32], strides = [1, 1]} : vector<8x128xf32> to vector<8x32xf32>
    %109 = math.tanh %108 : vector<8x32xf32>
    %110 = vector.extract_strided_slice %91 {offsets = [0, 96], sizes = [8, 32], strides = [1, 1]} : vector<8x128xf32> to vector<8x32xf32>
    %111 = arith.negf %110 : vector<8x32xf32>
    %112 = math.exp %111 : vector<8x32xf32>
    %cst_30 = arith.constant 1.000000e+00 : f32
    %113 = vector.broadcast %cst_30 : f32 to vector<8x32xf32>
    %114 = arith.addf %113, %112 : vector<8x32xf32>
    %115 = arith.divf %113, %114 : vector<8x32xf32>
    %116 = arith.mulf %107, %48 : vector<8x32xf32>
    %117 = arith.mulf %101, %109 : vector<8x32xf32>
    %118 = arith.addf %116, %117 : vector<8x32xf32>
    %119 = math.tanh %118 : vector<8x32xf32>
    %120 = arith.mulf %115, %119 : vector<8x32xf32>
    %121 = vector.extract_strided_slice %95 {offsets = [0, 0], sizes = [8, 32], strides = [1, 1]} : vector<8x128xf32> to vector<8x32xf32>
    %122 = arith.negf %121 : vector<8x32xf32>
    %123 = math.exp %122 : vector<8x32xf32>
    %cst_31 = arith.constant 1.000000e+00 : f32
    %124 = vector.broadcast %cst_31 : f32 to vector<8x32xf32>
    %125 = arith.addf %124, %123 : vector<8x32xf32>
    %126 = arith.divf %124, %125 : vector<8x32xf32>
    %127 = vector.extract_strided_slice %95 {offsets = [0, 32], sizes = [8, 32], strides = [1, 1]} : vector<8x128xf32> to vector<8x32xf32>
    %128 = arith.negf %127 : vector<8x32xf32>
    %129 = math.exp %128 : vector<8x32xf32>
    %cst_32 = arith.constant 1.000000e+00 : f32
    %130 = vector.broadcast %cst_32 : f32 to vector<8x32xf32>
    %131 = arith.addf %130, %129 : vector<8x32xf32>
    %132 = arith.divf %130, %131 : vector<8x32xf32>
    %133 = vector.extract_strided_slice %95 {offsets = [0, 64], sizes = [8, 32], strides = [1, 1]} : vector<8x128xf32> to vector<8x32xf32>
    %134 = math.tanh %133 : vector<8x32xf32>
    %135 = vector.extract_strided_slice %95 {offsets = [0, 96], sizes = [8, 32], strides = [1, 1]} : vector<8x128xf32> to vector<8x32xf32>
    %136 = arith.negf %135 : vector<8x32xf32>
    %137 = math.exp %136 : vector<8x32xf32>
    %cst_33 = arith.constant 1.000000e+00 : f32
    %138 = vector.broadcast %cst_33 : f32 to vector<8x32xf32>
    %139 = arith.addf %138, %137 : vector<8x32xf32>
    %140 = arith.divf %138, %139 : vector<8x32xf32>
    %141 = arith.mulf %132, %73 : vector<8x32xf32>
    %142 = arith.mulf %126, %134 : vector<8x32xf32>
    %143 = arith.addf %141, %142 : vector<8x32xf32>
    %144 = math.tanh %143 : vector<8x32xf32>
    %145 = arith.mulf %140, %144 : vector<8x32xf32>
    %146 = arith.index_cast %82 : i32 to index
    %c0_34 = arith.constant 0 : index
    %147 = vector.load %arg12[%146, %c0_34] : memref<64x64xf32, #tpu.memory_space<vmem>>, vector<8x32xf32>
    tpu.vector_store %arg12[%146, %c0_34], %120 {strides = array<i32>} : memref<64x64xf32, #tpu.memory_space<vmem>>, vector<8x32xf32>,
    %148 = arith.index_cast %85 : i32 to index
    %c32_35 = arith.constant 32 : index
    %149 = vector.load %arg12[%148, %c32_35] : memref<64x64xf32, #tpu.memory_space<vmem>>, vector<8x32xf32>
    tpu.vector_store %arg12[%148, %c32_35], %145 {strides = array<i32>} : memref<64x64xf32, #tpu.memory_space<vmem>>, vector<8x32xf32>,
    %150 = tpu.concatenate %120, %145 in 1 : vector<8x32xf32>, vector<8x32xf32> -> vector<8x64xf32>
    %c2_i32 = arith.constant 2 : i32
    %c8_i32_36 = arith.constant 8 : i32
    %151 = arith.muli %c2_i32, %c8_i32_36 : i32
    %152 = tpu.assume_multiple %151, 8 : i32
    %c7_i32_37 = arith.constant 7 : i32
    %153 = arith.subi %c7_i32_37, %c2_i32 : i32
    %c8_i32_38 = arith.constant 8 : i32
    %154 = arith.muli %153, %c8_i32_38 : i32
    %155 = tpu.assume_multiple %154, 8 : i32
    %156 = arith.truncf %150 : vector<8x64xf32> to vector<8x64xbf16>
    %cst_39 = arith.constant dense<0.000000e+00> : vector<8x256xf32>
    %157 = tpu.matmul %156, %7, %cst_39 {dimension_numbers = #tpu.dot_dimension_numbers<[1], [0], [0], [1], [0, 0, 1, 1], [], []>} : vector<8x64xbf16>, vector<64x256xbf16>, vector<8x256xf32> -> vector<8x256xf32>
    %158 = arith.index_cast %152 : i32 to index
    %c0_40 = arith.constant 0 : index
    %159 = vector.load %arg14[%158, %c0_40] : memref<64x256xf32, #tpu.memory_space<vmem>>, vector<8x128xf32>
    %160 = vector.extract_strided_slice %157 {offsets = [0, 0], sizes = [8, 128], strides = [1, 1]} : vector<8x256xf32> to vector<8x128xf32>
    %161 = arith.addf %159, %160 : vector<8x128xf32>
    %162 = arith.index_cast %155 : i32 to index
    %c128_41 = arith.constant 128 : index
    %163 = vector.load %arg14[%162, %c128_41] : memref<64x256xf32, #tpu.memory_space<vmem>>, vector<8x128xf32>
    %164 = vector.extract_strided_slice %157 {offsets = [0, 128], sizes = [8, 128], strides = [1, 1]} : vector<8x256xf32> to vector<8x128xf32>
    %165 = arith.addf %163, %164 : vector<8x128xf32>
    %166 = vector.extract_strided_slice %161 {offsets = [0, 0], sizes = [8, 32], strides = [1, 1]} : vector<8x128xf32> to vector<8x32xf32>
    %167 = arith.negf %166 : vector<8x32xf32>
    %168 = math.exp %167 : vector<8x32xf32>
    %cst_42 = arith.constant 1.000000e+00 : f32
    %169 = vector.broadcast %cst_42 : f32 to vector<8x32xf32>
    %170 = arith.addf %169, %168 : vector<8x32xf32>
    %171 = arith.divf %169, %170 : vector<8x32xf32>
    %172 = vector.extract_strided_slice %161 {offsets = [0, 32], sizes = [8, 32], strides = [1, 1]} : vector<8x128xf32> to vector<8x32xf32>
    %173 = arith.negf %172 : vector<8x32xf32>
    %174 = math.exp %173 : vector<8x32xf32>
    %cst_43 = arith.constant 1.000000e+00 : f32
    %175 = vector.broadcast %cst_43 : f32 to vector<8x32xf32>
    %176 = arith.addf %175, %174 : vector<8x32xf32>
    %177 = arith.divf %175, %176 : vector<8x32xf32>
    %178 = vector.extract_strided_slice %161 {offsets = [0, 64], sizes = [8, 32], strides = [1, 1]} : vector<8x128xf32> to vector<8x32xf32>
    %179 = math.tanh %178 : vector<8x32xf32>
    %180 = vector.extract_strided_slice %161 {offsets = [0, 96], sizes = [8, 32], strides = [1, 1]} : vector<8x128xf32> to vector<8x32xf32>
    %181 = arith.negf %180 : vector<8x32xf32>
    %182 = math.exp %181 : vector<8x32xf32>
    %cst_44 = arith.constant 1.000000e+00 : f32
    %183 = vector.broadcast %cst_44 : f32 to vector<8x32xf32>
    %184 = arith.addf %183, %182 : vector<8x32xf32>
    %185 = arith.divf %183, %184 : vector<8x32xf32>
    %186 = arith.mulf %177, %118 : vector<8x32xf32>
    %187 = arith.mulf %171, %179 : vector<8x32xf32>
    %188 = arith.addf %186, %187 : vector<8x32xf32>
    %189 = math.tanh %188 : vector<8x32xf32>
    %190 = arith.mulf %185, %189 : vector<8x32xf32>
    %191 = vector.extract_strided_slice %165 {offsets = [0, 0], sizes = [8, 32], strides = [1, 1]} : vector<8x128xf32> to vector<8x32xf32>
    %192 = arith.negf %191 : vector<8x32xf32>
    %193 = math.exp %192 : vector<8x32xf32>
    %cst_45 = arith.constant 1.000000e+00 : f32
    %194 = vector.broadcast %cst_45 : f32 to vector<8x32xf32>
    %195 = arith.addf %194, %193 : vector<8x32xf32>
    %196 = arith.divf %194, %195 : vector<8x32xf32>
    %197 = vector.extract_strided_slice %165 {offsets = [0, 32], sizes = [8, 32], strides = [1, 1]} : vector<8x128xf32> to vector<8x32xf32>
    %198 = arith.negf %197 : vector<8x32xf32>
    %199 = math.exp %198 : vector<8x32xf32>
    %cst_46 = arith.constant 1.000000e+00 : f32
    %200 = vector.broadcast %cst_46 : f32 to vector<8x32xf32>
    %201 = arith.addf %200, %199 : vector<8x32xf32>
    %202 = arith.divf %200, %201 : vector<8x32xf32>
    %203 = vector.extract_strided_slice %165 {offsets = [0, 64], sizes = [8, 32], strides = [1, 1]} : vector<8x128xf32> to vector<8x32xf32>
    %204 = math.tanh %203 : vector<8x32xf32>
    %205 = vector.extract_strided_slice %165 {offsets = [0, 96], sizes = [8, 32], strides = [1, 1]} : vector<8x128xf32> to vector<8x32xf32>
    %206 = arith.negf %205 : vector<8x32xf32>
    %207 = math.exp %206 : vector<8x32xf32>
    %cst_47 = arith.constant 1.000000e+00 : f32
    %208 = vector.broadcast %cst_47 : f32 to vector<8x32xf32>
    %209 = arith.addf %208, %207 : vector<8x32xf32>
    %210 = arith.divf %208, %209 : vector<8x32xf32>
    %211 = arith.mulf %202, %143 : vector<8x32xf32>
    %212 = arith.mulf %196, %204 : vector<8x32xf32>
    %213 = arith.addf %211, %212 : vector<8x32xf32>
    %214 = math.tanh %213 : vector<8x32xf32>
    %215 = arith.mulf %210, %214 : vector<8x32xf32>
    %216 = arith.index_cast %152 : i32 to index
    %c0_48 = arith.constant 0 : index
    %217 = vector.load %arg12[%216, %c0_48] : memref<64x64xf32, #tpu.memory_space<vmem>>, vector<8x32xf32>
    tpu.vector_store %arg12[%216, %c0_48], %190 {strides = array<i32>} : memref<64x64xf32, #tpu.memory_space<vmem>>, vector<8x32xf32>,
    %218 = arith.index_cast %155 : i32 to index
    %c32_49 = arith.constant 32 : index
    %219 = vector.load %arg12[%218, %c32_49] : memref<64x64xf32, #tpu.memory_space<vmem>>, vector<8x32xf32>
    tpu.vector_store %arg12[%218, %c32_49], %215 {strides = array<i32>} : memref<64x64xf32, #tpu.memory_space<vmem>>, vector<8x32xf32>,
    %220 = tpu.concatenate %190, %215 in 1 : vector<8x32xf32>, vector<8x32xf32> -> vector<8x64xf32>
    %c3_i32 = arith.constant 3 : i32
    %c8_i32_50 = arith.constant 8 : i32
    %221 = arith.muli %c3_i32, %c8_i32_50 : i32
    %222 = tpu.assume_multiple %221, 8 : i32
    %c7_i32_51 = arith.constant 7 : i32
    %223 = arith.subi %c7_i32_51, %c3_i32 : i32
    %c8_i32_52 = arith.constant 8 : i32
    %224 = arith.muli %223, %c8_i32_52 : i32
    %225 = tpu.assume_multiple %224, 8 : i32
    %226 = arith.truncf %220 : vector<8x64xf32> to vector<8x64xbf16>
    %cst_53 = arith.constant dense<0.000000e+00> : vector<8x256xf32>
    %227 = tpu.matmul %226, %7, %cst_53 {dimension_numbers = #tpu.dot_dimension_numbers<[1], [0], [0], [1], [0, 0, 1, 1], [], []>} : vector<8x64xbf16>, vector<64x256xbf16>, vector<8x256xf32> -> vector<8x256xf32>
    %228 = arith.index_cast %222 : i32 to index
    %c0_54 = arith.constant 0 : index
    %229 = vector.load %arg14[%228, %c0_54] : memref<64x256xf32, #tpu.memory_space<vmem>>, vector<8x128xf32>
    %230 = vector.extract_strided_slice %227 {offsets = [0, 0], sizes = [8, 128], strides = [1, 1]} : vector<8x256xf32> to vector<8x128xf32>
    %231 = arith.addf %229, %230 : vector<8x128xf32>
    %232 = arith.index_cast %225 : i32 to index
    %c128_55 = arith.constant 128 : index
    %233 = vector.load %arg14[%232, %c128_55] : memref<64x256xf32, #tpu.memory_space<vmem>>, vector<8x128xf32>
    %234 = vector.extract_strided_slice %227 {offsets = [0, 128], sizes = [8, 128], strides = [1, 1]} : vector<8x256xf32> to vector<8x128xf32>
    %235 = arith.addf %233, %234 : vector<8x128xf32>
    %236 = vector.extract_strided_slice %231 {offsets = [0, 0], sizes = [8, 32], strides = [1, 1]} : vector<8x128xf32> to vector<8x32xf32>
    %237 = arith.negf %236 : vector<8x32xf32>
    %238 = math.exp %237 : vector<8x32xf32>
    %cst_56 = arith.constant 1.000000e+00 : f32
    %239 = vector.broadcast %cst_56 : f32 to vector<8x32xf32>
    %240 = arith.addf %239, %238 : vector<8x32xf32>
    %241 = arith.divf %239, %240 : vector<8x32xf32>
    %242 = vector.extract_strided_slice %231 {offsets = [0, 32], sizes = [8, 32], strides = [1, 1]} : vector<8x128xf32> to vector<8x32xf32>
    %243 = arith.negf %242 : vector<8x32xf32>
    %244 = math.exp %243 : vector<8x32xf32>
    %cst_57 = arith.constant 1.000000e+00 : f32
    %245 = vector.broadcast %cst_57 : f32 to vector<8x32xf32>
    %246 = arith.addf %245, %244 : vector<8x32xf32>
    %247 = arith.divf %245, %246 : vector<8x32xf32>
    %248 = vector.extract_strided_slice %231 {offsets = [0, 64], sizes = [8, 32], strides = [1, 1]} : vector<8x128xf32> to vector<8x32xf32>
    %249 = math.tanh %248 : vector<8x32xf32>
    %250 = vector.extract_strided_slice %231 {offsets = [0, 96], sizes = [8, 32], strides = [1, 1]} : vector<8x128xf32> to vector<8x32xf32>
    %251 = arith.negf %250 : vector<8x32xf32>
    %252 = math.exp %251 : vector<8x32xf32>
    %cst_58 = arith.constant 1.000000e+00 : f32
    %253 = vector.broadcast %cst_58 : f32 to vector<8x32xf32>
    %254 = arith.addf %253, %252 : vector<8x32xf32>
    %255 = arith.divf %253, %254 : vector<8x32xf32>
    %256 = arith.mulf %247, %188 : vector<8x32xf32>
    %257 = arith.mulf %241, %249 : vector<8x32xf32>
    %258 = arith.addf %256, %257 : vector<8x32xf32>
    %259 = math.tanh %258 : vector<8x32xf32>
    %260 = arith.mulf %255, %259 : vector<8x32xf32>
    %261 = vector.extract_strided_slice %235 {offsets = [0, 0], sizes = [8, 32], strides = [1, 1]} : vector<8x128xf32> to vector<8x32xf32>
    %262 = arith.negf %261 : vector<8x32xf32>
    %263 = math.exp %262 : vector<8x32xf32>
    %cst_59 = arith.constant 1.000000e+00 : f32
    %264 = vector.broadcast %cst_59 : f32 to vector<8x32xf32>
    %265 = arith.addf %264, %263 : vector<8x32xf32>
    %266 = arith.divf %264, %265 : vector<8x32xf32>
    %267 = vector.extract_strided_slice %235 {offsets = [0, 32], sizes = [8, 32], strides = [1, 1]} : vector<8x128xf32> to vector<8x32xf32>
    %268 = arith.negf %267 : vector<8x32xf32>
    %269 = math.exp %268 : vector<8x32xf32>
    %cst_60 = arith.constant 1.000000e+00 : f32
    %270 = vector.broadcast %cst_60 : f32 to vector<8x32xf32>
    %271 = arith.addf %270, %269 : vector<8x32xf32>
    %272 = arith.divf %270, %271 : vector<8x32xf32>
    %273 = vector.extract_strided_slice %235 {offsets = [0, 64], sizes = [8, 32], strides = [1, 1]} : vector<8x128xf32> to vector<8x32xf32>
    %274 = math.tanh %273 : vector<8x32xf32>
    %275 = vector.extract_strided_slice %235 {offsets = [0, 96], sizes = [8, 32], strides = [1, 1]} : vector<8x128xf32> to vector<8x32xf32>
    %276 = arith.negf %275 : vector<8x32xf32>
    %277 = math.exp %276 : vector<8x32xf32>
    %cst_61 = arith.constant 1.000000e+00 : f32
    %278 = vector.broadcast %cst_61 : f32 to vector<8x32xf32>
    %279 = arith.addf %278, %277 : vector<8x32xf32>
    %280 = arith.divf %278, %279 : vector<8x32xf32>
    %281 = arith.mulf %272, %213 : vector<8x32xf32>
    %282 = arith.mulf %266, %274 : vector<8x32xf32>
    %283 = arith.addf %281, %282 : vector<8x32xf32>
    %284 = math.tanh %283 : vector<8x32xf32>
    %285 = arith.mulf %280, %284 : vector<8x32xf32>
    %286 = arith.index_cast %222 : i32 to index
    %c0_62 = arith.constant 0 : index
    %287 = vector.load %arg12[%286, %c0_62] : memref<64x64xf32, #tpu.memory_space<vmem>>, vector<8x32xf32>
    tpu.vector_store %arg12[%286, %c0_62], %260 {strides = array<i32>} : memref<64x64xf32, #tpu.memory_space<vmem>>, vector<8x32xf32>,
    %288 = arith.index_cast %225 : i32 to index
    %c32_63 = arith.constant 32 : index
    %289 = vector.load %arg12[%288, %c32_63] : memref<64x64xf32, #tpu.memory_space<vmem>>, vector<8x32xf32>
    tpu.vector_store %arg12[%288, %c32_63], %285 {strides = array<i32>} : memref<64x64xf32, #tpu.memory_space<vmem>>, vector<8x32xf32>,
    %290 = tpu.concatenate %260, %285 in 1 : vector<8x32xf32>, vector<8x32xf32> -> vector<8x64xf32>
    %c4_i32 = arith.constant 4 : i32
    %c8_i32_64 = arith.constant 8 : i32
    %291 = arith.muli %c4_i32, %c8_i32_64 : i32
    %292 = tpu.assume_multiple %291, 8 : i32
    %c7_i32_65 = arith.constant 7 : i32
    %293 = arith.subi %c7_i32_65, %c4_i32 : i32
    %c8_i32_66 = arith.constant 8 : i32
    %294 = arith.muli %293, %c8_i32_66 : i32
    %295 = tpu.assume_multiple %294, 8 : i32
    %296 = arith.truncf %290 : vector<8x64xf32> to vector<8x64xbf16>
    %cst_67 = arith.constant dense<0.000000e+00> : vector<8x256xf32>
    %297 = tpu.matmul %296, %7, %cst_67 {dimension_numbers = #tpu.dot_dimension_numbers<[1], [0], [0], [1], [0, 0, 1, 1], [], []>} : vector<8x64xbf16>, vector<64x256xbf16>, vector<8x256xf32> -> vector<8x256xf32>
    %298 = arith.index_cast %292 : i32 to index
    %c0_68 = arith.constant 0 : index
    %299 = vector.load %arg14[%298, %c0_68] : memref<64x256xf32, #tpu.memory_space<vmem>>, vector<8x128xf32>
    %300 = vector.extract_strided_slice %297 {offsets = [0, 0], sizes = [8, 128], strides = [1, 1]} : vector<8x256xf32> to vector<8x128xf32>
    %301 = arith.addf %299, %300 : vector<8x128xf32>
    %302 = arith.index_cast %295 : i32 to index
    %c128_69 = arith.constant 128 : index
    %303 = vector.load %arg14[%302, %c128_69] : memref<64x256xf32, #tpu.memory_space<vmem>>, vector<8x128xf32>
    %304 = vector.extract_strided_slice %297 {offsets = [0, 128], sizes = [8, 128], strides = [1, 1]} : vector<8x256xf32> to vector<8x128xf32>
    %305 = arith.addf %303, %304 : vector<8x128xf32>
    %306 = vector.extract_strided_slice %301 {offsets = [0, 0], sizes = [8, 32], strides = [1, 1]} : vector<8x128xf32> to vector<8x32xf32>
    %307 = arith.negf %306 : vector<8x32xf32>
    %308 = math.exp %307 : vector<8x32xf32>
    %cst_70 = arith.constant 1.000000e+00 : f32
    %309 = vector.broadcast %cst_70 : f32 to vector<8x32xf32>
    %310 = arith.addf %309, %308 : vector<8x32xf32>
    %311 = arith.divf %309, %310 : vector<8x32xf32>
    %312 = vector.extract_strided_slice %301 {offsets = [0, 32], sizes = [8, 32], strides = [1, 1]} : vector<8x128xf32> to vector<8x32xf32>
    %313 = arith.negf %312 : vector<8x32xf32>
    %314 = math.exp %313 : vector<8x32xf32>
    %cst_71 = arith.constant 1.000000e+00 : f32
    %315 = vector.broadcast %cst_71 : f32 to vector<8x32xf32>
    %316 = arith.addf %315, %314 : vector<8x32xf32>
    %317 = arith.divf %315, %316 : vector<8x32xf32>
    %318 = vector.extract_strided_slice %301 {offsets = [0, 64], sizes = [8, 32], strides = [1, 1]} : vector<8x128xf32> to vector<8x32xf32>
    %319 = math.tanh %318 : vector<8x32xf32>
    %320 = vector.extract_strided_slice %301 {offsets = [0, 96], sizes = [8, 32], strides = [1, 1]} : vector<8x128xf32> to vector<8x32xf32>
    %321 = arith.negf %320 : vector<8x32xf32>
    %322 = math.exp %321 : vector<8x32xf32>
    %cst_72 = arith.constant 1.000000e+00 : f32
    %323 = vector.broadcast %cst_72 : f32 to vector<8x32xf32>
    %324 = arith.addf %323, %322 : vector<8x32xf32>
    %325 = arith.divf %323, %324 : vector<8x32xf32>
    %326 = arith.mulf %317, %258 : vector<8x32xf32>
    %327 = arith.mulf %311, %319 : vector<8x32xf32>
    %328 = arith.addf %326, %327 : vector<8x32xf32>
    %329 = math.tanh %328 : vector<8x32xf32>
    %330 = arith.mulf %325, %329 : vector<8x32xf32>
    %331 = vector.extract_strided_slice %305 {offsets = [0, 0], sizes = [8, 32], strides = [1, 1]} : vector<8x128xf32> to vector<8x32xf32>
    %332 = arith.negf %331 : vector<8x32xf32>
    %333 = math.exp %332 : vector<8x32xf32>
    %cst_73 = arith.constant 1.000000e+00 : f32
    %334 = vector.broadcast %cst_73 : f32 to vector<8x32xf32>
    %335 = arith.addf %334, %333 : vector<8x32xf32>
    %336 = arith.divf %334, %335 : vector<8x32xf32>
    %337 = vector.extract_strided_slice %305 {offsets = [0, 32], sizes = [8, 32], strides = [1, 1]} : vector<8x128xf32> to vector<8x32xf32>
    %338 = arith.negf %337 : vector<8x32xf32>
    %339 = math.exp %338 : vector<8x32xf32>
    %cst_74 = arith.constant 1.000000e+00 : f32
    %340 = vector.broadcast %cst_74 : f32 to vector<8x32xf32>
    %341 = arith.addf %340, %339 : vector<8x32xf32>
    %342 = arith.divf %340, %341 : vector<8x32xf32>
    %343 = vector.extract_strided_slice %305 {offsets = [0, 64], sizes = [8, 32], strides = [1, 1]} : vector<8x128xf32> to vector<8x32xf32>
    %344 = math.tanh %343 : vector<8x32xf32>
    %345 = vector.extract_strided_slice %305 {offsets = [0, 96], sizes = [8, 32], strides = [1, 1]} : vector<8x128xf32> to vector<8x32xf32>
    %346 = arith.negf %345 : vector<8x32xf32>
    %347 = math.exp %346 : vector<8x32xf32>
    %cst_75 = arith.constant 1.000000e+00 : f32
    %348 = vector.broadcast %cst_75 : f32 to vector<8x32xf32>
    %349 = arith.addf %348, %347 : vector<8x32xf32>
    %350 = arith.divf %348, %349 : vector<8x32xf32>
    %351 = arith.mulf %342, %283 : vector<8x32xf32>
    %352 = arith.mulf %336, %344 : vector<8x32xf32>
    %353 = arith.addf %351, %352 : vector<8x32xf32>
    %354 = math.tanh %353 : vector<8x32xf32>
    %355 = arith.mulf %350, %354 : vector<8x32xf32>
    %356 = arith.index_cast %292 : i32 to index
    %c0_76 = arith.constant 0 : index
    %357 = vector.load %arg12[%356, %c0_76] : memref<64x64xf32, #tpu.memory_space<vmem>>, vector<8x32xf32>
    tpu.vector_store %arg12[%356, %c0_76], %330 {strides = array<i32>} : memref<64x64xf32, #tpu.memory_space<vmem>>, vector<8x32xf32>,
    %358 = arith.index_cast %295 : i32 to index
    %c32_77 = arith.constant 32 : index
    %359 = vector.load %arg12[%358, %c32_77] : memref<64x64xf32, #tpu.memory_space<vmem>>, vector<8x32xf32>
    tpu.vector_store %arg12[%358, %c32_77], %355 {strides = array<i32>} : memref<64x64xf32, #tpu.memory_space<vmem>>, vector<8x32xf32>,
    %360 = tpu.concatenate %330, %355 in 1 : vector<8x32xf32>, vector<8x32xf32> -> vector<8x64xf32>
    %c5_i32 = arith.constant 5 : i32
    %c8_i32_78 = arith.constant 8 : i32
    %361 = arith.muli %c5_i32, %c8_i32_78 : i32
    %362 = tpu.assume_multiple %361, 8 : i32
    %c7_i32_79 = arith.constant 7 : i32
    %363 = arith.subi %c7_i32_79, %c5_i32 : i32
    %c8_i32_80 = arith.constant 8 : i32
    %364 = arith.muli %363, %c8_i32_80 : i32
    %365 = tpu.assume_multiple %364, 8 : i32
    %366 = arith.truncf %360 : vector<8x64xf32> to vector<8x64xbf16>
    %cst_81 = arith.constant dense<0.000000e+00> : vector<8x256xf32>
    %367 = tpu.matmul %366, %7, %cst_81 {dimension_numbers = #tpu.dot_dimension_numbers<[1], [0], [0], [1], [0, 0, 1, 1], [], []>} : vector<8x64xbf16>, vector<64x256xbf16>, vector<8x256xf32> -> vector<8x256xf32>
    %368 = arith.index_cast %362 : i32 to index
    %c0_82 = arith.constant 0 : index
    %369 = vector.load %arg14[%368, %c0_82] : memref<64x256xf32, #tpu.memory_space<vmem>>, vector<8x128xf32>
    %370 = vector.extract_strided_slice %367 {offsets = [0, 0], sizes = [8, 128], strides = [1, 1]} : vector<8x256xf32> to vector<8x128xf32>
    %371 = arith.addf %369, %370 : vector<8x128xf32>
    %372 = arith.index_cast %365 : i32 to index
    %c128_83 = arith.constant 128 : index
    %373 = vector.load %arg14[%372, %c128_83] : memref<64x256xf32, #tpu.memory_space<vmem>>, vector<8x128xf32>
    %374 = vector.extract_strided_slice %367 {offsets = [0, 128], sizes = [8, 128], strides = [1, 1]} : vector<8x256xf32> to vector<8x128xf32>
    %375 = arith.addf %373, %374 : vector<8x128xf32>
    %376 = vector.extract_strided_slice %371 {offsets = [0, 0], sizes = [8, 32], strides = [1, 1]} : vector<8x128xf32> to vector<8x32xf32>
    %377 = arith.negf %376 : vector<8x32xf32>
    %378 = math.exp %377 : vector<8x32xf32>
    %cst_84 = arith.constant 1.000000e+00 : f32
    %379 = vector.broadcast %cst_84 : f32 to vector<8x32xf32>
    %380 = arith.addf %379, %378 : vector<8x32xf32>
    %381 = arith.divf %379, %380 : vector<8x32xf32>
    %382 = vector.extract_strided_slice %371 {offsets = [0, 32], sizes = [8, 32], strides = [1, 1]} : vector<8x128xf32> to vector<8x32xf32>
    %383 = arith.negf %382 : vector<8x32xf32>
    %384 = math.exp %383 : vector<8x32xf32>
    %cst_85 = arith.constant 1.000000e+00 : f32
    %385 = vector.broadcast %cst_85 : f32 to vector<8x32xf32>
    %386 = arith.addf %385, %384 : vector<8x32xf32>
    %387 = arith.divf %385, %386 : vector<8x32xf32>
    %388 = vector.extract_strided_slice %371 {offsets = [0, 64], sizes = [8, 32], strides = [1, 1]} : vector<8x128xf32> to vector<8x32xf32>
    %389 = math.tanh %388 : vector<8x32xf32>
    %390 = vector.extract_strided_slice %371 {offsets = [0, 96], sizes = [8, 32], strides = [1, 1]} : vector<8x128xf32> to vector<8x32xf32>
    %391 = arith.negf %390 : vector<8x32xf32>
    %392 = math.exp %391 : vector<8x32xf32>
    %cst_86 = arith.constant 1.000000e+00 : f32
    %393 = vector.broadcast %cst_86 : f32 to vector<8x32xf32>
    %394 = arith.addf %393, %392 : vector<8x32xf32>
    %395 = arith.divf %393, %394 : vector<8x32xf32>
    %396 = arith.mulf %387, %328 : vector<8x32xf32>
    %397 = arith.mulf %381, %389 : vector<8x32xf32>
    %398 = arith.addf %396, %397 : vector<8x32xf32>
    %399 = math.tanh %398 : vector<8x32xf32>
    %400 = arith.mulf %395, %399 : vector<8x32xf32>
    %401 = vector.extract_strided_slice %375 {offsets = [0, 0], sizes = [8, 32], strides = [1, 1]} : vector<8x128xf32> to vector<8x32xf32>
    %402 = arith.negf %401 : vector<8x32xf32>
    %403 = math.exp %402 : vector<8x32xf32>
    %cst_87 = arith.constant 1.000000e+00 : f32
    %404 = vector.broadcast %cst_87 : f32 to vector<8x32xf32>
    %405 = arith.addf %404, %403 : vector<8x32xf32>
    %406 = arith.divf %404, %405 : vector<8x32xf32>
    %407 = vector.extract_strided_slice %375 {offsets = [0, 32], sizes = [8, 32], strides = [1, 1]} : vector<8x128xf32> to vector<8x32xf32>
    %408 = arith.negf %407 : vector<8x32xf32>
    %409 = math.exp %408 : vector<8x32xf32>
    %cst_88 = arith.constant 1.000000e+00 : f32
    %410 = vector.broadcast %cst_88 : f32 to vector<8x32xf32>
    %411 = arith.addf %410, %409 : vector<8x32xf32>
    %412 = arith.divf %410, %411 : vector<8x32xf32>
    %413 = vector.extract_strided_slice %375 {offsets = [0, 64], sizes = [8, 32], strides = [1, 1]} : vector<8x128xf32> to vector<8x32xf32>
    %414 = math.tanh %413 : vector<8x32xf32>
    %415 = vector.extract_strided_slice %375 {offsets = [0, 96], sizes = [8, 32], strides = [1, 1]} : vector<8x128xf32> to vector<8x32xf32>
    %416 = arith.negf %415 : vector<8x32xf32>
    %417 = math.exp %416 : vector<8x32xf32>
    %cst_89 = arith.constant 1.000000e+00 : f32
    %418 = vector.broadcast %cst_89 : f32 to vector<8x32xf32>
    %419 = arith.addf %418, %417 : vector<8x32xf32>
    %420 = arith.divf %418, %419 : vector<8x32xf32>
    %421 = arith.mulf %412, %353 : vector<8x32xf32>
    %422 = arith.mulf %406, %414 : vector<8x32xf32>
    %423 = arith.addf %421, %422 : vector<8x32xf32>
    %424 = math.tanh %423 : vector<8x32xf32>
    %425 = arith.mulf %420, %424 : vector<8x32xf32>
    %426 = arith.index_cast %362 : i32 to index
    %c0_90 = arith.constant 0 : index
    %427 = vector.load %arg12[%426, %c0_90] : memref<64x64xf32, #tpu.memory_space<vmem>>, vector<8x32xf32>
    tpu.vector_store %arg12[%426, %c0_90], %400 {strides = array<i32>} : memref<64x64xf32, #tpu.memory_space<vmem>>, vector<8x32xf32>,
    %428 = arith.index_cast %365 : i32 to index
    %c32_91 = arith.constant 32 : index
    %429 = vector.load %arg12[%428, %c32_91] : memref<64x64xf32, #tpu.memory_space<vmem>>, vector<8x32xf32>
    tpu.vector_store %arg12[%428, %c32_91], %425 {strides = array<i32>} : memref<64x64xf32, #tpu.memory_space<vmem>>, vector<8x32xf32>,
    %430 = tpu.concatenate %400, %425 in 1 : vector<8x32xf32>, vector<8x32xf32> -> vector<8x64xf32>
    %c6_i32 = arith.constant 6 : i32
    %c8_i32_92 = arith.constant 8 : i32
    %431 = arith.muli %c6_i32, %c8_i32_92 : i32
    %432 = tpu.assume_multiple %431, 8 : i32
    %c7_i32_93 = arith.constant 7 : i32
    %433 = arith.subi %c7_i32_93, %c6_i32 : i32
    %c8_i32_94 = arith.constant 8 : i32
    %434 = arith.muli %433, %c8_i32_94 : i32
    %435 = tpu.assume_multiple %434, 8 : i32
    %436 = arith.truncf %430 : vector<8x64xf32> to vector<8x64xbf16>
    %cst_95 = arith.constant dense<0.000000e+00> : vector<8x256xf32>
    %437 = tpu.matmul %436, %7, %cst_95 {dimension_numbers = #tpu.dot_dimension_numbers<[1], [0], [0], [1], [0, 0, 1, 1], [], []>} : vector<8x64xbf16>, vector<64x256xbf16>, vector<8x256xf32> -> vector<8x256xf32>
    %438 = arith.index_cast %432 : i32 to index
    %c0_96 = arith.constant 0 : index
    %439 = vector.load %arg14[%438, %c0_96] : memref<64x256xf32, #tpu.memory_space<vmem>>, vector<8x128xf32>
    %440 = vector.extract_strided_slice %437 {offsets = [0, 0], sizes = [8, 128], strides = [1, 1]} : vector<8x256xf32> to vector<8x128xf32>
    %441 = arith.addf %439, %440 : vector<8x128xf32>
    %442 = arith.index_cast %435 : i32 to index
    %c128_97 = arith.constant 128 : index
    %443 = vector.load %arg14[%442, %c128_97] : memref<64x256xf32, #tpu.memory_space<vmem>>, vector<8x128xf32>
    %444 = vector.extract_strided_slice %437 {offsets = [0, 128], sizes = [8, 128], strides = [1, 1]} : vector<8x256xf32> to vector<8x128xf32>
    %445 = arith.addf %443, %444 : vector<8x128xf32>
    %446 = vector.extract_strided_slice %441 {offsets = [0, 0], sizes = [8, 32], strides = [1, 1]} : vector<8x128xf32> to vector<8x32xf32>
    %447 = arith.negf %446 : vector<8x32xf32>
    %448 = math.exp %447 : vector<8x32xf32>
    %cst_98 = arith.constant 1.000000e+00 : f32
    %449 = vector.broadcast %cst_98 : f32 to vector<8x32xf32>
    %450 = arith.addf %449, %448 : vector<8x32xf32>
    %451 = arith.divf %449, %450 : vector<8x32xf32>
    %452 = vector.extract_strided_slice %441 {offsets = [0, 32], sizes = [8, 32], strides = [1, 1]} : vector<8x128xf32> to vector<8x32xf32>
    %453 = arith.negf %452 : vector<8x32xf32>
    %454 = math.exp %453 : vector<8x32xf32>
    %cst_99 = arith.constant 1.000000e+00 : f32
    %455 = vector.broadcast %cst_99 : f32 to vector<8x32xf32>
    %456 = arith.addf %455, %454 : vector<8x32xf32>
    %457 = arith.divf %455, %456 : vector<8x32xf32>
    %458 = vector.extract_strided_slice %441 {offsets = [0, 64], sizes = [8, 32], strides = [1, 1]} : vector<8x128xf32> to vector<8x32xf32>
    %459 = math.tanh %458 : vector<8x32xf32>
    %460 = vector.extract_strided_slice %441 {offsets = [0, 96], sizes = [8, 32], strides = [1, 1]} : vector<8x128xf32> to vector<8x32xf32>
    %461 = arith.negf %460 : vector<8x32xf32>
    %462 = math.exp %461 : vector<8x32xf32>
    %cst_100 = arith.constant 1.000000e+00 : f32
    %463 = vector.broadcast %cst_100 : f32 to vector<8x32xf32>
    %464 = arith.addf %463, %462 : vector<8x32xf32>
    %465 = arith.divf %463, %464 : vector<8x32xf32>
    %466 = arith.mulf %457, %398 : vector<8x32xf32>
    %467 = arith.mulf %451, %459 : vector<8x32xf32>
    %468 = arith.addf %466, %467 : vector<8x32xf32>
    %469 = math.tanh %468 : vector<8x32xf32>
    %470 = arith.mulf %465, %469 : vector<8x32xf32>
    %471 = vector.extract_strided_slice %445 {offsets = [0, 0], sizes = [8, 32], strides = [1, 1]} : vector<8x128xf32> to vector<8x32xf32>
    %472 = arith.negf %471 : vector<8x32xf32>
    %473 = math.exp %472 : vector<8x32xf32>
    %cst_101 = arith.constant 1.000000e+00 : f32
    %474 = vector.broadcast %cst_101 : f32 to vector<8x32xf32>
    %475 = arith.addf %474, %473 : vector<8x32xf32>
    %476 = arith.divf %474, %475 : vector<8x32xf32>
    %477 = vector.extract_strided_slice %445 {offsets = [0, 32], sizes = [8, 32], strides = [1, 1]} : vector<8x128xf32> to vector<8x32xf32>
    %478 = arith.negf %477 : vector<8x32xf32>
    %479 = math.exp %478 : vector<8x32xf32>
    %cst_102 = arith.constant 1.000000e+00 : f32
    %480 = vector.broadcast %cst_102 : f32 to vector<8x32xf32>
    %481 = arith.addf %480, %479 : vector<8x32xf32>
    %482 = arith.divf %480, %481 : vector<8x32xf32>
    %483 = vector.extract_strided_slice %445 {offsets = [0, 64], sizes = [8, 32], strides = [1, 1]} : vector<8x128xf32> to vector<8x32xf32>
    %484 = math.tanh %483 : vector<8x32xf32>
    %485 = vector.extract_strided_slice %445 {offsets = [0, 96], sizes = [8, 32], strides = [1, 1]} : vector<8x128xf32> to vector<8x32xf32>
    %486 = arith.negf %485 : vector<8x32xf32>
    %487 = math.exp %486 : vector<8x32xf32>
    %cst_103 = arith.constant 1.000000e+00 : f32
    %488 = vector.broadcast %cst_103 : f32 to vector<8x32xf32>
    %489 = arith.addf %488, %487 : vector<8x32xf32>
    %490 = arith.divf %488, %489 : vector<8x32xf32>
    %491 = arith.mulf %482, %423 : vector<8x32xf32>
    %492 = arith.mulf %476, %484 : vector<8x32xf32>
    %493 = arith.addf %491, %492 : vector<8x32xf32>
    %494 = math.tanh %493 : vector<8x32xf32>
    %495 = arith.mulf %490, %494 : vector<8x32xf32>
    %496 = arith.index_cast %432 : i32 to index
    %c0_104 = arith.constant 0 : index
    %497 = vector.load %arg12[%496, %c0_104] : memref<64x64xf32, #tpu.memory_space<vmem>>, vector<8x32xf32>
    tpu.vector_store %arg12[%496, %c0_104], %470 {strides = array<i32>} : memref<64x64xf32, #tpu.memory_space<vmem>>, vector<8x32xf32>,
    %498 = arith.index_cast %435 : i32 to index
    %c32_105 = arith.constant 32 : index
    %499 = vector.load %arg12[%498, %c32_105] : memref<64x64xf32, #tpu.memory_space<vmem>>, vector<8x32xf32>
    tpu.vector_store %arg12[%498, %c32_105], %495 {strides = array<i32>} : memref<64x64xf32, #tpu.memory_space<vmem>>, vector<8x32xf32>,
    %500 = tpu.concatenate %470, %495 in 1 : vector<8x32xf32>, vector<8x32xf32> -> vector<8x64xf32>
    %c7_i32_106 = arith.constant 7 : i32
    %c8_i32_107 = arith.constant 8 : i32
    %501 = arith.muli %c7_i32_106, %c8_i32_107 : i32
    %502 = tpu.assume_multiple %501, 8 : i32
    %c7_i32_108 = arith.constant 7 : i32
    %503 = arith.subi %c7_i32_108, %c7_i32_106 : i32
    %c8_i32_109 = arith.constant 8 : i32
    %504 = arith.muli %503, %c8_i32_109 : i32
    %505 = tpu.assume_multiple %504, 8 : i32
    %506 = arith.truncf %500 : vector<8x64xf32> to vector<8x64xbf16>
    %cst_110 = arith.constant dense<0.000000e+00> : vector<8x256xf32>
    %507 = tpu.matmul %506, %7, %cst_110 {dimension_numbers = #tpu.dot_dimension_numbers<[1], [0], [0], [1], [0, 0, 1, 1], [], []>} : vector<8x64xbf16>, vector<64x256xbf16>, vector<8x256xf32> -> vector<8x256xf32>
    %508 = arith.index_cast %502 : i32 to index
    %c0_111 = arith.constant 0 : index
    %509 = vector.load %arg14[%508, %c0_111] : memref<64x256xf32, #tpu.memory_space<vmem>>, vector<8x128xf32>
    %510 = vector.extract_strided_slice %507 {offsets = [0, 0], sizes = [8, 128], strides = [1, 1]} : vector<8x256xf32> to vector<8x128xf32>
    %511 = arith.addf %509, %510 : vector<8x128xf32>
    %512 = arith.index_cast %505 : i32 to index
    %c128_112 = arith.constant 128 : index
    %513 = vector.load %arg14[%512, %c128_112] : memref<64x256xf32, #tpu.memory_space<vmem>>, vector<8x128xf32>
    %514 = vector.extract_strided_slice %507 {offsets = [0, 128], sizes = [8, 128], strides = [1, 1]} : vector<8x256xf32> to vector<8x128xf32>
    %515 = arith.addf %513, %514 : vector<8x128xf32>
    %516 = vector.extract_strided_slice %511 {offsets = [0, 0], sizes = [8, 32], strides = [1, 1]} : vector<8x128xf32> to vector<8x32xf32>
    %517 = arith.negf %516 : vector<8x32xf32>
    %518 = math.exp %517 : vector<8x32xf32>
    %cst_113 = arith.constant 1.000000e+00 : f32
    %519 = vector.broadcast %cst_113 : f32 to vector<8x32xf32>
    %520 = arith.addf %519, %518 : vector<8x32xf32>
    %521 = arith.divf %519, %520 : vector<8x32xf32>
    %522 = vector.extract_strided_slice %511 {offsets = [0, 32], sizes = [8, 32], strides = [1, 1]} : vector<8x128xf32> to vector<8x32xf32>
    %523 = arith.negf %522 : vector<8x32xf32>
    %524 = math.exp %523 : vector<8x32xf32>
    %cst_114 = arith.constant 1.000000e+00 : f32
    %525 = vector.broadcast %cst_114 : f32 to vector<8x32xf32>
    %526 = arith.addf %525, %524 : vector<8x32xf32>
    %527 = arith.divf %525, %526 : vector<8x32xf32>
    %528 = vector.extract_strided_slice %511 {offsets = [0, 64], sizes = [8, 32], strides = [1, 1]} : vector<8x128xf32> to vector<8x32xf32>
    %529 = math.tanh %528 : vector<8x32xf32>
    %530 = vector.extract_strided_slice %511 {offsets = [0, 96], sizes = [8, 32], strides = [1, 1]} : vector<8x128xf32> to vector<8x32xf32>
    %531 = arith.negf %530 : vector<8x32xf32>
    %532 = math.exp %531 : vector<8x32xf32>
    %cst_115 = arith.constant 1.000000e+00 : f32
    %533 = vector.broadcast %cst_115 : f32 to vector<8x32xf32>
    %534 = arith.addf %533, %532 : vector<8x32xf32>
    %535 = arith.divf %533, %534 : vector<8x32xf32>
    %536 = arith.mulf %527, %468 : vector<8x32xf32>
    %537 = arith.mulf %521, %529 : vector<8x32xf32>
    %538 = arith.addf %536, %537 : vector<8x32xf32>
    %539 = math.tanh %538 : vector<8x32xf32>
    %540 = arith.mulf %535, %539 : vector<8x32xf32>
    %541 = vector.extract_strided_slice %515 {offsets = [0, 0], sizes = [8, 32], strides = [1, 1]} : vector<8x128xf32> to vector<8x32xf32>
    %542 = arith.negf %541 : vector<8x32xf32>
    %543 = math.exp %542 : vector<8x32xf32>
    %cst_116 = arith.constant 1.000000e+00 : f32
    %544 = vector.broadcast %cst_116 : f32 to vector<8x32xf32>
    %545 = arith.addf %544, %543 : vector<8x32xf32>
    %546 = arith.divf %544, %545 : vector<8x32xf32>
    %547 = vector.extract_strided_slice %515 {offsets = [0, 32], sizes = [8, 32], strides = [1, 1]} : vector<8x128xf32> to vector<8x32xf32>
    %548 = arith.negf %547 : vector<8x32xf32>
    %549 = math.exp %548 : vector<8x32xf32>
    %cst_117 = arith.constant 1.000000e+00 : f32
    %550 = vector.broadcast %cst_117 : f32 to vector<8x32xf32>
    %551 = arith.addf %550, %549 : vector<8x32xf32>
    %552 = arith.divf %550, %551 : vector<8x32xf32>
    %553 = vector.extract_strided_slice %515 {offsets = [0, 64], sizes = [8, 32], strides = [1, 1]} : vector<8x128xf32> to vector<8x32xf32>
    %554 = math.tanh %553 : vector<8x32xf32>
    %555 = vector.extract_strided_slice %515 {offsets = [0, 96], sizes = [8, 32], strides = [1, 1]} : vector<8x128xf32> to vector<8x32xf32>
    %556 = arith.negf %555 : vector<8x32xf32>
    %557 = math.exp %556 : vector<8x32xf32>
    %cst_118 = arith.constant 1.000000e+00 : f32
    %558 = vector.broadcast %cst_118 : f32 to vector<8x32xf32>
    %559 = arith.addf %558, %557 : vector<8x32xf32>
    %560 = arith.divf %558, %559 : vector<8x32xf32>
    %561 = arith.mulf %552, %493 : vector<8x32xf32>
    %562 = arith.mulf %546, %554 : vector<8x32xf32>
    %563 = arith.addf %561, %562 : vector<8x32xf32>
    %564 = math.tanh %563 : vector<8x32xf32>
    %565 = arith.mulf %560, %564 : vector<8x32xf32>
    %566 = arith.index_cast %502 : i32 to index
    %c0_119 = arith.constant 0 : index
    %567 = vector.load %arg12[%566, %c0_119] : memref<64x64xf32, #tpu.memory_space<vmem>>, vector<8x32xf32>
    tpu.vector_store %arg12[%566, %c0_119], %540 {strides = array<i32>} : memref<64x64xf32, #tpu.memory_space<vmem>>, vector<8x32xf32>,
    %568 = arith.index_cast %505 : i32 to index
    %c32_120 = arith.constant 32 : index
    %569 = vector.load %arg12[%568, %c32_120] : memref<64x64xf32, #tpu.memory_space<vmem>>, vector<8x32xf32>
    tpu.vector_store %arg12[%568, %c32_120], %565 {strides = array<i32>} : memref<64x64xf32, #tpu.memory_space<vmem>>, vector<8x32xf32>,
    %570 = tpu.concatenate %540, %565 in 1 : vector<8x32xf32>, vector<8x32xf32> -> vector<8x64xf32>
    %c8_i32_121 = arith.constant 8 : i32
    %c0_122 = arith.constant 0 : index
    %c0_123 = arith.constant 0 : index
    %571 = vector.load %arg12[%c0_122, %c0_123] : memref<64x64xf32, #tpu.memory_space<vmem>>, vector<64x64xf32>
    %572 = arith.truncf %571 : vector<64x64xf32> to vector<64x64xbf16>
    %c0_124 = arith.constant 0 : index
    %c0_125 = arith.constant 0 : index
    %573 = vector.load %arg4[%c0_124, %c0_125] : memref<64x256xbf16, #tpu.memory_space<vmem>>, vector<64x256xbf16>
    %cst_126 = arith.constant dense<0.000000e+00> : vector<64x256xf32>
    %574 = tpu.matmul %572, %573, %cst_126 {dimension_numbers = #tpu.dot_dimension_numbers<[1], [0], [0], [1], [0, 0, 1, 1], [], []>} : vector<64x64xbf16>, vector<64x256xbf16>, vector<64x256xf32> -> vector<64x256xf32>
    %c0_127 = arith.constant 0 : index
    %c0_128 = arith.constant 0 : index
    %575 = vector.load %arg6[%c0_127, %c0_128] : memref<1x256xf32, #tpu.memory_space<vmem>>, vector<1x256xf32>
    %576 = vector.broadcast %575 : vector<1x256xf32> to vector<64x256xf32>
    %577 = arith.addf %574, %576 : vector<64x256xf32>
    %c0_129 = arith.constant 0 : index
    %c0_130 = arith.constant 0 : index
    %578 = vector.load %arg14[%c0_129, %c0_130] : memref<64x256xf32, #tpu.memory_space<vmem>>, vector<64x256xf32>
    tpu.vector_store %arg14[%c0_129, %c0_130], %577 {strides = array<i32>} : memref<64x256xf32, #tpu.memory_space<vmem>>, vector<64x256xf32>,
    %c0_131 = arith.constant 0 : index
    %c0_132 = arith.constant 0 : index
    %579 = vector.load %arg5[%c0_131, %c0_132] : memref<64x256xbf16, #tpu.memory_space<vmem>>, vector<64x256xbf16>
    %cst_133 = arith.constant 0.000000e+00 : f32
    %580 = vector.broadcast %cst_133 : f32 to vector<8x64xf32>
    %cst_134 = arith.constant 0.000000e+00 : f32
    %581 = vector.broadcast %cst_134 : f32 to vector<8x32xf32>
    %cst_135 = arith.constant 0.000000e+00 : f32
    %582 = vector.broadcast %cst_135 : f32 to vector<8x32xf32>
    %c0_i32_136 = arith.constant 0 : i32
    %c8_i32_137 = arith.constant 8 : i32
    %583 = arith.muli %c0_i32_136, %c8_i32_137 : i32
    %584 = tpu.assume_multiple %583, 8 : i32
    %c7_i32_138 = arith.constant 7 : i32
    %585 = arith.subi %c7_i32_138, %c0_i32_136 : i32
    %c8_i32_139 = arith.constant 8 : i32
    %586 = arith.muli %585, %c8_i32_139 : i32
    %587 = tpu.assume_multiple %586, 8 : i32
    %588 = arith.truncf %580 : vector<8x64xf32> to vector<8x64xbf16>
    %cst_140 = arith.constant dense<0.000000e+00> : vector<8x256xf32>
    %589 = tpu.matmul %588, %579, %cst_140 {dimension_numbers = #tpu.dot_dimension_numbers<[1], [0], [0], [1], [0, 0, 1, 1], [], []>} : vector<8x64xbf16>, vector<64x256xbf16>, vector<8x256xf32> -> vector<8x256xf32>
    %590 = arith.index_cast %584 : i32 to index
    %c0_141 = arith.constant 0 : index
    %591 = vector.load %arg14[%590, %c0_141] : memref<64x256xf32, #tpu.memory_space<vmem>>, vector<8x128xf32>
    %592 = vector.extract_strided_slice %589 {offsets = [0, 0], sizes = [8, 128], strides = [1, 1]} : vector<8x256xf32> to vector<8x128xf32>
    %593 = arith.addf %591, %592 : vector<8x128xf32>
    %594 = arith.index_cast %587 : i32 to index
    %c128_142 = arith.constant 128 : index
    %595 = vector.load %arg14[%594, %c128_142] : memref<64x256xf32, #tpu.memory_space<vmem>>, vector<8x128xf32>
    %596 = vector.extract_strided_slice %589 {offsets = [0, 128], sizes = [8, 128], strides = [1, 1]} : vector<8x256xf32> to vector<8x128xf32>
    %597 = arith.addf %595, %596 : vector<8x128xf32>
    %598 = vector.extract_strided_slice %593 {offsets = [0, 0], sizes = [8, 32], strides = [1, 1]} : vector<8x128xf32> to vector<8x32xf32>
    %599 = arith.negf %598 : vector<8x32xf32>
    %600 = math.exp %599 : vector<8x32xf32>
    %cst_143 = arith.constant 1.000000e+00 : f32
    %601 = vector.broadcast %cst_143 : f32 to vector<8x32xf32>
    %602 = arith.addf %601, %600 : vector<8x32xf32>
    %603 = arith.divf %601, %602 : vector<8x32xf32>
    %604 = vector.extract_strided_slice %593 {offsets = [0, 32], sizes = [8, 32], strides = [1, 1]} : vector<8x128xf32> to vector<8x32xf32>
    %605 = arith.negf %604 : vector<8x32xf32>
    %606 = math.exp %605 : vector<8x32xf32>
    %cst_144 = arith.constant 1.000000e+00 : f32
    %607 = vector.broadcast %cst_144 : f32 to vector<8x32xf32>
    %608 = arith.addf %607, %606 : vector<8x32xf32>
    %609 = arith.divf %607, %608 : vector<8x32xf32>
    %610 = vector.extract_strided_slice %593 {offsets = [0, 64], sizes = [8, 32], strides = [1, 1]} : vector<8x128xf32> to vector<8x32xf32>
    %611 = math.tanh %610 : vector<8x32xf32>
    %612 = vector.extract_strided_slice %593 {offsets = [0, 96], sizes = [8, 32], strides = [1, 1]} : vector<8x128xf32> to vector<8x32xf32>
    %613 = arith.negf %612 : vector<8x32xf32>
    %614 = math.exp %613 : vector<8x32xf32>
    %cst_145 = arith.constant 1.000000e+00 : f32
    %615 = vector.broadcast %cst_145 : f32 to vector<8x32xf32>
    %616 = arith.addf %615, %614 : vector<8x32xf32>
    %617 = arith.divf %615, %616 : vector<8x32xf32>
    %618 = arith.mulf %609, %581 : vector<8x32xf32>
    %619 = arith.mulf %603, %611 : vector<8x32xf32>
    %620 = arith.addf %618, %619 : vector<8x32xf32>
    %621 = math.tanh %620 : vector<8x32xf32>
    %622 = arith.mulf %617, %621 : vector<8x32xf32>
    %623 = vector.extract_strided_slice %597 {offsets = [0, 0], sizes = [8, 32], strides = [1, 1]} : vector<8x128xf32> to vector<8x32xf32>
    %624 = arith.negf %623 : vector<8x32xf32>
    %625 = math.exp %624 : vector<8x32xf32>
    %cst_146 = arith.constant 1.000000e+00 : f32
    %626 = vector.broadcast %cst_146 : f32 to vector<8x32xf32>
    %627 = arith.addf %626, %625 : vector<8x32xf32>
    %628 = arith.divf %626, %627 : vector<8x32xf32>
    %629 = vector.extract_strided_slice %597 {offsets = [0, 32], sizes = [8, 32], strides = [1, 1]} : vector<8x128xf32> to vector<8x32xf32>
    %630 = arith.negf %629 : vector<8x32xf32>
    %631 = math.exp %630 : vector<8x32xf32>
    %cst_147 = arith.constant 1.000000e+00 : f32
    %632 = vector.broadcast %cst_147 : f32 to vector<8x32xf32>
    %633 = arith.addf %632, %631 : vector<8x32xf32>
    %634 = arith.divf %632, %633 : vector<8x32xf32>
    %635 = vector.extract_strided_slice %597 {offsets = [0, 64], sizes = [8, 32], strides = [1, 1]} : vector<8x128xf32> to vector<8x32xf32>
    %636 = math.tanh %635 : vector<8x32xf32>
    %637 = vector.extract_strided_slice %597 {offsets = [0, 96], sizes = [8, 32], strides = [1, 1]} : vector<8x128xf32> to vector<8x32xf32>
    %638 = arith.negf %637 : vector<8x32xf32>
    %639 = math.exp %638 : vector<8x32xf32>
    %cst_148 = arith.constant 1.000000e+00 : f32
    %640 = vector.broadcast %cst_148 : f32 to vector<8x32xf32>
    %641 = arith.addf %640, %639 : vector<8x32xf32>
    %642 = arith.divf %640, %641 : vector<8x32xf32>
    %643 = arith.mulf %634, %582 : vector<8x32xf32>
    %644 = arith.mulf %628, %636 : vector<8x32xf32>
    %645 = arith.addf %643, %644 : vector<8x32xf32>
    %646 = math.tanh %645 : vector<8x32xf32>
    %647 = arith.mulf %642, %646 : vector<8x32xf32>
    %648 = arith.index_cast %584 : i32 to index
    %c0_149 = arith.constant 0 : index
    %649 = vector.load %arg13[%648, %c0_149] : memref<64x64xf32, #tpu.memory_space<vmem>>, vector<8x32xf32>
    tpu.vector_store %arg13[%648, %c0_149], %622 {strides = array<i32>} : memref<64x64xf32, #tpu.memory_space<vmem>>, vector<8x32xf32>,
    %650 = arith.index_cast %587 : i32 to index
    %c32_150 = arith.constant 32 : index
    %651 = vector.load %arg13[%650, %c32_150] : memref<64x64xf32, #tpu.memory_space<vmem>>, vector<8x32xf32>
    tpu.vector_store %arg13[%650, %c32_150], %647 {strides = array<i32>} : memref<64x64xf32, #tpu.memory_space<vmem>>, vector<8x32xf32>,
    %652 = tpu.concatenate %622, %647 in 1 : vector<8x32xf32>, vector<8x32xf32> -> vector<8x64xf32>
    %c1_i32_151 = arith.constant 1 : i32
    %c8_i32_152 = arith.constant 8 : i32
    %653 = arith.muli %c1_i32_151, %c8_i32_152 : i32
    %654 = tpu.assume_multiple %653, 8 : i32
    %c7_i32_153 = arith.constant 7 : i32
    %655 = arith.subi %c7_i32_153, %c1_i32_151 : i32
    %c8_i32_154 = arith.constant 8 : i32
    %656 = arith.muli %655, %c8_i32_154 : i32
    %657 = tpu.assume_multiple %656, 8 : i32
    %658 = arith.truncf %652 : vector<8x64xf32> to vector<8x64xbf16>
    %cst_155 = arith.constant dense<0.000000e+00> : vector<8x256xf32>
    %659 = tpu.matmul %658, %579, %cst_155 {dimension_numbers = #tpu.dot_dimension_numbers<[1], [0], [0], [1], [0, 0, 1, 1], [], []>} : vector<8x64xbf16>, vector<64x256xbf16>, vector<8x256xf32> -> vector<8x256xf32>
    %660 = arith.index_cast %654 : i32 to index
    %c0_156 = arith.constant 0 : index
    %661 = vector.load %arg14[%660, %c0_156] : memref<64x256xf32, #tpu.memory_space<vmem>>, vector<8x128xf32>
    %662 = vector.extract_strided_slice %659 {offsets = [0, 0], sizes = [8, 128], strides = [1, 1]} : vector<8x256xf32> to vector<8x128xf32>
    %663 = arith.addf %661, %662 : vector<8x128xf32>
    %664 = arith.index_cast %657 : i32 to index
    %c128_157 = arith.constant 128 : index
    %665 = vector.load %arg14[%664, %c128_157] : memref<64x256xf32, #tpu.memory_space<vmem>>, vector<8x128xf32>
    %666 = vector.extract_strided_slice %659 {offsets = [0, 128], sizes = [8, 128], strides = [1, 1]} : vector<8x256xf32> to vector<8x128xf32>
    %667 = arith.addf %665, %666 : vector<8x128xf32>
    %668 = vector.extract_strided_slice %663 {offsets = [0, 0], sizes = [8, 32], strides = [1, 1]} : vector<8x128xf32> to vector<8x32xf32>
    %669 = arith.negf %668 : vector<8x32xf32>
    %670 = math.exp %669 : vector<8x32xf32>
    %cst_158 = arith.constant 1.000000e+00 : f32
    %671 = vector.broadcast %cst_158 : f32 to vector<8x32xf32>
    %672 = arith.addf %671, %670 : vector<8x32xf32>
    %673 = arith.divf %671, %672 : vector<8x32xf32>
    %674 = vector.extract_strided_slice %663 {offsets = [0, 32], sizes = [8, 32], strides = [1, 1]} : vector<8x128xf32> to vector<8x32xf32>
    %675 = arith.negf %674 : vector<8x32xf32>
    %676 = math.exp %675 : vector<8x32xf32>
    %cst_159 = arith.constant 1.000000e+00 : f32
    %677 = vector.broadcast %cst_159 : f32 to vector<8x32xf32>
    %678 = arith.addf %677, %676 : vector<8x32xf32>
    %679 = arith.divf %677, %678 : vector<8x32xf32>
    %680 = vector.extract_strided_slice %663 {offsets = [0, 64], sizes = [8, 32], strides = [1, 1]} : vector<8x128xf32> to vector<8x32xf32>
    %681 = math.tanh %680 : vector<8x32xf32>
    %682 = vector.extract_strided_slice %663 {offsets = [0, 96], sizes = [8, 32], strides = [1, 1]} : vector<8x128xf32> to vector<8x32xf32>
    %683 = arith.negf %682 : vector<8x32xf32>
    %684 = math.exp %683 : vector<8x32xf32>
    %cst_160 = arith.constant 1.000000e+00 : f32
    %685 = vector.broadcast %cst_160 : f32 to vector<8x32xf32>
    %686 = arith.addf %685, %684 : vector<8x32xf32>
    %687 = arith.divf %685, %686 : vector<8x32xf32>
    %688 = arith.mulf %679, %620 : vector<8x32xf32>
    %689 = arith.mulf %673, %681 : vector<8x32xf32>
    %690 = arith.addf %688, %689 : vector<8x32xf32>
    %691 = math.tanh %690 : vector<8x32xf32>
    %692 = arith.mulf %687, %691 : vector<8x32xf32>
    %693 = vector.extract_strided_slice %667 {offsets = [0, 0], sizes = [8, 32], strides = [1, 1]} : vector<8x128xf32> to vector<8x32xf32>
    %694 = arith.negf %693 : vector<8x32xf32>
    %695 = math.exp %694 : vector<8x32xf32>
    %cst_161 = arith.constant 1.000000e+00 : f32
    %696 = vector.broadcast %cst_161 : f32 to vector<8x32xf32>
    %697 = arith.addf %696, %695 : vector<8x32xf32>
    %698 = arith.divf %696, %697 : vector<8x32xf32>
    %699 = vector.extract_strided_slice %667 {offsets = [0, 32], sizes = [8, 32], strides = [1, 1]} : vector<8x128xf32> to vector<8x32xf32>
    %700 = arith.negf %699 : vector<8x32xf32>
    %701 = math.exp %700 : vector<8x32xf32>
    %cst_162 = arith.constant 1.000000e+00 : f32
    %702 = vector.broadcast %cst_162 : f32 to vector<8x32xf32>
    %703 = arith.addf %702, %701 : vector<8x32xf32>
    %704 = arith.divf %702, %703 : vector<8x32xf32>
    %705 = vector.extract_strided_slice %667 {offsets = [0, 64], sizes = [8, 32], strides = [1, 1]} : vector<8x128xf32> to vector<8x32xf32>
    %706 = math.tanh %705 : vector<8x32xf32>
    %707 = vector.extract_strided_slice %667 {offsets = [0, 96], sizes = [8, 32], strides = [1, 1]} : vector<8x128xf32> to vector<8x32xf32>
    %708 = arith.negf %707 : vector<8x32xf32>
    %709 = math.exp %708 : vector<8x32xf32>
    %cst_163 = arith.constant 1.000000e+00 : f32
    %710 = vector.broadcast %cst_163 : f32 to vector<8x32xf32>
    %711 = arith.addf %710, %709 : vector<8x32xf32>
    %712 = arith.divf %710, %711 : vector<8x32xf32>
    %713 = arith.mulf %704, %645 : vector<8x32xf32>
    %714 = arith.mulf %698, %706 : vector<8x32xf32>
    %715 = arith.addf %713, %714 : vector<8x32xf32>
    %716 = math.tanh %715 : vector<8x32xf32>
    %717 = arith.mulf %712, %716 : vector<8x32xf32>
    %718 = arith.index_cast %654 : i32 to index
    %c0_164 = arith.constant 0 : index
    %719 = vector.load %arg13[%718, %c0_164] : memref<64x64xf32, #tpu.memory_space<vmem>>, vector<8x32xf32>
    tpu.vector_store %arg13[%718, %c0_164], %692 {strides = array<i32>} : memref<64x64xf32, #tpu.memory_space<vmem>>, vector<8x32xf32>,
    %720 = arith.index_cast %657 : i32 to index
    %c32_165 = arith.constant 32 : index
    %721 = vector.load %arg13[%720, %c32_165] : memref<64x64xf32, #tpu.memory_space<vmem>>, vector<8x32xf32>
    tpu.vector_store %arg13[%720, %c32_165], %717 {strides = array<i32>} : memref<64x64xf32, #tpu.memory_space<vmem>>, vector<8x32xf32>,
    %722 = tpu.concatenate %692, %717 in 1 : vector<8x32xf32>, vector<8x32xf32> -> vector<8x64xf32>
    %c2_i32_166 = arith.constant 2 : i32
    %c8_i32_167 = arith.constant 8 : i32
    %723 = arith.muli %c2_i32_166, %c8_i32_167 : i32
    %724 = tpu.assume_multiple %723, 8 : i32
    %c7_i32_168 = arith.constant 7 : i32
    %725 = arith.subi %c7_i32_168, %c2_i32_166 : i32
    %c8_i32_169 = arith.constant 8 : i32
    %726 = arith.muli %725, %c8_i32_169 : i32
    %727 = tpu.assume_multiple %726, 8 : i32
    %728 = arith.truncf %722 : vector<8x64xf32> to vector<8x64xbf16>
    %cst_170 = arith.constant dense<0.000000e+00> : vector<8x256xf32>
    %729 = tpu.matmul %728, %579, %cst_170 {dimension_numbers = #tpu.dot_dimension_numbers<[1], [0], [0], [1], [0, 0, 1, 1], [], []>} : vector<8x64xbf16>, vector<64x256xbf16>, vector<8x256xf32> -> vector<8x256xf32>
    %730 = arith.index_cast %724 : i32 to index
    %c0_171 = arith.constant 0 : index
    %731 = vector.load %arg14[%730, %c0_171] : memref<64x256xf32, #tpu.memory_space<vmem>>, vector<8x128xf32>
    %732 = vector.extract_strided_slice %729 {offsets = [0, 0], sizes = [8, 128], strides = [1, 1]} : vector<8x256xf32> to vector<8x128xf32>
    %733 = arith.addf %731, %732 : vector<8x128xf32>
    %734 = arith.index_cast %727 : i32 to index
    %c128_172 = arith.constant 128 : index
    %735 = vector.load %arg14[%734, %c128_172] : memref<64x256xf32, #tpu.memory_space<vmem>>, vector<8x128xf32>
    %736 = vector.extract_strided_slice %729 {offsets = [0, 128], sizes = [8, 128], strides = [1, 1]} : vector<8x256xf32> to vector<8x128xf32>
    %737 = arith.addf %735, %736 : vector<8x128xf32>
    %738 = vector.extract_strided_slice %733 {offsets = [0, 0], sizes = [8, 32], strides = [1, 1]} : vector<8x128xf32> to vector<8x32xf32>
    %739 = arith.negf %738 : vector<8x32xf32>
    %740 = math.exp %739 : vector<8x32xf32>
    %cst_173 = arith.constant 1.000000e+00 : f32
    %741 = vector.broadcast %cst_173 : f32 to vector<8x32xf32>
    %742 = arith.addf %741, %740 : vector<8x32xf32>
    %743 = arith.divf %741, %742 : vector<8x32xf32>
    %744 = vector.extract_strided_slice %733 {offsets = [0, 32], sizes = [8, 32], strides = [1, 1]} : vector<8x128xf32> to vector<8x32xf32>
    %745 = arith.negf %744 : vector<8x32xf32>
    %746 = math.exp %745 : vector<8x32xf32>
    %cst_174 = arith.constant 1.000000e+00 : f32
    %747 = vector.broadcast %cst_174 : f32 to vector<8x32xf32>
    %748 = arith.addf %747, %746 : vector<8x32xf32>
    %749 = arith.divf %747, %748 : vector<8x32xf32>
    %750 = vector.extract_strided_slice %733 {offsets = [0, 64], sizes = [8, 32], strides = [1, 1]} : vector<8x128xf32> to vector<8x32xf32>
    %751 = math.tanh %750 : vector<8x32xf32>
    %752 = vector.extract_strided_slice %733 {offsets = [0, 96], sizes = [8, 32], strides = [1, 1]} : vector<8x128xf32> to vector<8x32xf32>
    %753 = arith.negf %752 : vector<8x32xf32>
    %754 = math.exp %753 : vector<8x32xf32>
    %cst_175 = arith.constant 1.000000e+00 : f32
    %755 = vector.broadcast %cst_175 : f32 to vector<8x32xf32>
    %756 = arith.addf %755, %754 : vector<8x32xf32>
    %757 = arith.divf %755, %756 : vector<8x32xf32>
    %758 = arith.mulf %749, %690 : vector<8x32xf32>
    %759 = arith.mulf %743, %751 : vector<8x32xf32>
    %760 = arith.addf %758, %759 : vector<8x32xf32>
    %761 = math.tanh %760 : vector<8x32xf32>
    %762 = arith.mulf %757, %761 : vector<8x32xf32>
    %763 = vector.extract_strided_slice %737 {offsets = [0, 0], sizes = [8, 32], strides = [1, 1]} : vector<8x128xf32> to vector<8x32xf32>
    %764 = arith.negf %763 : vector<8x32xf32>
    %765 = math.exp %764 : vector<8x32xf32>
    %cst_176 = arith.constant 1.000000e+00 : f32
    %766 = vector.broadcast %cst_176 : f32 to vector<8x32xf32>
    %767 = arith.addf %766, %765 : vector<8x32xf32>
    %768 = arith.divf %766, %767 : vector<8x32xf32>
    %769 = vector.extract_strided_slice %737 {offsets = [0, 32], sizes = [8, 32], strides = [1, 1]} : vector<8x128xf32> to vector<8x32xf32>
    %770 = arith.negf %769 : vector<8x32xf32>
    %771 = math.exp %770 : vector<8x32xf32>
    %cst_177 = arith.constant 1.000000e+00 : f32
    %772 = vector.broadcast %cst_177 : f32 to vector<8x32xf32>
    %773 = arith.addf %772, %771 : vector<8x32xf32>
    %774 = arith.divf %772, %773 : vector<8x32xf32>
    %775 = vector.extract_strided_slice %737 {offsets = [0, 64], sizes = [8, 32], strides = [1, 1]} : vector<8x128xf32> to vector<8x32xf32>
    %776 = math.tanh %775 : vector<8x32xf32>
    %777 = vector.extract_strided_slice %737 {offsets = [0, 96], sizes = [8, 32], strides = [1, 1]} : vector<8x128xf32> to vector<8x32xf32>
    %778 = arith.negf %777 : vector<8x32xf32>
    %779 = math.exp %778 : vector<8x32xf32>
    %cst_178 = arith.constant 1.000000e+00 : f32
    %780 = vector.broadcast %cst_178 : f32 to vector<8x32xf32>
    %781 = arith.addf %780, %779 : vector<8x32xf32>
    %782 = arith.divf %780, %781 : vector<8x32xf32>
    %783 = arith.mulf %774, %715 : vector<8x32xf32>
    %784 = arith.mulf %768, %776 : vector<8x32xf32>
    %785 = arith.addf %783, %784 : vector<8x32xf32>
    %786 = math.tanh %785 : vector<8x32xf32>
    %787 = arith.mulf %782, %786 : vector<8x32xf32>
    %788 = arith.index_cast %724 : i32 to index
    %c0_179 = arith.constant 0 : index
    %789 = vector.load %arg13[%788, %c0_179] : memref<64x64xf32, #tpu.memory_space<vmem>>, vector<8x32xf32>
    tpu.vector_store %arg13[%788, %c0_179], %762 {strides = array<i32>} : memref<64x64xf32, #tpu.memory_space<vmem>>, vector<8x32xf32>,
    %790 = arith.index_cast %727 : i32 to index
    %c32_180 = arith.constant 32 : index
    %791 = vector.load %arg13[%790, %c32_180] : memref<64x64xf32, #tpu.memory_space<vmem>>, vector<8x32xf32>
    tpu.vector_store %arg13[%790, %c32_180], %787 {strides = array<i32>} : memref<64x64xf32, #tpu.memory_space<vmem>>, vector<8x32xf32>,
    %792 = tpu.concatenate %762, %787 in 1 : vector<8x32xf32>, vector<8x32xf32> -> vector<8x64xf32>
    %c3_i32_181 = arith.constant 3 : i32
    %c8_i32_182 = arith.constant 8 : i32
    %793 = arith.muli %c3_i32_181, %c8_i32_182 : i32
    %794 = tpu.assume_multiple %793, 8 : i32
    %c7_i32_183 = arith.constant 7 : i32
    %795 = arith.subi %c7_i32_183, %c3_i32_181 : i32
    %c8_i32_184 = arith.constant 8 : i32
    %796 = arith.muli %795, %c8_i32_184 : i32
    %797 = tpu.assume_multiple %796, 8 : i32
    %798 = arith.truncf %792 : vector<8x64xf32> to vector<8x64xbf16>
    %cst_185 = arith.constant dense<0.000000e+00> : vector<8x256xf32>
    %799 = tpu.matmul %798, %579, %cst_185 {dimension_numbers = #tpu.dot_dimension_numbers<[1], [0], [0], [1], [0, 0, 1, 1], [], []>} : vector<8x64xbf16>, vector<64x256xbf16>, vector<8x256xf32> -> vector<8x256xf32>
    %800 = arith.index_cast %794 : i32 to index
    %c0_186 = arith.constant 0 : index
    %801 = vector.load %arg14[%800, %c0_186] : memref<64x256xf32, #tpu.memory_space<vmem>>, vector<8x128xf32>
    %802 = vector.extract_strided_slice %799 {offsets = [0, 0], sizes = [8, 128], strides = [1, 1]} : vector<8x256xf32> to vector<8x128xf32>
    %803 = arith.addf %801, %802 : vector<8x128xf32>
    %804 = arith.index_cast %797 : i32 to index
    %c128_187 = arith.constant 128 : index
    %805 = vector.load %arg14[%804, %c128_187] : memref<64x256xf32, #tpu.memory_space<vmem>>, vector<8x128xf32>
    %806 = vector.extract_strided_slice %799 {offsets = [0, 128], sizes = [8, 128], strides = [1, 1]} : vector<8x256xf32> to vector<8x128xf32>
    %807 = arith.addf %805, %806 : vector<8x128xf32>
    %808 = vector.extract_strided_slice %803 {offsets = [0, 0], sizes = [8, 32], strides = [1, 1]} : vector<8x128xf32> to vector<8x32xf32>
    %809 = arith.negf %808 : vector<8x32xf32>
    %810 = math.exp %809 : vector<8x32xf32>
    %cst_188 = arith.constant 1.000000e+00 : f32
    %811 = vector.broadcast %cst_188 : f32 to vector<8x32xf32>
    %812 = arith.addf %811, %810 : vector<8x32xf32>
    %813 = arith.divf %811, %812 : vector<8x32xf32>
    %814 = vector.extract_strided_slice %803 {offsets = [0, 32], sizes = [8, 32], strides = [1, 1]} : vector<8x128xf32> to vector<8x32xf32>
    %815 = arith.negf %814 : vector<8x32xf32>
    %816 = math.exp %815 : vector<8x32xf32>
    %cst_189 = arith.constant 1.000000e+00 : f32
    %817 = vector.broadcast %cst_189 : f32 to vector<8x32xf32>
    %818 = arith.addf %817, %816 : vector<8x32xf32>
    %819 = arith.divf %817, %818 : vector<8x32xf32>
    %820 = vector.extract_strided_slice %803 {offsets = [0, 64], sizes = [8, 32], strides = [1, 1]} : vector<8x128xf32> to vector<8x32xf32>
    %821 = math.tanh %820 : vector<8x32xf32>
    %822 = vector.extract_strided_slice %803 {offsets = [0, 96], sizes = [8, 32], strides = [1, 1]} : vector<8x128xf32> to vector<8x32xf32>
    %823 = arith.negf %822 : vector<8x32xf32>
    %824 = math.exp %823 : vector<8x32xf32>
    %cst_190 = arith.constant 1.000000e+00 : f32
    %825 = vector.broadcast %cst_190 : f32 to vector<8x32xf32>
    %826 = arith.addf %825, %824 : vector<8x32xf32>
    %827 = arith.divf %825, %826 : vector<8x32xf32>
    %828 = arith.mulf %819, %760 : vector<8x32xf32>
    %829 = arith.mulf %813, %821 : vector<8x32xf32>
    %830 = arith.addf %828, %829 : vector<8x32xf32>
    %831 = math.tanh %830 : vector<8x32xf32>
    %832 = arith.mulf %827, %831 : vector<8x32xf32>
    %833 = vector.extract_strided_slice %807 {offsets = [0, 0], sizes = [8, 32], strides = [1, 1]} : vector<8x128xf32> to vector<8x32xf32>
    %834 = arith.negf %833 : vector<8x32xf32>
    %835 = math.exp %834 : vector<8x32xf32>
    %cst_191 = arith.constant 1.000000e+00 : f32
    %836 = vector.broadcast %cst_191 : f32 to vector<8x32xf32>
    %837 = arith.addf %836, %835 : vector<8x32xf32>
    %838 = arith.divf %836, %837 : vector<8x32xf32>
    %839 = vector.extract_strided_slice %807 {offsets = [0, 32], sizes = [8, 32], strides = [1, 1]} : vector<8x128xf32> to vector<8x32xf32>
    %840 = arith.negf %839 : vector<8x32xf32>
    %841 = math.exp %840 : vector<8x32xf32>
    %cst_192 = arith.constant 1.000000e+00 : f32
    %842 = vector.broadcast %cst_192 : f32 to vector<8x32xf32>
    %843 = arith.addf %842, %841 : vector<8x32xf32>
    %844 = arith.divf %842, %843 : vector<8x32xf32>
    %845 = vector.extract_strided_slice %807 {offsets = [0, 64], sizes = [8, 32], strides = [1, 1]} : vector<8x128xf32> to vector<8x32xf32>
    %846 = math.tanh %845 : vector<8x32xf32>
    %847 = vector.extract_strided_slice %807 {offsets = [0, 96], sizes = [8, 32], strides = [1, 1]} : vector<8x128xf32> to vector<8x32xf32>
    %848 = arith.negf %847 : vector<8x32xf32>
    %849 = math.exp %848 : vector<8x32xf32>
    %cst_193 = arith.constant 1.000000e+00 : f32
    %850 = vector.broadcast %cst_193 : f32 to vector<8x32xf32>
    %851 = arith.addf %850, %849 : vector<8x32xf32>
    %852 = arith.divf %850, %851 : vector<8x32xf32>
    %853 = arith.mulf %844, %785 : vector<8x32xf32>
    %854 = arith.mulf %838, %846 : vector<8x32xf32>
    %855 = arith.addf %853, %854 : vector<8x32xf32>
    %856 = math.tanh %855 : vector<8x32xf32>
    %857 = arith.mulf %852, %856 : vector<8x32xf32>
    %858 = arith.index_cast %794 : i32 to index
    %c0_194 = arith.constant 0 : index
    %859 = vector.load %arg13[%858, %c0_194] : memref<64x64xf32, #tpu.memory_space<vmem>>, vector<8x32xf32>
    tpu.vector_store %arg13[%858, %c0_194], %832 {strides = array<i32>} : memref<64x64xf32, #tpu.memory_space<vmem>>, vector<8x32xf32>,
    %860 = arith.index_cast %797 : i32 to index
    %c32_195 = arith.constant 32 : index
    %861 = vector.load %arg13[%860, %c32_195] : memref<64x64xf32, #tpu.memory_space<vmem>>, vector<8x32xf32>
    tpu.vector_store %arg13[%860, %c32_195], %857 {strides = array<i32>} : memref<64x64xf32, #tpu.memory_space<vmem>>, vector<8x32xf32>,
    %862 = tpu.concatenate %832, %857 in 1 : vector<8x32xf32>, vector<8x32xf32> -> vector<8x64xf32>
    %c4_i32_196 = arith.constant 4 : i32
    %c8_i32_197 = arith.constant 8 : i32
    %863 = arith.muli %c4_i32_196, %c8_i32_197 : i32
    %864 = tpu.assume_multiple %863, 8 : i32
    %c7_i32_198 = arith.constant 7 : i32
    %865 = arith.subi %c7_i32_198, %c4_i32_196 : i32
    %c8_i32_199 = arith.constant 8 : i32
    %866 = arith.muli %865, %c8_i32_199 : i32
    %867 = tpu.assume_multiple %866, 8 : i32
    %868 = arith.truncf %862 : vector<8x64xf32> to vector<8x64xbf16>
    %cst_200 = arith.constant dense<0.000000e+00> : vector<8x256xf32>
    %869 = tpu.matmul %868, %579, %cst_200 {dimension_numbers = #tpu.dot_dimension_numbers<[1], [0], [0], [1], [0, 0, 1, 1], [], []>} : vector<8x64xbf16>, vector<64x256xbf16>, vector<8x256xf32> -> vector<8x256xf32>
    %870 = arith.index_cast %864 : i32 to index
    %c0_201 = arith.constant 0 : index
    %871 = vector.load %arg14[%870, %c0_201] : memref<64x256xf32, #tpu.memory_space<vmem>>, vector<8x128xf32>
    %872 = vector.extract_strided_slice %869 {offsets = [0, 0], sizes = [8, 128], strides = [1, 1]} : vector<8x256xf32> to vector<8x128xf32>
    %873 = arith.addf %871, %872 : vector<8x128xf32>
    %874 = arith.index_cast %867 : i32 to index
    %c128_202 = arith.constant 128 : index
    %875 = vector.load %arg14[%874, %c128_202] : memref<64x256xf32, #tpu.memory_space<vmem>>, vector<8x128xf32>
    %876 = vector.extract_strided_slice %869 {offsets = [0, 128], sizes = [8, 128], strides = [1, 1]} : vector<8x256xf32> to vector<8x128xf32>
    %877 = arith.addf %875, %876 : vector<8x128xf32>
    %878 = vector.extract_strided_slice %873 {offsets = [0, 0], sizes = [8, 32], strides = [1, 1]} : vector<8x128xf32> to vector<8x32xf32>
    %879 = arith.negf %878 : vector<8x32xf32>
    %880 = math.exp %879 : vector<8x32xf32>
    %cst_203 = arith.constant 1.000000e+00 : f32
    %881 = vector.broadcast %cst_203 : f32 to vector<8x32xf32>
    %882 = arith.addf %881, %880 : vector<8x32xf32>
    %883 = arith.divf %881, %882 : vector<8x32xf32>
    %884 = vector.extract_strided_slice %873 {offsets = [0, 32], sizes = [8, 32], strides = [1, 1]} : vector<8x128xf32> to vector<8x32xf32>
    %885 = arith.negf %884 : vector<8x32xf32>
    %886 = math.exp %885 : vector<8x32xf32>
    %cst_204 = arith.constant 1.000000e+00 : f32
    %887 = vector.broadcast %cst_204 : f32 to vector<8x32xf32>
    %888 = arith.addf %887, %886 : vector<8x32xf32>
    %889 = arith.divf %887, %888 : vector<8x32xf32>
    %890 = vector.extract_strided_slice %873 {offsets = [0, 64], sizes = [8, 32], strides = [1, 1]} : vector<8x128xf32> to vector<8x32xf32>
    %891 = math.tanh %890 : vector<8x32xf32>
    %892 = vector.extract_strided_slice %873 {offsets = [0, 96], sizes = [8, 32], strides = [1, 1]} : vector<8x128xf32> to vector<8x32xf32>
    %893 = arith.negf %892 : vector<8x32xf32>
    %894 = math.exp %893 : vector<8x32xf32>
    %cst_205 = arith.constant 1.000000e+00 : f32
    %895 = vector.broadcast %cst_205 : f32 to vector<8x32xf32>
    %896 = arith.addf %895, %894 : vector<8x32xf32>
    %897 = arith.divf %895, %896 : vector<8x32xf32>
    %898 = arith.mulf %889, %830 : vector<8x32xf32>
    %899 = arith.mulf %883, %891 : vector<8x32xf32>
    %900 = arith.addf %898, %899 : vector<8x32xf32>
    %901 = math.tanh %900 : vector<8x32xf32>
    %902 = arith.mulf %897, %901 : vector<8x32xf32>
    %903 = vector.extract_strided_slice %877 {offsets = [0, 0], sizes = [8, 32], strides = [1, 1]} : vector<8x128xf32> to vector<8x32xf32>
    %904 = arith.negf %903 : vector<8x32xf32>
    %905 = math.exp %904 : vector<8x32xf32>
    %cst_206 = arith.constant 1.000000e+00 : f32
    %906 = vector.broadcast %cst_206 : f32 to vector<8x32xf32>
    %907 = arith.addf %906, %905 : vector<8x32xf32>
    %908 = arith.divf %906, %907 : vector<8x32xf32>
    %909 = vector.extract_strided_slice %877 {offsets = [0, 32], sizes = [8, 32], strides = [1, 1]} : vector<8x128xf32> to vector<8x32xf32>
    %910 = arith.negf %909 : vector<8x32xf32>
    %911 = math.exp %910 : vector<8x32xf32>
    %cst_207 = arith.constant 1.000000e+00 : f32
    %912 = vector.broadcast %cst_207 : f32 to vector<8x32xf32>
    %913 = arith.addf %912, %911 : vector<8x32xf32>
    %914 = arith.divf %912, %913 : vector<8x32xf32>
    %915 = vector.extract_strided_slice %877 {offsets = [0, 64], sizes = [8, 32], strides = [1, 1]} : vector<8x128xf32> to vector<8x32xf32>
    %916 = math.tanh %915 : vector<8x32xf32>
    %917 = vector.extract_strided_slice %877 {offsets = [0, 96], sizes = [8, 32], strides = [1, 1]} : vector<8x128xf32> to vector<8x32xf32>
    %918 = arith.negf %917 : vector<8x32xf32>
    %919 = math.exp %918 : vector<8x32xf32>
    %cst_208 = arith.constant 1.000000e+00 : f32
    %920 = vector.broadcast %cst_208 : f32 to vector<8x32xf32>
    %921 = arith.addf %920, %919 : vector<8x32xf32>
    %922 = arith.divf %920, %921 : vector<8x32xf32>
    %923 = arith.mulf %914, %855 : vector<8x32xf32>
    %924 = arith.mulf %908, %916 : vector<8x32xf32>
    %925 = arith.addf %923, %924 : vector<8x32xf32>
    %926 = math.tanh %925 : vector<8x32xf32>
    %927 = arith.mulf %922, %926 : vector<8x32xf32>
    %928 = arith.index_cast %864 : i32 to index
    %c0_209 = arith.constant 0 : index
    %929 = vector.load %arg13[%928, %c0_209] : memref<64x64xf32, #tpu.memory_space<vmem>>, vector<8x32xf32>
    tpu.vector_store %arg13[%928, %c0_209], %902 {strides = array<i32>} : memref<64x64xf32, #tpu.memory_space<vmem>>, vector<8x32xf32>,
    %930 = arith.index_cast %867 : i32 to index
    %c32_210 = arith.constant 32 : index
    %931 = vector.load %arg13[%930, %c32_210] : memref<64x64xf32, #tpu.memory_space<vmem>>, vector<8x32xf32>
    tpu.vector_store %arg13[%930, %c32_210], %927 {strides = array<i32>} : memref<64x64xf32, #tpu.memory_space<vmem>>, vector<8x32xf32>,
    %932 = tpu.concatenate %902, %927 in 1 : vector<8x32xf32>, vector<8x32xf32> -> vector<8x64xf32>
    %c5_i32_211 = arith.constant 5 : i32
    %c8_i32_212 = arith.constant 8 : i32
    %933 = arith.muli %c5_i32_211, %c8_i32_212 : i32
    %934 = tpu.assume_multiple %933, 8 : i32
    %c7_i32_213 = arith.constant 7 : i32
    %935 = arith.subi %c7_i32_213, %c5_i32_211 : i32
    %c8_i32_214 = arith.constant 8 : i32
    %936 = arith.muli %935, %c8_i32_214 : i32
    %937 = tpu.assume_multiple %936, 8 : i32
    %938 = arith.truncf %932 : vector<8x64xf32> to vector<8x64xbf16>
    %cst_215 = arith.constant dense<0.000000e+00> : vector<8x256xf32>
    %939 = tpu.matmul %938, %579, %cst_215 {dimension_numbers = #tpu.dot_dimension_numbers<[1], [0], [0], [1], [0, 0, 1, 1], [], []>} : vector<8x64xbf16>, vector<64x256xbf16>, vector<8x256xf32> -> vector<8x256xf32>
    %940 = arith.index_cast %934 : i32 to index
    %c0_216 = arith.constant 0 : index
    %941 = vector.load %arg14[%940, %c0_216] : memref<64x256xf32, #tpu.memory_space<vmem>>, vector<8x128xf32>
    %942 = vector.extract_strided_slice %939 {offsets = [0, 0], sizes = [8, 128], strides = [1, 1]} : vector<8x256xf32> to vector<8x128xf32>
    %943 = arith.addf %941, %942 : vector<8x128xf32>
    %944 = arith.index_cast %937 : i32 to index
    %c128_217 = arith.constant 128 : index
    %945 = vector.load %arg14[%944, %c128_217] : memref<64x256xf32, #tpu.memory_space<vmem>>, vector<8x128xf32>
    %946 = vector.extract_strided_slice %939 {offsets = [0, 128], sizes = [8, 128], strides = [1, 1]} : vector<8x256xf32> to vector<8x128xf32>
    %947 = arith.addf %945, %946 : vector<8x128xf32>
    %948 = vector.extract_strided_slice %943 {offsets = [0, 0], sizes = [8, 32], strides = [1, 1]} : vector<8x128xf32> to vector<8x32xf32>
    %949 = arith.negf %948 : vector<8x32xf32>
    %950 = math.exp %949 : vector<8x32xf32>
    %cst_218 = arith.constant 1.000000e+00 : f32
    %951 = vector.broadcast %cst_218 : f32 to vector<8x32xf32>
    %952 = arith.addf %951, %950 : vector<8x32xf32>
    %953 = arith.divf %951, %952 : vector<8x32xf32>
    %954 = vector.extract_strided_slice %943 {offsets = [0, 32], sizes = [8, 32], strides = [1, 1]} : vector<8x128xf32> to vector<8x32xf32>
    %955 = arith.negf %954 : vector<8x32xf32>
    %956 = math.exp %955 : vector<8x32xf32>
    %cst_219 = arith.constant 1.000000e+00 : f32
    %957 = vector.broadcast %cst_219 : f32 to vector<8x32xf32>
    %958 = arith.addf %957, %956 : vector<8x32xf32>
    %959 = arith.divf %957, %958 : vector<8x32xf32>
    %960 = vector.extract_strided_slice %943 {offsets = [0, 64], sizes = [8, 32], strides = [1, 1]} : vector<8x128xf32> to vector<8x32xf32>
    %961 = math.tanh %960 : vector<8x32xf32>
    %962 = vector.extract_strided_slice %943 {offsets = [0, 96], sizes = [8, 32], strides = [1, 1]} : vector<8x128xf32> to vector<8x32xf32>
    %963 = arith.negf %962 : vector<8x32xf32>
    %964 = math.exp %963 : vector<8x32xf32>
    %cst_220 = arith.constant 1.000000e+00 : f32
    %965 = vector.broadcast %cst_220 : f32 to vector<8x32xf32>
    %966 = arith.addf %965, %964 : vector<8x32xf32>
    %967 = arith.divf %965, %966 : vector<8x32xf32>
    %968 = arith.mulf %959, %900 : vector<8x32xf32>
    %969 = arith.mulf %953, %961 : vector<8x32xf32>
    %970 = arith.addf %968, %969 : vector<8x32xf32>
    %971 = math.tanh %970 : vector<8x32xf32>
    %972 = arith.mulf %967, %971 : vector<8x32xf32>
    %973 = vector.extract_strided_slice %947 {offsets = [0, 0], sizes = [8, 32], strides = [1, 1]} : vector<8x128xf32> to vector<8x32xf32>
    %974 = arith.negf %973 : vector<8x32xf32>
    %975 = math.exp %974 : vector<8x32xf32>
    %cst_221 = arith.constant 1.000000e+00 : f32
    %976 = vector.broadcast %cst_221 : f32 to vector<8x32xf32>
    %977 = arith.addf %976, %975 : vector<8x32xf32>
    %978 = arith.divf %976, %977 : vector<8x32xf32>
    %979 = vector.extract_strided_slice %947 {offsets = [0, 32], sizes = [8, 32], strides = [1, 1]} : vector<8x128xf32> to vector<8x32xf32>
    %980 = arith.negf %979 : vector<8x32xf32>
    %981 = math.exp %980 : vector<8x32xf32>
    %cst_222 = arith.constant 1.000000e+00 : f32
    %982 = vector.broadcast %cst_222 : f32 to vector<8x32xf32>
    %983 = arith.addf %982, %981 : vector<8x32xf32>
    %984 = arith.divf %982, %983 : vector<8x32xf32>
    %985 = vector.extract_strided_slice %947 {offsets = [0, 64], sizes = [8, 32], strides = [1, 1]} : vector<8x128xf32> to vector<8x32xf32>
    %986 = math.tanh %985 : vector<8x32xf32>
    %987 = vector.extract_strided_slice %947 {offsets = [0, 96], sizes = [8, 32], strides = [1, 1]} : vector<8x128xf32> to vector<8x32xf32>
    %988 = arith.negf %987 : vector<8x32xf32>
    %989 = math.exp %988 : vector<8x32xf32>
    %cst_223 = arith.constant 1.000000e+00 : f32
    %990 = vector.broadcast %cst_223 : f32 to vector<8x32xf32>
    %991 = arith.addf %990, %989 : vector<8x32xf32>
    %992 = arith.divf %990, %991 : vector<8x32xf32>
    %993 = arith.mulf %984, %925 : vector<8x32xf32>
    %994 = arith.mulf %978, %986 : vector<8x32xf32>
    %995 = arith.addf %993, %994 : vector<8x32xf32>
    %996 = math.tanh %995 : vector<8x32xf32>
    %997 = arith.mulf %992, %996 : vector<8x32xf32>
    %998 = arith.index_cast %934 : i32 to index
    %c0_224 = arith.constant 0 : index
    %999 = vector.load %arg13[%998, %c0_224] : memref<64x64xf32, #tpu.memory_space<vmem>>, vector<8x32xf32>
    tpu.vector_store %arg13[%998, %c0_224], %972 {strides = array<i32>} : memref<64x64xf32, #tpu.memory_space<vmem>>, vector<8x32xf32>,
    %1000 = arith.index_cast %937 : i32 to index
    %c32_225 = arith.constant 32 : index
    %1001 = vector.load %arg13[%1000, %c32_225] : memref<64x64xf32, #tpu.memory_space<vmem>>, vector<8x32xf32>
    tpu.vector_store %arg13[%1000, %c32_225], %997 {strides = array<i32>} : memref<64x64xf32, #tpu.memory_space<vmem>>, vector<8x32xf32>,
    %1002 = tpu.concatenate %972, %997 in 1 : vector<8x32xf32>, vector<8x32xf32> -> vector<8x64xf32>
    %c6_i32_226 = arith.constant 6 : i32
    %c8_i32_227 = arith.constant 8 : i32
    %1003 = arith.muli %c6_i32_226, %c8_i32_227 : i32
    %1004 = tpu.assume_multiple %1003, 8 : i32
    %c7_i32_228 = arith.constant 7 : i32
    %1005 = arith.subi %c7_i32_228, %c6_i32_226 : i32
    %c8_i32_229 = arith.constant 8 : i32
    %1006 = arith.muli %1005, %c8_i32_229 : i32
    %1007 = tpu.assume_multiple %1006, 8 : i32
    %1008 = arith.truncf %1002 : vector<8x64xf32> to vector<8x64xbf16>
    %cst_230 = arith.constant dense<0.000000e+00> : vector<8x256xf32>
    %1009 = tpu.matmul %1008, %579, %cst_230 {dimension_numbers = #tpu.dot_dimension_numbers<[1], [0], [0], [1], [0, 0, 1, 1], [], []>} : vector<8x64xbf16>, vector<64x256xbf16>, vector<8x256xf32> -> vector<8x256xf32>
    %1010 = arith.index_cast %1004 : i32 to index
    %c0_231 = arith.constant 0 : index
    %1011 = vector.load %arg14[%1010, %c0_231] : memref<64x256xf32, #tpu.memory_space<vmem>>, vector<8x128xf32>
    %1012 = vector.extract_strided_slice %1009 {offsets = [0, 0], sizes = [8, 128], strides = [1, 1]} : vector<8x256xf32> to vector<8x128xf32>
    %1013 = arith.addf %1011, %1012 : vector<8x128xf32>
    %1014 = arith.index_cast %1007 : i32 to index
    %c128_232 = arith.constant 128 : index
    %1015 = vector.load %arg14[%1014, %c128_232] : memref<64x256xf32, #tpu.memory_space<vmem>>, vector<8x128xf32>
    %1016 = vector.extract_strided_slice %1009 {offsets = [0, 128], sizes = [8, 128], strides = [1, 1]} : vector<8x256xf32> to vector<8x128xf32>
    %1017 = arith.addf %1015, %1016 : vector<8x128xf32>
    %1018 = vector.extract_strided_slice %1013 {offsets = [0, 0], sizes = [8, 32], strides = [1, 1]} : vector<8x128xf32> to vector<8x32xf32>
    %1019 = arith.negf %1018 : vector<8x32xf32>
    %1020 = math.exp %1019 : vector<8x32xf32>
    %cst_233 = arith.constant 1.000000e+00 : f32
    %1021 = vector.broadcast %cst_233 : f32 to vector<8x32xf32>
    %1022 = arith.addf %1021, %1020 : vector<8x32xf32>
    %1023 = arith.divf %1021, %1022 : vector<8x32xf32>
    %1024 = vector.extract_strided_slice %1013 {offsets = [0, 32], sizes = [8, 32], strides = [1, 1]} : vector<8x128xf32> to vector<8x32xf32>
    %1025 = arith.negf %1024 : vector<8x32xf32>
    %1026 = math.exp %1025 : vector<8x32xf32>
    %cst_234 = arith.constant 1.000000e+00 : f32
    %1027 = vector.broadcast %cst_234 : f32 to vector<8x32xf32>
    %1028 = arith.addf %1027, %1026 : vector<8x32xf32>
    %1029 = arith.divf %1027, %1028 : vector<8x32xf32>
    %1030 = vector.extract_strided_slice %1013 {offsets = [0, 64], sizes = [8, 32], strides = [1, 1]} : vector<8x128xf32> to vector<8x32xf32>
    %1031 = math.tanh %1030 : vector<8x32xf32>
    %1032 = vector.extract_strided_slice %1013 {offsets = [0, 96], sizes = [8, 32], strides = [1, 1]} : vector<8x128xf32> to vector<8x32xf32>
    %1033 = arith.negf %1032 : vector<8x32xf32>
    %1034 = math.exp %1033 : vector<8x32xf32>
    %cst_235 = arith.constant 1.000000e+00 : f32
    %1035 = vector.broadcast %cst_235 : f32 to vector<8x32xf32>
    %1036 = arith.addf %1035, %1034 : vector<8x32xf32>
    %1037 = arith.divf %1035, %1036 : vector<8x32xf32>
    %1038 = arith.mulf %1029, %970 : vector<8x32xf32>
    %1039 = arith.mulf %1023, %1031 : vector<8x32xf32>
    %1040 = arith.addf %1038, %1039 : vector<8x32xf32>
    %1041 = math.tanh %1040 : vector<8x32xf32>
    %1042 = arith.mulf %1037, %1041 : vector<8x32xf32>
    %1043 = vector.extract_strided_slice %1017 {offsets = [0, 0], sizes = [8, 32], strides = [1, 1]} : vector<8x128xf32> to vector<8x32xf32>
    %1044 = arith.negf %1043 : vector<8x32xf32>
    %1045 = math.exp %1044 : vector<8x32xf32>
    %cst_236 = arith.constant 1.000000e+00 : f32
    %1046 = vector.broadcast %cst_236 : f32 to vector<8x32xf32>
    %1047 = arith.addf %1046, %1045 : vector<8x32xf32>
    %1048 = arith.divf %1046, %1047 : vector<8x32xf32>
    %1049 = vector.extract_strided_slice %1017 {offsets = [0, 32], sizes = [8, 32], strides = [1, 1]} : vector<8x128xf32> to vector<8x32xf32>
    %1050 = arith.negf %1049 : vector<8x32xf32>
    %1051 = math.exp %1050 : vector<8x32xf32>
    %cst_237 = arith.constant 1.000000e+00 : f32
    %1052 = vector.broadcast %cst_237 : f32 to vector<8x32xf32>
    %1053 = arith.addf %1052, %1051 : vector<8x32xf32>
    %1054 = arith.divf %1052, %1053 : vector<8x32xf32>
    %1055 = vector.extract_strided_slice %1017 {offsets = [0, 64], sizes = [8, 32], strides = [1, 1]} : vector<8x128xf32> to vector<8x32xf32>
    %1056 = math.tanh %1055 : vector<8x32xf32>
    %1057 = vector.extract_strided_slice %1017 {offsets = [0, 96], sizes = [8, 32], strides = [1, 1]} : vector<8x128xf32> to vector<8x32xf32>
    %1058 = arith.negf %1057 : vector<8x32xf32>
    %1059 = math.exp %1058 : vector<8x32xf32>
    %cst_238 = arith.constant 1.000000e+00 : f32
    %1060 = vector.broadcast %cst_238 : f32 to vector<8x32xf32>
    %1061 = arith.addf %1060, %1059 : vector<8x32xf32>
    %1062 = arith.divf %1060, %1061 : vector<8x32xf32>
    %1063 = arith.mulf %1054, %995 : vector<8x32xf32>
    %1064 = arith.mulf %1048, %1056 : vector<8x32xf32>
    %1065 = arith.addf %1063, %1064 : vector<8x32xf32>
    %1066 = math.tanh %1065 : vector<8x32xf32>
    %1067 = arith.mulf %1062, %1066 : vector<8x32xf32>
    %1068 = arith.index_cast %1004 : i32 to index
    %c0_239 = arith.constant 0 : index
    %1069 = vector.load %arg13[%1068, %c0_239] : memref<64x64xf32, #tpu.memory_space<vmem>>, vector<8x32xf32>
    tpu.vector_store %arg13[%1068, %c0_239], %1042 {strides = array<i32>} : memref<64x64xf32, #tpu.memory_space<vmem>>, vector<8x32xf32>,
    %1070 = arith.index_cast %1007 : i32 to index
    %c32_240 = arith.constant 32 : index
    %1071 = vector.load %arg13[%1070, %c32_240] : memref<64x64xf32, #tpu.memory_space<vmem>>, vector<8x32xf32>
    tpu.vector_store %arg13[%1070, %c32_240], %1067 {strides = array<i32>} : memref<64x64xf32, #tpu.memory_space<vmem>>, vector<8x32xf32>,
    %1072 = tpu.concatenate %1042, %1067 in 1 : vector<8x32xf32>, vector<8x32xf32> -> vector<8x64xf32>
    %c7_i32_241 = arith.constant 7 : i32
    %c8_i32_242 = arith.constant 8 : i32
    %1073 = arith.muli %c7_i32_241, %c8_i32_242 : i32
    %1074 = tpu.assume_multiple %1073, 8 : i32
    %c7_i32_243 = arith.constant 7 : i32
    %1075 = arith.subi %c7_i32_243, %c7_i32_241 : i32
    %c8_i32_244 = arith.constant 8 : i32
    %1076 = arith.muli %1075, %c8_i32_244 : i32
    %1077 = tpu.assume_multiple %1076, 8 : i32
    %1078 = arith.truncf %1072 : vector<8x64xf32> to vector<8x64xbf16>
    %cst_245 = arith.constant dense<0.000000e+00> : vector<8x256xf32>
    %1079 = tpu.matmul %1078, %579, %cst_245 {dimension_numbers = #tpu.dot_dimension_numbers<[1], [0], [0], [1], [0, 0, 1, 1], [], []>} : vector<8x64xbf16>, vector<64x256xbf16>, vector<8x256xf32> -> vector<8x256xf32>
    %1080 = arith.index_cast %1074 : i32 to index
    %c0_246 = arith.constant 0 : index
    %1081 = vector.load %arg14[%1080, %c0_246] : memref<64x256xf32, #tpu.memory_space<vmem>>, vector<8x128xf32>
    %1082 = vector.extract_strided_slice %1079 {offsets = [0, 0], sizes = [8, 128], strides = [1, 1]} : vector<8x256xf32> to vector<8x128xf32>
    %1083 = arith.addf %1081, %1082 : vector<8x128xf32>
    %1084 = arith.index_cast %1077 : i32 to index
    %c128_247 = arith.constant 128 : index
    %1085 = vector.load %arg14[%1084, %c128_247] : memref<64x256xf32, #tpu.memory_space<vmem>>, vector<8x128xf32>
    %1086 = vector.extract_strided_slice %1079 {offsets = [0, 128], sizes = [8, 128], strides = [1, 1]} : vector<8x256xf32> to vector<8x128xf32>
    %1087 = arith.addf %1085, %1086 : vector<8x128xf32>
    %1088 = vector.extract_strided_slice %1083 {offsets = [0, 0], sizes = [8, 32], strides = [1, 1]} : vector<8x128xf32> to vector<8x32xf32>
    %1089 = arith.negf %1088 : vector<8x32xf32>
    %1090 = math.exp %1089 : vector<8x32xf32>
    %cst_248 = arith.constant 1.000000e+00 : f32
    %1091 = vector.broadcast %cst_248 : f32 to vector<8x32xf32>
    %1092 = arith.addf %1091, %1090 : vector<8x32xf32>
    %1093 = arith.divf %1091, %1092 : vector<8x32xf32>
    %1094 = vector.extract_strided_slice %1083 {offsets = [0, 32], sizes = [8, 32], strides = [1, 1]} : vector<8x128xf32> to vector<8x32xf32>
    %1095 = arith.negf %1094 : vector<8x32xf32>
    %1096 = math.exp %1095 : vector<8x32xf32>
    %cst_249 = arith.constant 1.000000e+00 : f32
    %1097 = vector.broadcast %cst_249 : f32 to vector<8x32xf32>
    %1098 = arith.addf %1097, %1096 : vector<8x32xf32>
    %1099 = arith.divf %1097, %1098 : vector<8x32xf32>
    %1100 = vector.extract_strided_slice %1083 {offsets = [0, 64], sizes = [8, 32], strides = [1, 1]} : vector<8x128xf32> to vector<8x32xf32>
    %1101 = math.tanh %1100 : vector<8x32xf32>
    %1102 = vector.extract_strided_slice %1083 {offsets = [0, 96], sizes = [8, 32], strides = [1, 1]} : vector<8x128xf32> to vector<8x32xf32>
    %1103 = arith.negf %1102 : vector<8x32xf32>
    %1104 = math.exp %1103 : vector<8x32xf32>
    %cst_250 = arith.constant 1.000000e+00 : f32
    %1105 = vector.broadcast %cst_250 : f32 to vector<8x32xf32>
    %1106 = arith.addf %1105, %1104 : vector<8x32xf32>
    %1107 = arith.divf %1105, %1106 : vector<8x32xf32>
    %1108 = arith.mulf %1099, %1040 : vector<8x32xf32>
    %1109 = arith.mulf %1093, %1101 : vector<8x32xf32>
    %1110 = arith.addf %1108, %1109 : vector<8x32xf32>
    %1111 = math.tanh %1110 : vector<8x32xf32>
    %1112 = arith.mulf %1107, %1111 : vector<8x32xf32>
    %1113 = vector.extract_strided_slice %1087 {offsets = [0, 0], sizes = [8, 32], strides = [1, 1]} : vector<8x128xf32> to vector<8x32xf32>
    %1114 = arith.negf %1113 : vector<8x32xf32>
    %1115 = math.exp %1114 : vector<8x32xf32>
    %cst_251 = arith.constant 1.000000e+00 : f32
    %1116 = vector.broadcast %cst_251 : f32 to vector<8x32xf32>
    %1117 = arith.addf %1116, %1115 : vector<8x32xf32>
    %1118 = arith.divf %1116, %1117 : vector<8x32xf32>
    %1119 = vector.extract_strided_slice %1087 {offsets = [0, 32], sizes = [8, 32], strides = [1, 1]} : vector<8x128xf32> to vector<8x32xf32>
    %1120 = arith.negf %1119 : vector<8x32xf32>
    %1121 = math.exp %1120 : vector<8x32xf32>
    %cst_252 = arith.constant 1.000000e+00 : f32
    %1122 = vector.broadcast %cst_252 : f32 to vector<8x32xf32>
    %1123 = arith.addf %1122, %1121 : vector<8x32xf32>
    %1124 = arith.divf %1122, %1123 : vector<8x32xf32>
    %1125 = vector.extract_strided_slice %1087 {offsets = [0, 64], sizes = [8, 32], strides = [1, 1]} : vector<8x128xf32> to vector<8x32xf32>
    %1126 = math.tanh %1125 : vector<8x32xf32>
    %1127 = vector.extract_strided_slice %1087 {offsets = [0, 96], sizes = [8, 32], strides = [1, 1]} : vector<8x128xf32> to vector<8x32xf32>
    %1128 = arith.negf %1127 : vector<8x32xf32>
    %1129 = math.exp %1128 : vector<8x32xf32>
    %cst_253 = arith.constant 1.000000e+00 : f32
    %1130 = vector.broadcast %cst_253 : f32 to vector<8x32xf32>
    %1131 = arith.addf %1130, %1129 : vector<8x32xf32>
    %1132 = arith.divf %1130, %1131 : vector<8x32xf32>
    %1133 = arith.mulf %1124, %1065 : vector<8x32xf32>
    %1134 = arith.mulf %1118, %1126 : vector<8x32xf32>
    %1135 = arith.addf %1133, %1134 : vector<8x32xf32>
    %1136 = math.tanh %1135 : vector<8x32xf32>
    %1137 = arith.mulf %1132, %1136 : vector<8x32xf32>
    %1138 = arith.index_cast %1074 : i32 to index
    %c0_254 = arith.constant 0 : index
    %1139 = vector.load %arg13[%1138, %c0_254] : memref<64x64xf32, #tpu.memory_space<vmem>>, vector<8x32xf32>
    tpu.vector_store %arg13[%1138, %c0_254], %1112 {strides = array<i32>} : memref<64x64xf32, #tpu.memory_space<vmem>>, vector<8x32xf32>,
    %1140 = arith.index_cast %1077 : i32 to index
    %c32_255 = arith.constant 32 : index
    %1141 = vector.load %arg13[%1140, %c32_255] : memref<64x64xf32, #tpu.memory_space<vmem>>, vector<8x32xf32>
    tpu.vector_store %arg13[%1140, %c32_255], %1137 {strides = array<i32>} : memref<64x64xf32, #tpu.memory_space<vmem>>, vector<8x32xf32>,
    %1142 = tpu.concatenate %1112, %1137 in 1 : vector<8x32xf32>, vector<8x32xf32> -> vector<8x64xf32>
    %c8_i32_256 = arith.constant 8 : i32
    %c0_257 = arith.constant 0 : index
    %c0_258 = arith.constant 0 : index
    %1143 = vector.load %arg13[%c0_257, %c0_258] : memref<64x64xf32, #tpu.memory_space<vmem>>, vector<64x64xf32>
    %1144 = arith.truncf %1143 : vector<64x64xf32> to vector<64x64xbf16>
    %c0_259 = arith.constant 0 : index
    %c0_260 = arith.constant 0 : index
    %1145 = vector.load %arg7[%c0_259, %c0_260] : memref<64x64xbf16, #tpu.memory_space<vmem>>, vector<64x64xbf16>
    %cst_261 = arith.constant dense<0.000000e+00> : vector<64x64xf32>
    %1146 = tpu.matmul %1144, %1145, %cst_261 {dimension_numbers = #tpu.dot_dimension_numbers<[1], [0], [0], [1], [0, 0, 1, 1], [], []>} : vector<64x64xbf16>, vector<64x64xbf16>, vector<64x64xf32> -> vector<64x64xf32>
    %c0_262 = arith.constant 0 : index
    %c0_263 = arith.constant 0 : index
    %1147 = vector.load %arg8[%c0_262, %c0_263] : memref<1x64xf32, #tpu.memory_space<vmem>>, vector<1x64xf32>
    %1148 = vector.broadcast %1147 : vector<1x64xf32> to vector<64x64xf32>
    %1149 = arith.addf %1146, %1148 : vector<64x64xf32>
    %c0_264 = arith.constant 0 : index
    %c0_265 = arith.constant 0 : index
    %1150 = vector.load %arg12[%c0_264, %c0_265] : memref<64x64xf32, #tpu.memory_space<vmem>>, vector<64x64xf32>
    tpu.vector_store %arg12[%c0_264, %c0_265], %1149 {strides = array<i32>} : memref<64x64xf32, #tpu.memory_space<vmem>>, vector<64x64xf32>,
    %cst_266 = arith.constant 0xFF800000 : f32
    %1151 = vector.broadcast %cst_266 : f32 to vector<8x64xf32>
    %c0_i32_267 = arith.constant 0 : i32
    %c8_i32_268 = arith.constant 8 : i32
    %1152 = arith.muli %c0_i32_267, %c8_i32_268 : i32
    %1153 = tpu.assume_multiple %1152, 8 : i32
    %1154 = arith.index_cast %1153 : i32 to index
    %c0_269 = arith.constant 0 : index
    %1155 = vector.load %arg12[%1154, %c0_269] : memref<64x64xf32, #tpu.memory_space<vmem>>, vector<8x64xf32>
    %1156 = arith.maximumf %1151, %1155 : vector<8x64xf32>
    %c1_i32_270 = arith.constant 1 : i32
    %c8_i32_271 = arith.constant 8 : i32
    %1157 = arith.muli %c1_i32_270, %c8_i32_271 : i32
    %1158 = tpu.assume_multiple %1157, 8 : i32
    %1159 = arith.index_cast %1158 : i32 to index
    %c0_272 = arith.constant 0 : index
    %1160 = vector.load %arg12[%1159, %c0_272] : memref<64x64xf32, #tpu.memory_space<vmem>>, vector<8x64xf32>
    %1161 = arith.maximumf %1156, %1160 : vector<8x64xf32>
    %c2_i32_273 = arith.constant 2 : i32
    %c8_i32_274 = arith.constant 8 : i32
    %1162 = arith.muli %c2_i32_273, %c8_i32_274 : i32
    %1163 = tpu.assume_multiple %1162, 8 : i32
    %1164 = arith.index_cast %1163 : i32 to index
    %c0_275 = arith.constant 0 : index
    %1165 = vector.load %arg12[%1164, %c0_275] : memref<64x64xf32, #tpu.memory_space<vmem>>, vector<8x64xf32>
    %1166 = arith.maximumf %1161, %1165 : vector<8x64xf32>
    %c3_i32_276 = arith.constant 3 : i32
    %c8_i32_277 = arith.constant 8 : i32
    %1167 = arith.muli %c3_i32_276, %c8_i32_277 : i32
    %1168 = tpu.assume_multiple %1167, 8 : i32
    %1169 = arith.index_cast %1168 : i32 to index
    %c0_278 = arith.constant 0 : index
    %1170 = vector.load %arg12[%1169, %c0_278] : memref<64x64xf32, #tpu.memory_space<vmem>>, vector<8x64xf32>
    %1171 = arith.maximumf %1166, %1170 : vector<8x64xf32>
    %c4_i32_279 = arith.constant 4 : i32
    %c8_i32_280 = arith.constant 8 : i32
    %1172 = arith.muli %c4_i32_279, %c8_i32_280 : i32
    %1173 = tpu.assume_multiple %1172, 8 : i32
    %1174 = arith.index_cast %1173 : i32 to index
    %c0_281 = arith.constant 0 : index
    %1175 = vector.load %arg12[%1174, %c0_281] : memref<64x64xf32, #tpu.memory_space<vmem>>, vector<8x64xf32>
    %1176 = arith.maximumf %1171, %1175 : vector<8x64xf32>
    %c5_i32_282 = arith.constant 5 : i32
    %c8_i32_283 = arith.constant 8 : i32
    %1177 = arith.muli %c5_i32_282, %c8_i32_283 : i32
    %1178 = tpu.assume_multiple %1177, 8 : i32
    %1179 = arith.index_cast %1178 : i32 to index
    %c0_284 = arith.constant 0 : index
    %1180 = vector.load %arg12[%1179, %c0_284] : memref<64x64xf32, #tpu.memory_space<vmem>>, vector<8x64xf32>
    %1181 = arith.maximumf %1176, %1180 : vector<8x64xf32>
    %c6_i32_285 = arith.constant 6 : i32
    %c8_i32_286 = arith.constant 8 : i32
    %1182 = arith.muli %c6_i32_285, %c8_i32_286 : i32
    %1183 = tpu.assume_multiple %1182, 8 : i32
    %1184 = arith.index_cast %1183 : i32 to index
    %c0_287 = arith.constant 0 : index
    %1185 = vector.load %arg12[%1184, %c0_287] : memref<64x64xf32, #tpu.memory_space<vmem>>, vector<8x64xf32>
    %1186 = arith.maximumf %1181, %1185 : vector<8x64xf32>
    %c7_i32_288 = arith.constant 7 : i32
    %c8_i32_289 = arith.constant 8 : i32
    %1187 = arith.muli %c7_i32_288, %c8_i32_289 : i32
    %1188 = tpu.assume_multiple %1187, 8 : i32
    %1189 = arith.index_cast %1188 : i32 to index
    %c0_290 = arith.constant 0 : index
    %1190 = vector.load %arg12[%1189, %c0_290] : memref<64x64xf32, #tpu.memory_space<vmem>>, vector<8x64xf32>
    %1191 = arith.maximumf %1186, %1190 : vector<8x64xf32>
    %c8_i32_291 = arith.constant 8 : i32
    %cst_292 = arith.constant 0.000000e+00 : f32
    %1192 = vector.broadcast %cst_292 : f32 to vector<8x64xf32>
    %cst_293 = arith.constant 0.000000e+00 : f32
    %1193 = vector.broadcast %cst_293 : f32 to vector<8x64xf32>
    %c0_i32_294 = arith.constant 0 : i32
    %c8_i32_295 = arith.constant 8 : i32
    %1194 = arith.muli %c0_i32_294, %c8_i32_295 : i32
    %1195 = tpu.assume_multiple %1194, 8 : i32
    %1196 = arith.index_cast %1195 : i32 to index
    %c0_296 = arith.constant 0 : index
    %1197 = vector.load %arg12[%1196, %c0_296] : memref<64x64xf32, #tpu.memory_space<vmem>>, vector<8x64xf32>
    %1198 = arith.subf %1197, %1191 : vector<8x64xf32>
    %1199 = math.exp %1198 : vector<8x64xf32>
    %1200 = arith.addf %1192, %1199 : vector<8x64xf32>
    %1201 = arith.mulf %1199, %1197 : vector<8x64xf32>
    %1202 = arith.addf %1193, %1201 : vector<8x64xf32>
    %c1_i32_297 = arith.constant 1 : i32
    %c8_i32_298 = arith.constant 8 : i32
    %1203 = arith.muli %c1_i32_297, %c8_i32_298 : i32
    %1204 = tpu.assume_multiple %1203, 8 : i32
    %1205 = arith.index_cast %1204 : i32 to index
    %c0_299 = arith.constant 0 : index
    %1206 = vector.load %arg12[%1205, %c0_299] : memref<64x64xf32, #tpu.memory_space<vmem>>, vector<8x64xf32>
    %1207 = arith.subf %1206, %1191 : vector<8x64xf32>
    %1208 = math.exp %1207 : vector<8x64xf32>
    %1209 = arith.addf %1200, %1208 : vector<8x64xf32>
    %1210 = arith.mulf %1208, %1206 : vector<8x64xf32>
    %1211 = arith.addf %1202, %1210 : vector<8x64xf32>
    %c2_i32_300 = arith.constant 2 : i32
    %c8_i32_301 = arith.constant 8 : i32
    %1212 = arith.muli %c2_i32_300, %c8_i32_301 : i32
    %1213 = tpu.assume_multiple %1212, 8 : i32
    %1214 = arith.index_cast %1213 : i32 to index
    %c0_302 = arith.constant 0 : index
    %1215 = vector.load %arg12[%1214, %c0_302] : memref<64x64xf32, #tpu.memory_space<vmem>>, vector<8x64xf32>
    %1216 = arith.subf %1215, %1191 : vector<8x64xf32>
    %1217 = math.exp %1216 : vector<8x64xf32>
    %1218 = arith.addf %1209, %1217 : vector<8x64xf32>
    %1219 = arith.mulf %1217, %1215 : vector<8x64xf32>
    %1220 = arith.addf %1211, %1219 : vector<8x64xf32>
    %c3_i32_303 = arith.constant 3 : i32
    %c8_i32_304 = arith.constant 8 : i32
    %1221 = arith.muli %c3_i32_303, %c8_i32_304 : i32
    %1222 = tpu.assume_multiple %1221, 8 : i32
    %1223 = arith.index_cast %1222 : i32 to index
    %c0_305 = arith.constant 0 : index
    %1224 = vector.load %arg12[%1223, %c0_305] : memref<64x64xf32, #tpu.memory_space<vmem>>, vector<8x64xf32>
    %1225 = arith.subf %1224, %1191 : vector<8x64xf32>
    %1226 = math.exp %1225 : vector<8x64xf32>
    %1227 = arith.addf %1218, %1226 : vector<8x64xf32>
    %1228 = arith.mulf %1226, %1224 : vector<8x64xf32>
    %1229 = arith.addf %1220, %1228 : vector<8x64xf32>
    %c4_i32_306 = arith.constant 4 : i32
    %c8_i32_307 = arith.constant 8 : i32
    %1230 = arith.muli %c4_i32_306, %c8_i32_307 : i32
    %1231 = tpu.assume_multiple %1230, 8 : i32
    %1232 = arith.index_cast %1231 : i32 to index
    %c0_308 = arith.constant 0 : index
    %1233 = vector.load %arg12[%1232, %c0_308] : memref<64x64xf32, #tpu.memory_space<vmem>>, vector<8x64xf32>
    %1234 = arith.subf %1233, %1191 : vector<8x64xf32>
    %1235 = math.exp %1234 : vector<8x64xf32>
    %1236 = arith.addf %1227, %1235 : vector<8x64xf32>
    %1237 = arith.mulf %1235, %1233 : vector<8x64xf32>
    %1238 = arith.addf %1229, %1237 : vector<8x64xf32>
    %c5_i32_309 = arith.constant 5 : i32
    %c8_i32_310 = arith.constant 8 : i32
    %1239 = arith.muli %c5_i32_309, %c8_i32_310 : i32
    %1240 = tpu.assume_multiple %1239, 8 : i32
    %1241 = arith.index_cast %1240 : i32 to index
    %c0_311 = arith.constant 0 : index
    %1242 = vector.load %arg12[%1241, %c0_311] : memref<64x64xf32, #tpu.memory_space<vmem>>, vector<8x64xf32>
    %1243 = arith.subf %1242, %1191 : vector<8x64xf32>
    %1244 = math.exp %1243 : vector<8x64xf32>
    %1245 = arith.addf %1236, %1244 : vector<8x64xf32>
    %1246 = arith.mulf %1244, %1242 : vector<8x64xf32>
    %1247 = arith.addf %1238, %1246 : vector<8x64xf32>
    %c6_i32_312 = arith.constant 6 : i32
    %c8_i32_313 = arith.constant 8 : i32
    %1248 = arith.muli %c6_i32_312, %c8_i32_313 : i32
    %1249 = tpu.assume_multiple %1248, 8 : i32
    %1250 = arith.index_cast %1249 : i32 to index
    %c0_314 = arith.constant 0 : index
    %1251 = vector.load %arg12[%1250, %c0_314] : memref<64x64xf32, #tpu.memory_space<vmem>>, vector<8x64xf32>
    %1252 = arith.subf %1251, %1191 : vector<8x64xf32>
    %1253 = math.exp %1252 : vector<8x64xf32>
    %1254 = arith.addf %1245, %1253 : vector<8x64xf32>
    %1255 = arith.mulf %1253, %1251 : vector<8x64xf32>
    %1256 = arith.addf %1247, %1255 : vector<8x64xf32>
    %c7_i32_315 = arith.constant 7 : i32
    %c8_i32_316 = arith.constant 8 : i32
    %1257 = arith.muli %c7_i32_315, %c8_i32_316 : i32
    %1258 = tpu.assume_multiple %1257, 8 : i32
    %1259 = arith.index_cast %1258 : i32 to index
    %c0_317 = arith.constant 0 : index
    %1260 = vector.load %arg12[%1259, %c0_317] : memref<64x64xf32, #tpu.memory_space<vmem>>, vector<8x64xf32>
    %1261 = arith.subf %1260, %1191 : vector<8x64xf32>
    %1262 = math.exp %1261 : vector<8x64xf32>
    %1263 = arith.addf %1254, %1262 : vector<8x64xf32>
    %1264 = arith.mulf %1262, %1260 : vector<8x64xf32>
    %1265 = arith.addf %1256, %1264 : vector<8x64xf32>
    %c8_i32_318 = arith.constant 8 : i32
    %1266 = arith.divf %1265, %1263 : vector<8x64xf32>
    %c0_319 = arith.constant 0 : index
    %c0_320 = arith.constant 0 : index
    %1267 = vector.load %arg9[%c0_319, %c0_320] : memref<1x64xf32, #tpu.memory_space<vmem>>, vector<1x64xf32>
    %1268 = vector.broadcast %1267 : vector<1x64xf32> to vector<8x64xf32>
    %1269 = arith.mulf %1266, %1268 : vector<8x64xf32>
    %cst_321 = arith.constant dense<0.000000e+00> : vector<8xf32>
    %1270 = vector.multi_reduction <add>, %1269, %cst_321 [1] : vector<8x64xf32> to vector<8xf32>
    %1271 = vector.shape_cast %1270 : vector<8xf32> to vector<8x1xf32>
    %c0_322 = arith.constant 0 : index
    %c0_323 = arith.constant 0 : index
    %1272 = vector.load %arg10[%c0_322, %c0_323] : memref<1x1xf32, #tpu.memory_space<vmem>>, vector<1x1xf32>
    %1273 = vector.broadcast %1272 : vector<1x1xf32> to vector<8x1xf32>
    %1274 = arith.addf %1271, %1273 : vector<8x1xf32>
    %c0_324 = arith.constant 0 : index
    %c0_325 = arith.constant 0 : index
    %1275 = vector.load %arg11[%c0_324, %c0_325] : memref<8x1xf32, #tpu.memory_space<vmem>>, vector<8x1xf32>
    tpu.vector_store %arg11[%c0_324, %c0_325], %1274 {strides = array<i32>} : memref<8x1xf32, #tpu.memory_space<vmem>>, vector<8x1xf32>,
    return
  }
}

</mosaic_0001>

<bundles_post_ra>
// kernel: att_bilstm_forward.1
= control target key start
LH: loop header
LB: loop body
LE: loop exit
PB: predicated region body
PF: predicated region fallthrough
CT: control target
= control target key end

     0   :  { %s3740_s0 = inlined_call_operand.vmem [shape: bf16[64,16], index: 0, kind: input, shape index: {}]   ;;  %s3741_s1 = inlined_call_operand.hbm [shape: bf16[16,256], index: 1, kind: input, shape index: {}]   ;;  %s3742_s2 = inlined_call_operand.vmem [shape: bf16[64,256], index: 2, kind: input, shape index: {}]   ;;  %s3743_s3 = inlined_call_operand.vmem [shape: f32[1,256], index: 3, kind: input, shape index: {}]   ;;  %s3744_s4 = inlined_call_operand.hbm [shape: bf16[64,256], index: 4, kind: input, shape index: {}]   ;;  %s3745_s5 = inlined_call_operand.hbm [shape: bf16[64,256], index: 5, kind: input, shape index: {}]   ;;  %s3746_s6 = inlined_call_operand.vmem [shape: f32[1,256], index: 6, kind: input, shape index: {}]   ;;  %s3747_s7 = inlined_call_operand.vmem [shape: bf16[64,64], index: 7, kind: input, shape index: {}]   ;;  %s3748_s8 = inlined_call_operand.vmem [shape: f32[1,64], index: 8, kind: input, shape index: {}]   ;;  %s3749_s9 = inlined_call_operand.vmem [shape: f32[1,64], index: 9, kind: input, shape index: {}]   ;;  %s3750_s10 = inlined_call_operand.<no memory space> [shape: f32[1,1], index: 10, kind: input, shape index: {}]   ;;  %s3751_s11 = inlined_call_operand.vmem [shape: f32[8,1], index: 11, kind: output, shape index: {}]  }
   0x1   :  { %v16_v0 = vstv %s3750_s10 }
   0x2   :  { %17 = vst [vmem:[#allocation5] sm:$0x1] %v16_v0 }
   0x3   :  { %18 = vsyncpa [#allocation7], 0 }
   0x4   :  { %19 = vsyncpa [#allocation9], 0  ;;  %s3022_s19 = smov [#allocation8]   ;;  %s3023_s21 = smov [#allocation6]  }
   0x5   :  { %s43_s20 = sshll.u32 %s3022_s19, 4  ;;  %s27_s22 = sshll.u32 %s3023_s21, 4  ;;  %s44_s20 = int_to_ptr.vmem [resolvable:$true] %s43_s20  ;;  %s3093_s22 = int_to_ptr.vmem [resolvable:$true] %s27_s22 }
   0x6   :  { %s2952_s25 = scalar_lea.hbm %s3744_s4, 1024 }
   0x7   :  { %p2953_p0 = scmp.ne.s32.totalorder %s3744_s4, %s2952_s25  ;;  %p2956_p1 = scmp.lt.u32.totalorder %s2952_s25, %s3744_s4 }
   0x9   :  { %p2958_p2 = pnand %p2956_p1, %p2953_p0 }
   0xb   :  { %2961 = shalt.err (!%p2958_p2)
}
   0xc   :  { %s2962_s29 = scalar_lea.vmem %s44_s20, 1024  ;;  %p2967_p4 = scmp.lt.s32.totalorder %s44_s20, %s44_s20 }
   0xd   :  { %p2963_p3 = scmp.ne.s32.totalorder %s44_s20, %s2962_s29  ;;  %p2968_p5 = scmp.lt.s32.totalorder %s2962_s29, %s2962_s29 }
   0xf   :  { %p2969_p6 = por %p2968_p5, %p2967_p4 }
  0x11   :  { %p2970_p7 = pnand %p2969_p6, %p2963_p3 }
  0x13   :  { %2973 = shalt.err (!%p2970_p7)
}
  0x14   :  { %s3024_s30 = smov 128   ;;  %s3025_s12 = smov 8  }
  0x15   :  { %49 = dma.hbm_to_vmem [thread:$0]  %s3744_s4, 1024, %s44_s20, [#allocation9], %s3024_s30, %s3024_s30, %s3025_s12  }
  0x16   :  { %s2974_s17 = scalar_lea.hbm %s3741_s1, 256 }
  0x17   :  { %p2975_p8 = scmp.ne.s32.totalorder %s3741_s1, %s2974_s17  ;;  %p2978_p9 = scmp.lt.u32.totalorder %s2974_s17, %s3741_s1 }
  0x19   :  { %p2980_p10 = pnand %p2978_p9, %p2975_p8 }
  0x1b   :  { %2983 = shalt.err (!%p2980_p10)
}
  0x1c   :  { %s2984_s24 = scalar_lea.vmem %s3093_s22, 256  ;;  %p2989_p12 = scmp.lt.s32.totalorder %s3093_s22, %s3093_s22 }
  0x1d   :  { %p2985_p11 = scmp.ne.s32.totalorder %s3093_s22, %s2984_s24  ;;  %p2990_p13 = scmp.lt.s32.totalorder %s2984_s24, %s2984_s24 }
  0x1f   :  { %p2991_p0 = por %p2990_p13, %p2989_p12 }
  0x21   :  { %p2992_p1 = pnand %p2991_p0, %p2985_p11 }
  0x23   :  { %2995 = shalt.err (!%p2992_p1)
}
  0x24   :  { %33 = dma.hbm_to_vmem [thread:$0]  %s3741_s1, 256, %s3093_s22, [#allocation7], %s3024_s30, %s3024_s30, %s3025_s12  }
  0x25   :  { %s3026_s25 = smov [#allocation10]   ;;  %s2996_s10 = scalar_lea.hbm %s3745_s5, 1024 }
  0x26   :  { %s55_s26 = sshll.u32 %s3026_s25, 4  ;;  %p2997_p2 = scmp.ne.s32.totalorder %s3745_s5, %s2996_s10  ;;  %s56_s26 = int_to_ptr.vmem [resolvable:$true] %s55_s26 }
  0x27   :  { %p3000_p3 = scmp.lt.u32.totalorder %s2996_s10, %s3745_s5 }
  0x29   :  { %p3002_p4 = pnand %p3000_p3, %p2997_p2 }
  0x2b   :  { %3005 = shalt.err (!%p3002_p4)
}
  0x2c   :  { %s3006_s16 = scalar_lea.vmem %s56_s26, 1024  ;;  %p3011_p6 = scmp.lt.s32.totalorder %s56_s26, %s56_s26 }
  0x2d   :  { %p3007_p5 = scmp.ne.s32.totalorder %s56_s26, %s3006_s16  ;;  %p3012_p7 = scmp.lt.s32.totalorder %s3006_s16, %s3006_s16 }
  0x2f   :  { %p3013_p8 = por %p3012_p7, %p3011_p6 }
  0x31   :  { %p3014_p9 = pnand %p3013_p8, %p3007_p5 }
  0x33   :  { %3017 = shalt.err (!%p3014_p9)
}
  0x34   :  { %61 = dma.hbm_to_vmem [thread:$0]  %s3745_s5, 1024, %s56_s26, [#allocation9], %s3024_s30, %s3024_s30, %s3025_s12  }
  0x35   :  { %3018 = dma.done.wait [#allocation7], 256  }
  0x36   :  { %3019 = vsyncadd [#allocation7], 4294967040 }
  0x37   :  { %3020 = dma.done.wait [#allocation9], 2048  }
  0x38   :  { %3021 = vsyncadd [#allocation9], 4294965248  ;;  %v3027_v1 = vmov 0   ;;  %v2631_v2 = vld [vmem:[#allocation6 + $0x4] ss:$8 sps:$4 sm:$0xff]   ;;  %vm134_vm0 = vcmask 130048   ;;  %v94_v15 = vlaneseq }
  0x39   :  { %199 = vmatprep.mubr.bf16.mxu1 %v3027_v1  ;;  %179 = vmatprep.mubr.bf16.mxu0 %v3027_v1  ;;  %v2633_v3 = vld [vmem:[#allocation6] ss:$8 sps:$4 sm:$0xff]   ;;  %v2634_v4 = vld [vmem:[%s3740_s0 + $0x10] sm:$0xff]   ;;  %v2641_v11 = vld [vmem:[%s3740_s0 + $0x18] sm:$0xff]   ;;  %s3029_s17 = smov 32   ;;  %vm391_vm1 = vcmask 261120  }
  0x3a   :  { %2621 = vmatprep.subr.bf16.mxu1 %v2631_v2  ;;  %147 = vmatprep.subr.bf16.mxu0 %v2631_v2  ;;  %v3153_v5 = vld [vmem:[%s3742_s2 + $0x4] ss:$8 sps:$4 sm:$0xff]   ;;  %v3158_v6 = vld [vmem:[%s3742_s2] ss:$8 sps:$4 sm:$0xff]   ;;  %v3163_v7 = vld [vmem:[%s3742_s2 + $0x14] ss:$8 sps:$4 sm:$0xff]  }
  0x3b   :  { %2622 = vmatpush1.bf16.msra.mxu1 %v2633_v3  ;;  %148 = vmatpush1.bf16.msra.mxu0 %v2633_v3  ;;  %v3171_v8 = vld [vmem:[%s3742_s2 + $0x10] ss:$8 sps:$4 sm:$0xff]   ;;  %v3178_v9 = vld [vmem:[%s3742_s2 + $0x24] ss:$8 sps:$4 sm:$0xff]   ;;  %v3190_v12 = vld [vmem:[%s3742_s2 + $0x20] ss:$8 sps:$4 sm:$0xff]  }
  0x3c   :  { %288 = vmatprep.subr.bf16.mxu1 %v3153_v5  ;;  %521 = vmatprep.subr.bf16.mxu0 %v3153_v5  ;;  %v2645_v10 = vld [vmem:[%s3740_s0] sm:$0xff]   ;;  %v3196_v13 = vld [vmem:[%s3742_s2 + $0x34] ss:$8 sps:$4 sm:$0xff]   ;;  %v3205_v14 = vld [vmem:[%s3742_s2 + $0x30] ss:$8 sps:$4 sm:$0xff]   ;;  %v3236_v19 = vshrl.u32 %v94_v15, 7 }
  0x3d   :  { %v92_v26 = vld [vmem:[%s3743_s3] sm:$0x3]  ;;  %s3028_s3 = smov 64   ;;  %vm398_vm2 = vcmask 523520   ;;  %vm284_vm3 = vcmask 523264   ;;  %vm2487_vm4 = vcmask 7168  }
  0x3e   :  { %2510 = vmatmul.mubr.msk.bf16.vlgmr.msra.gmra.mrb[0].mxu1 %vm134_vm0, %v2634_v4  ;;  %2508 = vmatmul.mubr.msk.bf16.vlgmr.msra.gmra.mrb[0].mxu0 %vm134_vm0, %v2645_v10  ;;  %v96_v24 = vsub.s32 0, %v3236_v19  ;;  %v100_v29 = vsub.s32 1, %v3236_v19 }
  0x3f   :  { %289 = vmatpush1.bf16.msra.mxu1 %v3158_v6  ;;  %209 = vmatprep.mubr.bf16.mxu1 %v3027_v1 }
  0x40   :  { %290 = vmatprep.subr.bf16.mxu1 %v3163_v7  ;;  %522 = vmatpush1.bf16.msra.mxu0 %v3158_v6  ;;  %v3259_v31 = vrot.slane %v92_v26, %v96_v24  ;;  %v3264_v34 = vrot.slane %v92_v26, %v100_v29 }
  0x41   :  { %523 = vmatprep.subr.bf16.mxu0 %v3163_v7  ;;  %189 = vmatprep.mubr.bf16.mxu0 %v3027_v1 }
  0x43   :  { %291 = vmatpush1.bf16.msra.mxu1 %v3171_v8 }
  0x44   :  { %292 = vmatprep.subr.bf16.mxu1 %v3178_v9  ;;  %524 = vmatpush1.bf16.msra.mxu0 %v3171_v8 }
  0x45   :  { %525 = vmatprep.subr.bf16.mxu0 %v3178_v9 }
  0x46   :  { %2511 = vmatmul.mubr.msk.bf16.gmra.mrb[4].mxu1 %vm134_vm0, %v2641_v11 }
  0x47   :  { %293 = vmatpush1.bf16.msra.mxu1 %v3190_v12  ;;  %320 = vmatprep.mubr.bf16.mxu1 %v3027_v1 }
  0x48   :  { %294 = vmatprep.subr.bf16.mxu1 %v3196_v13  ;;  %526 = vmatpush1.bf16.msra.mxu0 %v3190_v12 }
  0x49   :  { %527 = vmatprep.subr.bf16.mxu0 %v3196_v13 }
  0x4b   :  { %295 = vmatpush1.bf16.msra.mxu1 %v3205_v14 }
  0x4c   :  { %405 = vmatprep.subr.bf16.mxu1 %v3153_v5  ;;  %528 = vmatpush1.bf16.msra.mxu0 %v3205_v14 }
  0x4d   :  { %753 = vmatprep.subr.bf16.mxu0 %v3153_v5 }
  0x4e   :  { %321 = vmatmul.mubr.bf16.vlgmr.msra.gmra.mrb[8].mxu1 %v3027_v1 }
  0x4f   :  { %406 = vmatpush1.bf16.msra.mxu1 %v3158_v6  ;;  %437 = vmatprep.mubr.bf16.mxu1 %v3027_v1 }
  0x50   :  { %407 = vmatprep.subr.bf16.mxu1 %v3163_v7 }
  0x53   :  { %408 = vmatpush1.bf16.msra.mxu1 %v3171_v8 }
  0x54   :  { %409 = vmatprep.subr.bf16.mxu1 %v3178_v9 }
  0x57   :  { %410 = vmatpush1.bf16.msra.mxu1 %v3190_v12 }
  0x58   :  { %411 = vmatprep.subr.bf16.mxu1 %v3196_v13 }
  0x5b   :  { %412 = vmatpush1.bf16.msra.mxu1 %v3205_v14 }
  0x5c   :  { %637 = vmatprep.subr.bf16.mxu1 %v3153_v5 }
 0x111   :  { %v3230_v16 = vpop.f32.mrb[0].mxu1  ;;  %v181_v21 = vpop.f32.mrb[0].mxu0 }
 0x112   :  { %v3232_v17 = vpop.f32.mrb[1].mxu1  ;;  %v3240_v22 = vpop.f32.mrb[1].mxu0  ;;  %v182_v33 = vadd.f32 %v181_v21, %v3259_v31 }
 0x113   :  { %v3234_v18 = vpop.f32.mrb[2].mxu1  ;;  %v3242_v23 = vpop.f32.mrb[2].mxu0 }
 0x114   :  { %v3238_v20 = vpop.f32.mrb[3].mxu1  ;;  %v3245_v25 = vpop.f32.mrb[3].mxu0  ;;  %v186_v26 = vadd.f32 %v3242_v23, %v3259_v31 }
 0x119   :  { %v3250_v27 = vpop.f32.mrb[4].mxu1 }
 0x11a   :  { %v3252_v28 = vpop.f32.mrb[5].mxu1 }
 0x11b   :  { %v3255_v30 = vpop.f32.mrb[6].mxu1 }
 0x11c   :  { %v217_v32 = vpop.f32.mrb[7].mxu1 }
 0x11d   :  { %v218_v35 = vadd.f32 %v217_v32, %v3264_v34  ;;  %v214_v32 = vadd.f32 %v3252_v28, %v3264_v34 }
 0x121   :  { %v322_v36 = vpop.f32.mrb[8].mxu1 }
 0x122   :  { %v333_v37 = vadd.f32 %v322_v36, %v182_v33  ;;  %v324_v38 = vpop.f32.mrb[9].mxu1 }
 0x123   :  { %v338_v39 = vadd.f32 %v324_v38, %v218_v35  ;;  %v326_v40 = vpop.f32.mrb[10].mxu1 }
 0x124   :  { %2678 = vtanh.f32 %v333_v37  ;;  %v327_v41 = vpop.f32.mrb[11].mxu1  ;;  %v2520_v44 = vmul.f32 -1.442695, %v333_v37 }
 0x125   :  { %2680 = vtanh.f32 %v338_v39  ;;  %v2521_v45 = vmul.f32 -1.442695, %v338_v39 }
 0x126   :  { %2682 = vpow2.f32 %v2520_v44 }
 0x127   :  { %2684 = vpow2.f32 %v2521_v45 }
 0x12e   :  { %v2679_v42 = vpop.eup %2678 }
 0x12f   :  { %348 = vrot.lane.b32.xlu0 %v2679_v42, %s3028_s3  ;;  %v2681_v43 = vpop.eup %2680 }
 0x130   :  { %v2683_v46 = vpop.eup %2682 }
 0x131   :  { %v342_v47 = vadd.f32 1.0, %v2683_v46  ;;  %v2685_v48 = vpop.eup %2684 }
 0x132   :  { %v366_v49 = vadd.f32 1.0, %v2685_v48 }
 0x133   :  { %372 = vrot.lane.b32.xlu0 %v2681_v43, %s3028_s3  ;;  %2686 = vrcp.f32 %v342_v47 }
 0x134   :  { %2688 = vrcp.f32 %v366_v49 }
 0x13d   :  { %v2687_v50 = vpop.eup %2686 }
 0x13e   :  { %v2689_v53 = vpop.eup %2688  ;;  %v346_v56 = vmul.f32 0.0, %v2687_v50 }
 0x13f   :  { %v370_v59 = vmul.f32 0.0, %v2689_v53 }
 0x1a1   :  { %v349_v51 = vpop.permute.xlu0 %348 }
 0x1a2   :  { %v351_v52 = vmul.f32 %v2687_v50, %v349_v51 }
 0x1a4   :  { %353 = vrot.lane.b32.xlu1 %v351_v52, %s3029_s17 }
 0x1a5   :  { %v373_v54 = vpop.permute.xlu0 %372 }
 0x1a6   :  { %v375_v55 = vmul.f32 %v2689_v53, %v373_v54 }
 0x1a8   :  { %377 = vrot.lane.b32.xlu1 %v375_v55, %s3029_s17 }
 0x216   :  { %v354_v57 = vpop.permute.xlu1 %353 }
 0x217   :  { %v3271_v58 = vadd.f32 %v354_v57, %v346_v56 }
 0x219   :  { %2690 = vtanh.f32 %v3271_v58 }
 0x21a   :  { %v378_v60 = vpop.permute.xlu1 %377 }
 0x21b   :  { %v3274_v61 = vadd.f32 %v378_v60, %v370_v59  ;;  %v2649_v59 = vld [vmem:[%s3740_s0 + $0x8] sm:$0xff]  }
 0x21c   :  { %2509 = vmatmul.mubr.msk.bf16.gmra.mrb[4].mxu0 %vm134_vm0, %v2649_v59 }
 0x21d   :  { %2692 = vtanh.f32 %v3274_v61  ;;  %553 = vmatprep.mubr.bf16.mxu0 %v3027_v1 }
 0x223   :  { %v2691_v62 = vpop.eup %2690 }
 0x224   :  { %359 = vrot.lane.b32.xlu0 %v2691_v62, %s3028_s3 }
 0x227   :  { %v2693_v63 = vpop.eup %2692 }
 0x228   :  { %383 = vrot.lane.b32.xlu1 %v2693_v63, %s3028_s3 }
 0x296   :  { %v360_v0 = vpop.permute.xlu0 %359 }
 0x297   :  { %v362_v2 = vmul.f32 %v2687_v50, %v360_v0 }
 0x299   :  { %388 = vrot.lane.b32.xlu0 %v362_v2, %s3029_s17 }
 0x29a   :  { %v384_v3 = vpop.permute.xlu1 %383 }
 0x29b   :  { %v386_v4 = vmul.f32 %v2689_v53, %v384_v3 }
 0x29d   :  { %394 = vrot.lane.b32.xlu1 %v386_v4, %s3028_s3 }
 0x2ef   :  { %v191_v2 = vpop.f32.mrb[4].mxu0 }
 0x2f0   :  { %v3319_v3 = vpop.f32.mrb[5].mxu0 }
 0x2f1   :  { %v3321_v4 = vpop.f32.mrb[6].mxu0 }
 0x30b   :  { %v389_v10 = vpop.permute.xlu0 %388 }
 0x30c   :  { %392 = vst.msk [vmem:[#allocation2] sm:$0xff] %vm391_vm1, %v389_v10 }
 0x30f   :  { %v395_v11 = vpop.permute.xlu1 %394 }
 0x310   :  { %399 = vst.msk [vmem:[#allocation2 + $0x38] sm:$0xff] %vm398_vm2, %v395_v11  ;;  %v400_v15 = vsel %vm391_vm1, %v389_v10, %v395_v11  ;;  %v3323_v10 = vpop.f32.mrb[7].mxu0 }
 0x311   :  { %v401_v21 = vpack.c.bf16 %v400_v15, %v400_v15 }
 0x313   :  { %2522 = vmatmul.mubr.msk.bf16.vlgmr.msra.gmra.mrb[12].mxu1 %vm284_vm3, %v401_v21 }
 0x314   :  { %638 = vmatpush1.bf16.msra.mxu1 %v3158_v6  ;;  %669 = vmatprep.mubr.bf16.mxu1 %v3027_v1 }
 0x315   :  { %639 = vmatprep.subr.bf16.mxu1 %v3163_v7 }
 0x318   :  { %640 = vmatpush1.bf16.msra.mxu1 %v3171_v8 }
 0x319   :  { %641 = vmatprep.subr.bf16.mxu1 %v3178_v9 }
 0x31c   :  { %642 = vmatpush1.bf16.msra.mxu1 %v3190_v12 }
 0x31d   :  { %643 = vmatprep.subr.bf16.mxu1 %v3196_v13 }
 0x320   :  { %644 = vmatpush1.bf16.msra.mxu1 %v3205_v14 }
 0x321   :  { %861 = vmatprep.subr.bf16.mxu1 %v3153_v5 }
 0x3e6   :  { %v439_v33 = vpop.f32.mrb[12].mxu1 }
 0x3e7   :  { %v450_v35 = vadd.f32 %v439_v33, %v186_v26  ;;  %v441_v36 = vpop.f32.mrb[13].mxu1  ;;  %v208_v33 = vadd.f32 %v3238_v20, %v3264_v34 }
 0x3e8   :  { %v455_v37 = vadd.f32 %v441_v36, %v214_v32  ;;  %v443_v38 = vpop.f32.mrb[14].mxu1  ;;  %v192_v32 = vadd.f32 %v191_v2, %v3259_v31 }
 0x3e9   :  { %2694 = vtanh.f32 %v450_v35  ;;  %v444_v39 = vpop.f32.mrb[15].mxu1  ;;  %v2523_v42 = vmul.f32 -1.442695, %v450_v35 }
 0x3ea   :  { %2696 = vtanh.f32 %v455_v37  ;;  %v2524_v43 = vmul.f32 -1.442695, %v455_v37 }
 0x3eb   :  { %2698 = vpow2.f32 %v2523_v42 }
 0x3ec   :  { %2700 = vpow2.f32 %v2524_v43 }
 0x3f3   :  { %v2695_v40 = vpop.eup %2694 }
 0x3f4   :  { %v2697_v41 = vpop.eup %2696  ;;  %465 = vrot.lane.b32.xlu0 %v2695_v40, %s3028_s3 }
 0x3f5   :  { %489 = vrot.lane.b32.xlu1 %v2697_v41, %s3028_s3  ;;  %v2699_v23 = vpop.eup %2698 }
 0x3f6   :  { %v2701_v28 = vpop.eup %2700  ;;  %v459_v44 = vadd.f32 1.0, %v2699_v23 }
 0x3f7   :  { %v483_v45 = vadd.f32 1.0, %v2701_v28 }
 0x3f8   :  { %2702 = vrcp.f32 %v459_v44 }
 0x3f9   :  { %2704 = vrcp.f32 %v483_v45 }
 0x402   :  { %v2703_v46 = vpop.eup %2702 }
 0x403   :  { %v2705_v48 = vpop.eup %2704  ;;  %v463_v52 = vmul.f32 %v2703_v46, %v3271_v58 }
 0x404   :  { %v487_v54 = vmul.f32 %v2705_v48, %v3274_v61 }
 0x466   :  { %v466_v47 = vpop.permute.xlu0 %465 }
 0x467   :  { %v468_v49 = vmul.f32 %v2703_v46, %v466_v47  ;;  %v490_v50 = vpop.permute.xlu1 %489 }
 0x468   :  { %v492_v51 = vmul.f32 %v2705_v48, %v490_v50 }
 0x469   :  { %470 = vrot.lane.b32.xlu0 %v468_v49, %s3029_s17 }
 0x46a   :  { %494 = vrot.lane.b32.xlu1 %v492_v51, %s3029_s17 }
 0x4db   :  { %v471_v53 = vpop.permute.xlu0 %470 }
 0x4dc   :  { %v3304_v55 = vadd.f32 %v471_v53, %v463_v52  ;;  %v495_v56 = vpop.permute.xlu1 %494 }
 0x4dd   :  { %v3306_v57 = vadd.f32 %v495_v56, %v487_v54 }
 0x4de   :  { %2706 = vtanh.f32 %v3304_v55 }
 0x4df   :  { %2708 = vtanh.f32 %v3306_v57 }
 0x4e8   :  { %v2707_v58 = vpop.eup %2706 }
 0x4e9   :  { %v2709_v60 = vpop.eup %2708  ;;  %476 = vrot.lane.b32.xlu0 %v2707_v58, %s3028_s3 }
 0x4ea   :  { %500 = vrot.lane.b32.xlu1 %v2709_v60, %s3028_s3 }
 0x55b   :  { %v477_v61 = vpop.permute.xlu0 %476 }
 0x55c   :  { %v479_v62 = vmul.f32 %v2703_v46, %v477_v61  ;;  %v501_v63 = vpop.permute.xlu1 %500 }
 0x55d   :  { %v503_v0 = vmul.f32 %v2705_v48, %v501_v63 }
 0x55e   :  { %505 = vrot.lane.b32.xlu0 %v479_v62, %s3029_s17 }
 0x55f   :  { %511 = vrot.lane.b32.xlu1 %v503_v0, %s3028_s3 }
 0x5d0   :  { %v506_v11 = vpop.permute.xlu0 %505 }
 0x5d1   :  { %509 = vst.msk [vmem:[#allocation2 + $0x8] sm:$0xff] %vm391_vm1, %v506_v11  ;;  %v512_v15 = vpop.permute.xlu1 %511 }
 0x5d2   :  { %515 = vst.msk [vmem:[#allocation2 + $0x30] sm:$0xff] %vm398_vm2, %v512_v15  ;;  %v516_v21 = vsel %vm391_vm1, %v506_v11, %v512_v15 }
 0x5d3   :  { %v517_v26 = vpack.c.bf16 %v516_v21, %v516_v21  ;;  %v196_v21 = vadd.f32 %v3321_v4, %v3259_v31 }
 0x5d5   :  { %2525 = vmatmul.mubr.msk.bf16.vlgmr.msra.gmra.mrb[8].mxu0 %vm284_vm3, %v517_v26  ;;  %v204_v26 = vadd.f32 %v3232_v17, %v3264_v34 }
 0x5d6   :  { %754 = vmatpush1.bf16.msra.mxu0 %v3158_v6  ;;  %785 = vmatprep.mubr.bf16.mxu0 %v3027_v1 }
 0x5d7   :  { %755 = vmatprep.subr.bf16.mxu0 %v3163_v7 }
 0x5da   :  { %756 = vmatpush1.bf16.msra.mxu0 %v3171_v8 }
 0x5db   :  { %757 = vmatprep.subr.bf16.mxu0 %v3178_v9 }
 0x5de   :  { %758 = vmatpush1.bf16.msra.mxu0 %v3190_v12 }
 0x5df   :  { %759 = vmatprep.subr.bf16.mxu0 %v3196_v13 }
 0x5e2   :  { %760 = vmatpush1.bf16.msra.mxu0 %v3205_v14 }
 0x5e3   :  { %969 = vmatprep.subr.bf16.mxu0 %v3153_v5 }
 0x6a8   :  { %v555_v35 = vpop.f32.mrb[8].mxu0 }
 0x6a9   :  { %v566_v36 = vadd.f32 %v555_v35, %v192_v32  ;;  %v557_v37 = vpop.f32.mrb[9].mxu0 }
 0x6aa   :  { %v571_v38 = vadd.f32 %v557_v37, %v208_v33  ;;  %v559_v39 = vpop.f32.mrb[10].mxu0 }
 0x6ab   :  { %2710 = vtanh.f32 %v566_v36  ;;  %v560_v40 = vpop.f32.mrb[11].mxu0  ;;  %v2526_v43 = vmul.f32 -1.442695, %v566_v36 }
 0x6ac   :  { %2712 = vtanh.f32 %v571_v38  ;;  %v2527_v23 = vmul.f32 -1.442695, %v571_v38 }
 0x6ad   :  { %2714 = vpow2.f32 %v2526_v43 }
 0x6ae   :  { %2716 = vpow2.f32 %v2527_v23 }
 0x6b5   :  { %v2711_v41 = vpop.eup %2710 }
 0x6b6   :  { %v2713_v42 = vpop.eup %2712  ;;  %581 = vrot.lane.b32.xlu0 %v2711_v41, %s3028_s3 }
 0x6b7   :  { %605 = vrot.lane.b32.xlu1 %v2713_v42, %s3028_s3  ;;  %v2715_v28 = vpop.eup %2714 }
 0x6b8   :  { %v2717_v20 = vpop.eup %2716  ;;  %v575_v44 = vadd.f32 1.0, %v2715_v28 }
 0x6b9   :  { %v599_v45 = vadd.f32 1.0, %v2717_v20 }
 0x6ba   :  { %2718 = vrcp.f32 %v575_v44 }
 0x6bb   :  { %2720 = vrcp.f32 %v599_v45 }
 0x6c4   :  { %v2719_v46 = vpop.eup %2718 }
 0x6c5   :  { %v2721_v48 = vpop.eup %2720  ;;  %v579_v52 = vmul.f32 %v2719_v46, %v3304_v55 }
 0x6c6   :  { %v603_v54 = vmul.f32 %v2721_v48, %v3306_v57 }
 0x728   :  { %v582_v47 = vpop.permute.xlu0 %581 }
 0x729   :  { %v584_v49 = vmul.f32 %v2719_v46, %v582_v47  ;;  %v606_v50 = vpop.permute.xlu1 %605 }
 0x72a   :  { %v608_v51 = vmul.f32 %v2721_v48, %v606_v50 }
 0x72b   :  { %586 = vrot.lane.b32.xlu0 %v584_v49, %s3029_s17 }
 0x72c   :  { %610 = vrot.lane.b32.xlu1 %v608_v51, %s3029_s17 }
 0x79d   :  { %v587_v53 = vpop.permute.xlu0 %586 }
 0x79e   :  { %v3347_v56 = vadd.f32 %v587_v53, %v579_v52  ;;  %v611_v59 = vpop.permute.xlu1 %610 }
 0x79f   :  { %v3349_v58 = vadd.f32 %v611_v59, %v603_v54 }
 0x7a0   :  { %2722 = vtanh.f32 %v3347_v56 }
 0x7a1   :  { %2724 = vtanh.f32 %v3349_v58 }
 0x7aa   :  { %v2723_v60 = vpop.eup %2722 }
 0x7ab   :  { %v2725_v61 = vpop.eup %2724  ;;  %592 = vrot.lane.b32.xlu0 %v2723_v60, %s3028_s3 }
 0x7ac   :  { %616 = vrot.lane.b32.xlu1 %v2725_v61, %s3028_s3 }
 0x81d   :  { %v593_v62 = vpop.permute.xlu0 %592 }
 0x81e   :  { %v595_v55 = vmul.f32 %v2719_v46, %v593_v62  ;;  %v617_v63 = vpop.permute.xlu1 %616 }
 0x81f   :  { %v619_v0 = vmul.f32 %v2721_v48, %v617_v63 }
 0x820   :  { %621 = vrot.lane.b32.xlu0 %v595_v55, %s3029_s17 }
 0x821   :  { %627 = vrot.lane.b32.xlu1 %v619_v0, %s3028_s3  ;;  %v202_v0 = vadd.f32 %v3230_v16, %v3259_v31 }
 0x892   :  { %v622_v57 = vpop.permute.xlu0 %621 }
 0x893   :  { %625 = vst.msk [vmem:[#allocation2 + $0x10] sm:$0xff] %vm391_vm1, %v622_v57  ;;  %v628_v2 = vpop.permute.xlu1 %627 }
 0x894   :  { %631 = vst.msk [vmem:[#allocation2 + $0x28] sm:$0xff] %vm398_vm2, %v628_v2  ;;  %v632_v11 = vsel %vm391_vm1, %v622_v57, %v628_v2  ;;  %v198_v57 = vadd.f32 %v3323_v10, %v3264_v34 }
 0x895   :  { %v633_v15 = vpack.c.bf16 %v632_v11, %v632_v11 }
 0x897   :  { %2528 = vmatmul.mubr.msk.bf16.vlgmr.msra.gmra.mrb[16].mxu1 %vm284_vm3, %v633_v15 }
 0x898   :  { %862 = vmatpush1.bf16.msra.mxu1 %v3158_v6  ;;  %893 = vmatprep.mubr.bf16.mxu1 %v3027_v1 }
 0x899   :  { %863 = vmatprep.subr.bf16.mxu1 %v3163_v7 }
 0x89c   :  { %864 = vmatpush1.bf16.msra.mxu1 %v3171_v8 }
 0x89d   :  { %865 = vmatprep.subr.bf16.mxu1 %v3178_v9 }
 0x8a0   :  { %866 = vmatpush1.bf16.msra.mxu1 %v3190_v12 }
 0x8a1   :  { %867 = vmatprep.subr.bf16.mxu1 %v3196_v13 }
 0x8a4   :  { %868 = vmatpush1.bf16.msra.mxu1 %v3205_v14 }
 0x8a5   :  { %1077 = vmatprep.subr.bf16.mxu1 %v3153_v5 }
 0x96a   :  { %v671_v32 = vpop.f32.mrb[16].mxu1 }
 0x96b   :  { %v682_v33 = vadd.f32 %v671_v32, %v196_v21  ;;  %v673_v35 = vpop.f32.mrb[17].mxu1 }
 0x96c   :  { %v687_v36 = vadd.f32 %v673_v35, %v204_v26  ;;  %v675_v37 = vpop.f32.mrb[18].mxu1 }
 0x96d   :  { %2726 = vtanh.f32 %v682_v33  ;;  %v676_v38 = vpop.f32.mrb[19].mxu1  ;;  %v2529_v5 = vmul.f32 -1.442695, %v682_v33 }
 0x96e   :  { %2728 = vtanh.f32 %v687_v36  ;;  %v2530_v41 = vmul.f32 -1.442695, %v687_v36 }
 0x96f   :  { %2730 = vpow2.f32 %v2529_v5 }
 0x970   :  { %2732 = vpow2.f32 %v2530_v41 }
 0x977   :  { %v2727_v39 = vpop.eup %2726 }
 0x978   :  { %v2729_v40 = vpop.eup %2728  ;;  %697 = vrot.lane.b32.xlu0 %v2727_v39, %s3028_s3 }
 0x979   :  { %721 = vrot.lane.b32.xlu1 %v2729_v40, %s3028_s3  ;;  %v2731_v4 = vpop.eup %2730 }
 0x97a   :  { %v2733_v17 = vpop.eup %2732  ;;  %v691_v42 = vadd.f32 1.0, %v2731_v4 }
 0x97b   :  { %v715_v43 = vadd.f32 1.0, %v2733_v17 }
 0x97c   :  { %2734 = vrcp.f32 %v691_v42 }
 0x97d   :  { %2736 = vrcp.f32 %v715_v43 }
 0x986   :  { %v2735_v23 = vpop.eup %2734 }
 0x987   :  { %v2737_v20 = vpop.eup %2736  ;;  %v695_v47 = vmul.f32 %v2735_v23, %v3347_v56 }
 0x988   :  { %v719_v49 = vmul.f32 %v2737_v20, %v3349_v58 }
 0x9ea   :  { %v698_v28 = vpop.permute.xlu0 %697 }
 0x9eb   :  { %v700_v44 = vmul.f32 %v2735_v23, %v698_v28  ;;  %v722_v45 = vpop.permute.xlu1 %721 }
 0x9ec   :  { %v724_v46 = vmul.f32 %v2737_v20, %v722_v45 }
 0x9ed   :  { %702 = vrot.lane.b32.xlu0 %v700_v44, %s3029_s17 }
 0x9ee   :  { %726 = vrot.lane.b32.xlu1 %v724_v46, %s3029_s17 }
 0xa5f   :  { %v703_v48 = vpop.permute.xlu0 %702 }
 0xa60   :  { %v705_v50 = vadd.f32 %v703_v48, %v695_v47  ;;  %v727_v51 = vpop.permute.xlu1 %726 }
 0xa61   :  { %v729_v52 = vadd.f32 %v727_v51, %v719_v49 }
 0xa62   :  { %2738 = vtanh.f32 %v705_v50 }
 0xa63   :  { %2740 = vtanh.f32 %v729_v52 }
 0xa6c   :  { %v2739_v53 = vpop.eup %2738 }
 0xa6d   :  { %v2741_v54 = vpop.eup %2740  ;;  %708 = vrot.lane.b32.xlu0 %v2739_v53, %s3028_s3 }
 0xa6e   :  { %732 = vrot.lane.b32.xlu1 %v2741_v54, %s3028_s3 }
 0xadf   :  { %v709_v59 = vpop.permute.xlu0 %708 }
 0xae0   :  { %v711_v60 = vmul.f32 %v2735_v23, %v709_v59  ;;  %v733_v61 = vpop.permute.xlu1 %732 }
 0xae1   :  { %v735_v62 = vmul.f32 %v2737_v20, %v733_v61 }
 0xae2   :  { %737 = vrot.lane.b32.xlu0 %v711_v60, %s3029_s17  ;;  %v206_v60 = vadd.f32 %v3234_v18, %v3259_v31 }
 0xae3   :  { %743 = vrot.lane.b32.xlu1 %v735_v62, %s3028_s3 }
 0xb54   :  { %v738_v56 = vpop.permute.xlu0 %737 }
 0xb55   :  { %741 = vst.msk [vmem:[#allocation2 + $0x18] sm:$0xff] %vm391_vm1, %v738_v56  ;;  %v744_v58 = vpop.permute.xlu1 %743 }
 0xb56   :  { %747 = vst.msk [vmem:[#allocation2 + $0x20] sm:$0xff] %vm398_vm2, %v744_v58  ;;  %v748_v55 = vsel %vm391_vm1, %v738_v56, %v744_v58 }
 0xb57   :  { %v749_v63 = vpack.c.bf16 %v748_v55, %v748_v55 }
 0xb59   :  { %2531 = vmatmul.mubr.msk.bf16.vlgmr.msra.gmra.mrb[12].mxu0 %vm284_vm3, %v749_v63 }
 0xb5a   :  { %970 = vmatpush1.bf16.msra.mxu0 %v3158_v6  ;;  %1001 = vmatprep.mubr.bf16.mxu0 %v3027_v1 }
 0xb5b   :  { %971 = vmatprep.subr.bf16.mxu0 %v3163_v7 }
 0xb5e   :  { %972 = vmatpush1.bf16.msra.mxu0 %v3171_v8 }
 0xb5f   :  { %973 = vmatprep.subr.bf16.mxu0 %v3178_v9 }
 0xb62   :  { %974 = vmatpush1.bf16.msra.mxu0 %v3190_v12 }
 0xb63   :  { %975 = vmatprep.subr.bf16.mxu0 %v3196_v13 }
 0xb66   :  { %976 = vmatpush1.bf16.msra.mxu0 %v3205_v14 }
 0xc2c   :  { %v787_v2 = vpop.f32.mrb[12].mxu0 }
 0xc2d   :  { %v795_v11 = vadd.f32 %v787_v2, %v202_v0  ;;  %v789_v15 = vpop.f32.mrb[13].mxu0 }
 0xc2e   :  { %v797_v21 = vadd.f32 %v789_v15, %v198_v57  ;;  %v791_v26 = vpop.f32.mrb[14].mxu0 }
 0xc2f   :  { %2742 = vtanh.f32 %v795_v11  ;;  %v792_v32 = vpop.f32.mrb[15].mxu0  ;;  %v2532_v36 = vmul.f32 -1.442695, %v795_v11 }
 0xc30   :  { %2744 = vtanh.f32 %v797_v21  ;;  %v2533_v37 = vmul.f32 -1.442695, %v797_v21 }
 0xc31   :  { %2746 = vpow2.f32 %v2532_v36 }
 0xc32   :  { %2748 = vpow2.f32 %v2533_v37 }
 0xc39   :  { %v2743_v33 = vpop.eup %2742 }
 0xc3a   :  { %v2745_v35 = vpop.eup %2744  ;;  %807 = vrot.lane.b32.xlu0 %v2743_v33, %s3028_s3 }
 0xc3b   :  { %831 = vrot.lane.b32.xlu1 %v2745_v35, %s3028_s3  ;;  %v2747_v16 = vpop.eup %2746 }
 0xc3c   :  { %v2749_v10 = vpop.eup %2748  ;;  %v801_v38 = vadd.f32 1.0, %v2747_v16 }
 0xc3d   :  { %v825_v39 = vadd.f32 1.0, %v2749_v10 }
 0xc3e   :  { %2750 = vrcp.f32 %v801_v38 }
 0xc3f   :  { %2752 = vrcp.f32 %v825_v39 }
 0xc48   :  { %v2751_v40 = vpop.eup %2750 }
 0xc49   :  { %v2753_v41 = vpop.eup %2752  ;;  %v805_v43 = vmul.f32 %v2751_v40, %v705_v50 }
 0xc4a   :  { %v829_v28 = vmul.f32 %v2753_v41, %v729_v52 }
 0xcac   :  { %v808_v5 = vpop.permute.xlu0 %807 }
 0xcad   :  { %v810_v4 = vmul.f32 %v2751_v40, %v808_v5  ;;  %v832_v17 = vpop.permute.xlu1 %831 }
 0xcae   :  { %v834_v42 = vmul.f32 %v2753_v41, %v832_v17 }
 0xcaf   :  { %812 = vrot.lane.b32.xlu0 %v810_v4, %s3029_s17 }
 0xcb0   :  { %836 = vrot.lane.b32.xlu1 %v834_v42, %s3029_s17 }
 0xd21   :  { %v813_v23 = vpop.permute.xlu0 %812 }
 0xd22   :  { %v815_v20 = vadd.f32 %v813_v23, %v805_v43  ;;  %v837_v44 = vpop.permute.xlu1 %836  ;;  %v212_v43 = vadd.f32 %v3250_v27, %v3259_v31  ;;  %v188_v23 = vadd.f32 %v3245_v25, %v3264_v34 }
 0xd23   :  { %v839_v45 = vadd.f32 %v837_v44, %v829_v28 }
 0xd24   :  { %2754 = vtanh.f32 %v815_v20 }
 0xd25   :  { %2756 = vtanh.f32 %v839_v45 }
 0xd2e   :  { %v2755_v46 = vpop.eup %2754 }
 0xd2f   :  { %v2757_v47 = vpop.eup %2756  ;;  %818 = vrot.lane.b32.xlu0 %v2755_v46, %s3028_s3 }
 0xd30   :  { %842 = vrot.lane.b32.xlu1 %v2757_v47, %s3028_s3 }
 0xda1   :  { %v819_v48 = vpop.permute.xlu0 %818 }
 0xda2   :  { %v821_v49 = vmul.f32 %v2751_v40, %v819_v48  ;;  %v843_v51 = vpop.permute.xlu1 %842 }
 0xda3   :  { %v845_v53 = vmul.f32 %v2753_v41, %v843_v51 }
 0xda4   :  { %847 = vrot.lane.b32.xlu0 %v821_v49, %s3029_s17 }
 0xda5   :  { %852 = vrot.lane.b32.xlu1 %v845_v53, %s3028_s3 }
 0xe16   :  { %v848_v50 = vpop.permute.xlu0 %847 }
 0xe17   :  { %850 = vst.msk [vmem:[#allocation2 + $0x20] sm:$0xff] %vm391_vm1, %v848_v50  ;;  %v853_v52 = vpop.permute.xlu1 %852 }
 0xe18   :  { %855 = vst.msk [vmem:[#allocation2 + $0x18] sm:$0xff] %vm398_vm2, %v853_v52  ;;  %v856_v54 = vsel %vm391_vm1, %v848_v50, %v853_v52 }
 0xe19   :  { %v857_v59 = vpack.c.bf16 %v856_v54, %v856_v54 }
 0xe1b   :  { %2534 = vmatmul.mubr.msk.bf16.vlgmr.msra.gmra.mrb[20].mxu1 %vm284_vm3, %v857_v59 }
 0xe1c   :  { %1078 = vmatpush1.bf16.msra.mxu1 %v3158_v6  ;;  %1109 = vmatprep.mubr.bf16.mxu1 %v3027_v1  ;;  %v194_v6 = vadd.f32 %v3319_v3, %v3264_v34 }
 0xe1d   :  { %1079 = vmatprep.subr.bf16.mxu1 %v3163_v7 }
 0xe20   :  { %1080 = vmatpush1.bf16.msra.mxu1 %v3171_v8 }
 0xe21   :  { %1081 = vmatprep.subr.bf16.mxu1 %v3178_v9 }
 0xe24   :  { %1082 = vmatpush1.bf16.msra.mxu1 %v3190_v12 }
 0xe25   :  { %1083 = vmatprep.subr.bf16.mxu1 %v3196_v13 }
 0xe28   :  { %1084 = vmatpush1.bf16.msra.mxu1 %v3205_v14 }
 0xeee   :  { %v895_v61 = vpop.f32.mrb[20].mxu1 }
 0xeef   :  { %v903_v62 = vadd.f32 %v895_v61, %v206_v60  ;;  %v897_v56 = vpop.f32.mrb[21].mxu1 }
 0xef0   :  { %v905_v7 = vadd.f32 %v897_v56, %v194_v6  ;;  %v899_v58 = vpop.f32.mrb[22].mxu1 }
 0xef1   :  { %2758 = vtanh.f32 %v903_v62  ;;  %v900_v8 = vpop.f32.mrb[23].mxu1  ;;  %v2535_v13 = vmul.f32 -1.442695, %v903_v62 }
 0xef2   :  { %2760 = vtanh.f32 %v905_v7  ;;  %v2536_v14 = vmul.f32 -1.442695, %v905_v7 }
 0xef3   :  { %2762 = vpow2.f32 %v2535_v13 }
 0xef4   :  { %2764 = vpow2.f32 %v2536_v14 }
 0xefb   :  { %v2759_v9 = vpop.eup %2758 }
 0xefc   :  { %v2761_v12 = vpop.eup %2760  ;;  %915 = vrot.lane.b32.xlu0 %v2759_v9, %s3028_s3 }
 0xefd   :  { %939 = vrot.lane.b32.xlu1 %v2761_v12, %s3028_s3  ;;  %v2763_v18 = vpop.eup %2762 }
 0xefe   :  { %v2765_v3 = vpop.eup %2764  ;;  %v909_v55 = vadd.f32 1.0, %v2763_v18 }
 0xeff   :  { %v933_v63 = vadd.f32 1.0, %v2765_v3 }
 0xf00   :  { %2766 = vrcp.f32 %v909_v55 }
 0xf01   :  { %2768 = vrcp.f32 %v933_v63 }
 0xf0a   :  { %v2767_v0 = vpop.eup %2766 }
 0xf0b   :  { %v2769_v2 = vpop.eup %2768  ;;  %v913_v26 = vmul.f32 %v2767_v0, %v815_v20 }
 0xf0c   :  { %v937_v33 = vmul.f32 %v2769_v2, %v839_v45 }
 0xf6e   :  { %v916_v57 = vpop.permute.xlu0 %915 }
 0xf6f   :  { %v918_v11 = vmul.f32 %v2767_v0, %v916_v57  ;;  %v940_v15 = vpop.permute.xlu1 %939 }
 0xf70   :  { %v942_v21 = vmul.f32 %v2769_v2, %v940_v15  ;;  %v216_v15 = vadd.f32 %v3255_v30, %v3259_v31 }
 0xf71   :  { %920 = vrot.lane.b32.xlu0 %v918_v11, %s3029_s17 }
 0xf72   :  { %944 = vrot.lane.b32.xlu1 %v942_v21, %s3029_s17  ;;  %v184_v21 = vadd.f32 %v3240_v22, %v3264_v34 }
 0xfe3   :  { %v921_v32 = vpop.permute.xlu0 %920 }
 0xfe4   :  { %v923_v35 = vadd.f32 %v921_v32, %v913_v26  ;;  %v945_v36 = vpop.permute.xlu1 %944 }
 0xfe5   :  { %v947_v37 = vadd.f32 %v945_v36, %v937_v33 }
 0xfe6   :  { %2770 = vtanh.f32 %v923_v35 }
 0xfe7   :  { %2772 = vtanh.f32 %v947_v37 }
 0xff0   :  { %v2771_v16 = vpop.eup %2770 }
 0xff1   :  { %v2773_v10 = vpop.eup %2772  ;;  %926 = vrot.lane.b32.xlu0 %v2771_v16, %s3028_s3 }
 0xff2   :  { %950 = vrot.lane.b32.xlu1 %v2773_v10, %s3028_s3 }
0x1063   :  { %v927_v38 = vpop.permute.xlu0 %926 }
0x1064   :  { %v929_v39 = vmul.f32 %v2767_v0, %v927_v38  ;;  %v951_v40 = vpop.permute.xlu1 %950 }
0x1065   :  { %v953_v5 = vmul.f32 %v2769_v2, %v951_v40 }
0x1066   :  { %955 = vrot.lane.b32.xlu0 %v929_v39, %s3029_s17 }
0x1067   :  { %960 = vrot.lane.b32.xlu1 %v953_v5, %s3028_s3 }
0x10d8   :  { %v956_v41 = vpop.permute.xlu0 %955 }
0x10d9   :  { %958 = vst.msk [vmem:[#allocation2 + $0x28] sm:$0xff] %vm391_vm1, %v956_v41  ;;  %v961_v4 = vpop.permute.xlu1 %960 }
0x10da   :  { %963 = vst.msk [vmem:[#allocation2 + $0x10] sm:$0xff] %vm398_vm2, %v961_v4  ;;  %v964_v17 = vsel %vm391_vm1, %v956_v41, %v961_v4 }
0x10db   :  { %v965_v42 = vpack.c.bf16 %v964_v17, %v964_v17 }
0x10dd   :  { %2537 = vmatmul.mubr.msk.bf16.vlgmr.msra.gmra.mrb[16].mxu0 %vm284_vm3, %v965_v42 }
0x10de   :  { %1296 = vmatprep.mubr.bf16.mxu0 %v3027_v1 }
0x11b0   :  { %v1003_v28 = vpop.f32.mrb[16].mxu0 }
0x11b1   :  { %v1011_v20 = vadd.f32 %v1003_v28, %v212_v43  ;;  %v1005_v44 = vpop.f32.mrb[17].mxu0 }
0x11b2   :  { %v1013_v45 = vadd.f32 %v1005_v44, %v188_v23  ;;  %v1007_v46 = vpop.f32.mrb[18].mxu0 }
0x11b3   :  { %2774 = vtanh.f32 %v1011_v20  ;;  %v1008_v47 = vpop.f32.mrb[19].mxu0  ;;  %v2538_v51 = vmul.f32 -1.442695, %v1011_v20  ;;  %v2650_v46 = vld [vmem:[#allocation8] ss:$8 sps:$4 sm:$0xff]  }
0x11b4   :  { %2776 = vtanh.f32 %v1013_v45  ;;  %v2539_v53 = vmul.f32 -1.442695, %v1013_v45  ;;  %v2652_v47 = vld [vmem:[#allocation8 + $0x4] ss:$8 sps:$4 sm:$0xff]  }
0x11b5   :  { %2778 = vpow2.f32 %v2538_v51  ;;  %v2658_v51 = vld [vmem:[#allocation8 + $0x14] ss:$8 sps:$4 sm:$0xff]   ;;  %1264 = vmatprep.subr.bf16.mxu0 %v2652_v47 }
0x11b6   :  { %2780 = vpow2.f32 %v2539_v53  ;;  %1265 = vmatpush1.bf16.msra.mxu0 %v2650_v46  ;;  %v2656_v53 = vld [vmem:[#allocation8 + $0x10] ss:$8 sps:$4 sm:$0xff]  }
0x11b7   :  { %1266 = vmatprep.subr.bf16.mxu0 %v2658_v51 }
0x11ba   :  { %1267 = vmatpush1.bf16.msra.mxu0 %v2656_v53 }
0x11bd   :  { %v2775_v48 = vpop.eup %2774 }
0x11be   :  { %v2777_v49 = vpop.eup %2776  ;;  %1023 = vrot.lane.b32.xlu0 %v2775_v48, %s3028_s3  ;;  %v3462_v48 = vld [vmem:[#allocation10 + $0x4] ss:$8 sps:$4 sm:$0xff]  }
0x11bf   :  { %1047 = vrot.lane.b32.xlu1 %v2777_v49, %s3028_s3  ;;  %v2779_v27 = vpop.eup %2778  ;;  %v3464_v49 = vld [vmem:[#allocation10] ss:$8 sps:$4 sm:$0xff]   ;;  %1401 = vmatprep.subr.bf16.mxu1 %v3462_v48 }
0x11c0   :  { %v2781_v25 = vpop.eup %2780  ;;  %v1017_v50 = vadd.f32 1.0, %v2779_v27 }
0x11c1   :  { %v1041_v52 = vadd.f32 1.0, %v2781_v25 }
0x11c2   :  { %2782 = vrcp.f32 %v1017_v50  ;;  %v3470_v50 = vld [vmem:[#allocation10 + $0x14] ss:$8 sps:$4 sm:$0xff]  }
0x11c3   :  { %2784 = vrcp.f32 %v1041_v52  ;;  %v3472_v52 = vld [vmem:[#allocation10 + $0x10] ss:$8 sps:$4 sm:$0xff]  }
0x11cc   :  { %v2783_v54 = vpop.eup %2782 }
0x11cd   :  { %v2785_v60 = vpop.eup %2784  ;;  %v1021_v56 = vmul.f32 %v2783_v54, %v923_v35 }
0x11ce   :  { %v1045_v58 = vmul.f32 %v2785_v60, %v947_v37 }
0x1230   :  { %v1024_v59 = vpop.permute.xlu0 %1023 }
0x1231   :  { %v1026_v6 = vmul.f32 %v2783_v54, %v1024_v59  ;;  %v1048_v61 = vpop.permute.xlu1 %1047  ;;  %v2664_v59 = vld [vmem:[#allocation8 + $0x24] ss:$8 sps:$4 sm:$0xff]  }
0x1232   :  { %v1050_v62 = vmul.f32 %v2785_v60, %v1048_v61  ;;  %v2670_v61 = vld [vmem:[#allocation8 + $0x34] ss:$8 sps:$4 sm:$0xff]   ;;  %1268 = vmatprep.subr.bf16.mxu0 %v2664_v59 }
0x1233   :  { %1028 = vrot.lane.b32.xlu0 %v1026_v6, %s3029_s17  ;;  %v3478_v6 = vld [vmem:[#allocation10 + $0x20] ss:$8 sps:$4 sm:$0xff]  }
0x1234   :  { %1052 = vrot.lane.b32.xlu1 %v1050_v62, %s3029_s17  ;;  %v3481_v62 = vld [vmem:[#allocation10 + $0x34] ss:$8 sps:$4 sm:$0xff]  }
0x12a5   :  { %v1029_v7 = vpop.permute.xlu0 %1028 }
0x12a6   :  { %v1031_v8 = vadd.f32 %v1029_v7, %v1021_v56  ;;  %v1053_v9 = vpop.permute.xlu1 %1052  ;;  %v2668_v56 = vld [vmem:[#allocation8 + $0x30] ss:$8 sps:$4 sm:$0xff]  }
0x12a7   :  { %v1055_v12 = vadd.f32 %v1053_v9, %v1045_v58  ;;  %v3484_v7 = vld [vmem:[#allocation10 + $0x30] ss:$8 sps:$4 sm:$0xff]  }
0x12a8   :  { %2786 = vtanh.f32 %v1031_v8 }
0x12a9   :  { %2788 = vtanh.f32 %v1055_v12 }
0x12b2   :  { %v2787_v13 = vpop.eup %2786 }
0x12b3   :  { %v2789_v14 = vpop.eup %2788  ;;  %1034 = vrot.lane.b32.xlu0 %v2787_v13, %s3028_s3 }
0x12b4   :  { %1058 = vrot.lane.b32.xlu1 %v2789_v14, %s3028_s3 }
0x1325   :  { %v1035_v18 = vpop.permute.xlu0 %1034 }
0x1326   :  { %v1037_v3 = vmul.f32 %v2783_v54, %v1035_v18  ;;  %v1059_v55 = vpop.permute.xlu1 %1058  ;;  %v2662_v54 = vld [vmem:[#allocation8 + $0x20] ss:$8 sps:$4 sm:$0xff]  }
0x1327   :  { %v1061_v63 = vmul.f32 %v2785_v60, %v1059_v55  ;;  %v3475_v60 = vld [vmem:[#allocation10 + $0x24] ss:$8 sps:$4 sm:$0xff]   ;;  %1269 = vmatpush1.bf16.msra.mxu0 %v2662_v54 }
0x1328   :  { %1063 = vrot.lane.b32.xlu0 %v1037_v3, %s3029_s17  ;;  %1270 = vmatprep.subr.bf16.mxu0 %v2670_v61 }
0x1329   :  { %1068 = vrot.lane.b32.xlu1 %v1061_v63, %s3028_s3  ;;  %v1182_v63 = vld [vmem:[#allocation2 + $0x10] sm:$0xff] }
0x132b   :  { %1271 = vmatpush1.bf16.msra.mxu0 %v2668_v56 }
0x132c   :  { %1620 = vmatprep.subr.bf16.mxu0 %v3462_v48 }
0x139a   :  { %v1064_v0 = vpop.permute.xlu0 %1063 }
0x139b   :  { %1066 = vst.msk [vmem:[#allocation2 + $0x30] sm:$0xff] %vm391_vm1, %v1064_v0  ;;  %v1069_v57 = vpop.permute.xlu1 %1068 }
0x139c   :  { %1071 = vst.msk [vmem:[#allocation2 + $0x8] sm:$0xff] %vm398_vm2, %v1069_v57  ;;  %v1072_v2 = vsel %vm391_vm1, %v1064_v0, %v1069_v57  ;;  %v1183_v0 = vld [vmem:[#allocation2 + $0x18] sm:$0xff] }
0x139d   :  { %v1073_v11 = vpack.c.bf16 %v1072_v2, %v1072_v2  ;;  %v1189_v57 = vpack.c.bf16 %v1183_v0, %v1182_v63  ;;  %v1185_v2 = vld [vmem:[#allocation2 + $0x28] sm:$0xff] }
0x139f   :  { %2540 = vmatmul.mubr.msk.bf16.vlgmr.msra.gmra.mrb[24].mxu1 %vm284_vm3, %v1073_v11  ;;  %v1184_v11 = vld [vmem:[#allocation2 + $0x20] sm:$0xff] }
0x13a0   :  { %1433 = vmatprep.mubr.bf16.mxu1 %v3027_v1  ;;  %1402 = vmatpush1.bf16.msra.mxu1 %v3464_v49 }
0x13a1   :  { %1403 = vmatprep.subr.bf16.mxu1 %v3470_v50 }
0x13a3   :  { %v1181_v3 = vld [vmem:[#allocation2 + $0x8] sm:$0xff] }
0x13a4   :  { %1404 = vmatpush1.bf16.msra.mxu1 %v3472_v52 }
0x13a5   :  { %1405 = vmatprep.subr.bf16.mxu1 %v3475_v60 }
0x13a8   :  { %1406 = vmatpush1.bf16.msra.mxu1 %v3478_v6 }
0x13a9   :  { %1407 = vmatprep.subr.bf16.mxu1 %v3481_v62 }
0x13ac   :  { %1408 = vmatpush1.bf16.msra.mxu1 %v3484_v7 }
0x13ad   :  { %1510 = vmatprep.subr.bf16.mxu1 %v3462_v48 }
0x13af   :  { %1434 = vmatmul.mubr.bf16.vlgmr.msra.gmra.mrb[28].mxu1 %v3027_v1 }
0x13b0   :  { %1511 = vmatpush1.bf16.msra.mxu1 %v3464_v49  ;;  %1542 = vmatprep.mubr.bf16.mxu1 %v3027_v1 }
0x13b1   :  { %1512 = vmatprep.subr.bf16.mxu1 %v3470_v50 }
0x13b4   :  { %1513 = vmatpush1.bf16.msra.mxu1 %v3472_v52 }
0x13b5   :  { %1514 = vmatprep.subr.bf16.mxu1 %v3475_v60 }
0x13b8   :  { %1515 = vmatpush1.bf16.msra.mxu1 %v3478_v6 }
0x13b9   :  { %1516 = vmatprep.subr.bf16.mxu1 %v3481_v62 }
0x13bc   :  { %1517 = vmatpush1.bf16.msra.mxu1 %v3484_v7 }
0x13bd   :  { %1730 = vmatprep.subr.bf16.mxu1 %v3462_v48 }
0x1472   :  { %v1111_v26 = vpop.f32.mrb[24].mxu1 }
0x1473   :  { %v1119_v32 = vadd.f32 %v1111_v26, %v216_v15  ;;  %v1113_v33 = vpop.f32.mrb[25].mxu1  ;;  %v1190_v15 = vpack.c.bf16 %v1185_v2, %v1184_v11  ;;  %v1186_v26 = vld [vmem:[#allocation2 + $0x30] sm:$0xff] }
0x1474   :  { %v1121_v35 = vadd.f32 %v1113_v33, %v184_v21  ;;  %v1115_v36 = vpop.f32.mrb[26].mxu1 }
0x1475   :  { %2790 = vtanh.f32 %v1119_v32  ;;  %v1116_v37 = vpop.f32.mrb[27].mxu1  ;;  %v2541_v38 = vmul.f32 -1.442695, %v1119_v32 }
0x1476   :  { %2792 = vtanh.f32 %v1121_v35  ;;  %v2542_v39 = vmul.f32 -1.442695, %v1121_v35 }
0x1477   :  { %2794 = vpow2.f32 %v2541_v38 }
0x1478   :  { %2796 = vpow2.f32 %v2542_v39 }
0x147f   :  { %v2791_v16 = vpop.eup %2790 }
0x1480   :  { %v2793_v10 = vpop.eup %2792  ;;  %1131 = vrot.lane.b32.xlu1 %v2791_v16, %s3028_s3  ;;  %v1200_v16 = vld [vmem:[%s3746_s6] sm:$0x3] }
0x1481   :  { %1155 = vrot.lane.b32.xlu0 %v2793_v10, %s3028_s3  ;;  %v2795_v30 = vpop.eup %2794  ;;  %v1205_v10 = vrot.slane %v1200_v16, %v96_v24  ;;  %v1209_v38 = vrot.slane %v1200_v16, %v100_v29 }
0x1482   :  { %v2797_v22 = vpop.eup %2796  ;;  %v1125_v31 = vadd.f32 1.0, %v2795_v30  ;;  %v1435_v33 = vpop.f32.mrb[28].mxu1 }
0x1483   :  { %v1149_v34 = vadd.f32 1.0, %v2797_v22  ;;  %v1437_v35 = vpop.f32.mrb[29].mxu1 }
0x1484   :  { %2798 = vrcp.f32 %v1125_v31  ;;  %v1439_v36 = vpop.f32.mrb[30].mxu1 }
0x1485   :  { %2800 = vrcp.f32 %v1149_v34  ;;  %v1440_v37 = vpop.f32.mrb[31].mxu1 }
0x148e   :  { %v2799_v40 = vpop.eup %2798 }
0x148f   :  { %v2801_v41 = vpop.eup %2800  ;;  %v1129_v43 = vmul.f32 %v2799_v40, %v1031_v8 }
0x1490   :  { %v1153_v28 = vmul.f32 %v2801_v41, %v1055_v12 }
0x14f2   :  { %v1132_v5 = vpop.permute.xlu1 %1131 }
0x14f3   :  { %v1134_v4 = vmul.f32 %v2799_v40, %v1132_v5  ;;  %v1156_v17 = vpop.permute.xlu0 %1155 }
0x14f4   :  { %v1158_v42 = vmul.f32 %v2801_v41, %v1156_v17 }
0x14f5   :  { %1136 = vrot.lane.b32.xlu1 %v1134_v4, %s3029_s17 }
0x14f6   :  { %1160 = vrot.lane.b32.xlu0 %v1158_v42, %s3029_s17 }
0x1567   :  { %v1137_v23 = vpop.permute.xlu1 %1136 }
0x1568   :  { %v1139_v20 = vadd.f32 %v1137_v23, %v1129_v43  ;;  %v1161_v44 = vpop.permute.xlu0 %1160 }
0x1569   :  { %v1163_v45 = vadd.f32 %v1161_v44, %v1153_v28 }
0x156a   :  { %2802 = vtanh.f32 %v1139_v20 }
0x156b   :  { %2804 = vtanh.f32 %v1163_v45 }
0x1574   :  { %v2803_v27 = vpop.eup %2802 }
0x1575   :  { %v2805_v25 = vpop.eup %2804  ;;  %1142 = vrot.lane.b32.xlu1 %v2803_v27, %s3028_s3 }
0x1576   :  { %1166 = vrot.lane.b32.xlu0 %v2805_v25, %s3028_s3 }
0x15e7   :  { %v1143_v58 = vpop.permute.xlu1 %1142 }
0x15e8   :  { %v1145_v8 = vmul.f32 %v2799_v40, %v1143_v58  ;;  %v1167_v9 = vpop.permute.xlu0 %1166 }
0x15e9   :  { %v1169_v12 = vmul.f32 %v2801_v41, %v1167_v9 }
0x15ea   :  { %1171 = vrot.lane.b32.xlu1 %v1145_v8, %s3029_s17 }
0x15eb   :  { %1176 = vrot.lane.b32.xlu0 %v1169_v12, %s3028_s3 }
0x165c   :  { %v1172_v13 = vpop.permute.xlu1 %1171 }
0x165d   :  { %1174 = vst.msk [vmem:[#allocation2 + $0x38] sm:$0xff] %vm391_vm1, %v1172_v13  ;;  %v1177_v14 = vpop.permute.xlu0 %1176 }
0x165e   :  { %1179 = vst.msk [vmem:[#allocation2] sm:$0xff] %vm398_vm2, %v1177_v14 }
0x1664   :  { %v1187_v21 = vld [vmem:[#allocation2 + $0x38] sm:$0xff] }
0x1665   :  { %v1180_v18 = vld [vmem:[#allocation2] sm:$0xff]  ;;  %v1191_v32 = vpack.c.bf16 %v1187_v21, %v1186_v26 }
0x1666   :  { %v1188_v55 = vpack.c.bf16 %v1181_v3, %v1180_v18 }
0x1668   :  { %2551 = vmatmul.mubr.msk.bf16.vlgmr.msra.gmra.mrb[20].mxu0 %vm284_vm3, %v1188_v55 }
0x1669   :  { %1306 = vmatprep.mubr.bf16.mxu0 %v3027_v1  ;;  %1621 = vmatpush1.bf16.msra.mxu0 %v3464_v49 }
0x166a   :  { %1622 = vmatprep.subr.bf16.mxu0 %v3470_v50 }
0x166d   :  { %1623 = vmatpush1.bf16.msra.mxu0 %v3472_v52 }
0x166e   :  { %1624 = vmatprep.subr.bf16.mxu0 %v3475_v60 }
0x1670   :  { %2552 = vmatmul.mubr.msk.bf16.gmra.mrb[24].mxu0 %vm284_vm3, %v1189_v57 }
0x1671   :  { %1316 = vmatprep.mubr.bf16.mxu0 %v3027_v1  ;;  %1625 = vmatpush1.bf16.msra.mxu0 %v3478_v6 }
0x1672   :  { %1626 = vmatprep.subr.bf16.mxu0 %v3481_v62 }
0x1675   :  { %1627 = vmatpush1.bf16.msra.mxu0 %v3484_v7 }
0x1676   :  { %1840 = vmatprep.subr.bf16.mxu0 %v3462_v48 }
0x1678   :  { %2553 = vmatmul.mubr.msk.bf16.gmra.mrb[28].mxu0 %vm284_vm3, %v1190_v15 }
0x1679   :  { %1326 = vmatprep.mubr.bf16.mxu0 %v3027_v1 }
0x1680   :  { %2554 = vmatmul.mubr.msk.bf16.gmra.mrb[32].mxu0 %vm284_vm3, %v1191_v32 }
0x1681   :  { %1652 = vmatprep.mubr.bf16.mxu0 %v3027_v1 }
0x173b   :  { %v1298_v39 = vpop.f32.mrb[20].mxu0 }
0x173c   :  { %v1299_v30 = vadd.f32 %v1298_v39, %v1205_v10  ;;  %v1300_v22 = vpop.f32.mrb[21].mxu0 }
0x173d   :  { %v3527_v31 = vadd.f32 %v1300_v22, %v1209_v38  ;;  %v1302_v34 = vpop.f32.mrb[22].mxu0 }
0x173e   :  { %v3529_v40 = vadd.f32 %v1302_v34, %v1205_v10  ;;  %v1443_v5 = vadd.f32 %v1435_v33, %v1299_v30  ;;  %v1304_v41 = vpop.f32.mrb[23].mxu0 }
0x173f   :  { %v3531_v4 = vadd.f32 %v1304_v41, %v1209_v38 }
0x1740   :  { %2806 = vtanh.f32 %v1443_v5  ;;  %v2563_v18 = vmul.f32 -1.442695, %v1443_v5 }
0x1743   :  { %v1308_v17 = vpop.f32.mrb[24].mxu0 }
0x1744   :  { %v3533_v42 = vadd.f32 %v1308_v17, %v1205_v10  ;;  %v1310_v24 = vpop.f32.mrb[25].mxu0 }
0x1745   :  { %v3535_v43 = vadd.f32 %v1310_v24, %v1209_v38  ;;  %v1312_v19 = vpop.f32.mrb[26].mxu0 }
0x1746   :  { %v3537_v29 = vadd.f32 %v1312_v19, %v1205_v10  ;;  %v1314_v23 = vpop.f32.mrb[27].mxu0 }
0x1747   :  { %v3539_v28 = vadd.f32 %v1314_v23, %v1209_v38 }
0x174a   :  { %v2807_v20 = vpop.eup %2806 }
0x174b   :  { %v1318_v44 = vpop.f32.mrb[28].mxu0  ;;  %1455 = vrot.lane.b32.xlu0 %v2807_v20, %s3028_s3 }
0x174c   :  { %v3542_v45 = vadd.f32 %v1318_v44, %v1205_v10  ;;  %v1320_v46 = vpop.f32.mrb[29].mxu0 }
0x174d   :  { %v3544_v47 = vadd.f32 %v1320_v46, %v1209_v38  ;;  %v1322_v51 = vpop.f32.mrb[30].mxu0 }
0x174e   :  { %v3546_v53 = vadd.f32 %v1322_v51, %v1205_v10  ;;  %v1324_v27 = vpop.f32.mrb[31].mxu0 }
0x174f   :  { %v3548_v25 = vadd.f32 %v1324_v27, %v1209_v38 }
0x1753   :  { %v1328_v54 = vpop.f32.mrb[32].mxu0 }
0x1754   :  { %v3550_v59 = vadd.f32 %v1328_v54, %v1205_v10  ;;  %v1330_v61 = vpop.f32.mrb[33].mxu0 }
0x1755   :  { %v3552_v56 = vadd.f32 %v1330_v61, %v1209_v38  ;;  %v1332_v58 = vpop.f32.mrb[34].mxu0 }
0x1756   :  { %v3554_v8 = vadd.f32 %v1332_v58, %v1205_v10  ;;  %v1334_v9 = vpop.f32.mrb[35].mxu0 }
0x1757   :  { %v1335_v12 = vadd.f32 %v1334_v9, %v1209_v38 }
0x1759   :  { %v1445_v13 = vadd.f32 %v1437_v35, %v1335_v12 }
0x175b   :  { %2808 = vtanh.f32 %v1445_v13  ;;  %v2564_v63 = vmul.f32 -1.442695, %v1445_v13 }
0x175c   :  { %2810 = vpow2.f32 %v2563_v18 }
0x1765   :  { %v2809_v14 = vpop.eup %2808 }
0x1766   :  { %1479 = vrot.lane.b32.xlu1 %v2809_v14, %s3028_s3  ;;  %v2811_v3 = vpop.eup %2810 }
0x1767   :  { %v1449_v55 = vadd.f32 1.0, %v2811_v3 }
0x1769   :  { %2812 = vrcp.f32 %v1449_v55 }
0x176a   :  { %2814 = vpow2.f32 %v2564_v63 }
0x1773   :  { %v2813_v0 = vpop.eup %2812 }
0x1774   :  { %v2815_v11 = vpop.eup %2814  ;;  %v1453_v33 = vmul.f32 0.0, %v2813_v0 }
0x1775   :  { %v1473_v15 = vadd.f32 1.0, %v2815_v11 }
0x1777   :  { %2816 = vrcp.f32 %v1473_v15 }
0x1781   :  { %v2817_v21 = vpop.eup %2816 }
0x1782   :  { %v1477_v16 = vmul.f32 0.0, %v2817_v21 }
0x17bd   :  { %v1456_v57 = vpop.permute.xlu0 %1455 }
0x17be   :  { %v1458_v2 = vmul.f32 %v2813_v0, %v1456_v57 }
0x17c0   :  { %1460 = vrot.lane.b32.xlu0 %v1458_v2, %s3029_s17 }
0x17d8   :  { %v1480_v26 = vpop.permute.xlu1 %1479 }
0x17d9   :  { %v1482_v32 = vmul.f32 %v2817_v21, %v1480_v26 }
0x17db   :  { %1484 = vrot.lane.b32.xlu1 %v1482_v32, %s3029_s17 }
0x1832   :  { %v1461_v35 = vpop.permute.xlu0 %1460 }
0x1833   :  { %v1463_v36 = vadd.f32 %v1461_v35, %v1453_v33 }
0x1835   :  { %2818 = vtanh.f32 %v1463_v36 }
0x183f   :  { %v2819_v37 = vpop.eup %2818 }
0x1840   :  { %1466 = vrot.lane.b32.xlu0 %v2819_v37, %s3028_s3 }
0x184d   :  { %v1485_v10 = vpop.permute.xlu1 %1484 }
0x184e   :  { %v1487_v38 = vadd.f32 %v1485_v10, %v1477_v16 }
0x1850   :  { %2820 = vtanh.f32 %v1487_v38 }
0x185a   :  { %v2821_v39 = vpop.eup %2820 }
0x185b   :  { %1490 = vrot.lane.b32.xlu1 %v2821_v39, %s3028_s3 }
0x18b2   :  { %v1467_v30 = vpop.permute.xlu0 %1466 }
0x18b3   :  { %v1469_v22 = vmul.f32 %v2813_v0, %v1467_v30 }
0x18b5   :  { %1495 = vrot.lane.b32.xlu0 %v1469_v22, %s3029_s17 }
0x18cd   :  { %v1491_v34 = vpop.permute.xlu1 %1490 }
0x18ce   :  { %v1493_v5 = vmul.f32 %v2817_v21, %v1491_v34 }
0x18d0   :  { %1500 = vrot.lane.b32.xlu1 %v1493_v5, %s3028_s3 }
0x1927   :  { %v1496_v41 = vpop.permute.xlu0 %1495 }
0x1928   :  { %1498 = vst.msk [vmem:[#allocation3] sm:$0xff] %vm391_vm1, %v1496_v41 }
0x1942   :  { %v1501_v17 = vpop.permute.xlu1 %1500 }
0x1943   :  { %1504 = vst.msk [vmem:[#allocation3 + $0x38] sm:$0xff] %vm398_vm2, %v1501_v17  ;;  %v1505_v24 = vsel %vm391_vm1, %v1496_v41, %v1501_v17 }
0x1944   :  { %v1506_v19 = vpack.c.bf16 %v1505_v24, %v1505_v24 }
0x1946   :  { %2565 = vmatmul.mubr.msk.bf16.vlgmr.msra.gmra.mrb[32].mxu1 %vm284_vm3, %v1506_v19 }
0x1947   :  { %1731 = vmatpush1.bf16.msra.mxu1 %v3464_v49  ;;  %1762 = vmatprep.mubr.bf16.mxu1 %v3027_v1 }
0x1948   :  { %1732 = vmatprep.subr.bf16.mxu1 %v3470_v50 }
0x194b   :  { %1733 = vmatpush1.bf16.msra.mxu1 %v3472_v52 }
0x194c   :  { %1734 = vmatprep.subr.bf16.mxu1 %v3475_v60 }
0x194f   :  { %1735 = vmatpush1.bf16.msra.mxu1 %v3478_v6 }
0x1950   :  { %1736 = vmatprep.subr.bf16.mxu1 %v3481_v62 }
0x1953   :  { %1737 = vmatpush1.bf16.msra.mxu1 %v3484_v7 }
0x1954   :  { %1948 = vmatprep.subr.bf16.mxu1 %v3462_v48 }
0x1a19   :  { %v1544_v23 = vpop.f32.mrb[32].mxu1 }
0x1a1a   :  { %v1552_v20 = vadd.f32 %v1544_v23, %v3529_v40  ;;  %v1546_v44 = vpop.f32.mrb[33].mxu1 }
0x1a1b   :  { %v1554_v46 = vadd.f32 %v1546_v44, %v3552_v56  ;;  %v1548_v51 = vpop.f32.mrb[34].mxu1 }
0x1a1c   :  { %2822 = vtanh.f32 %v1552_v20  ;;  %v1549_v27 = vpop.f32.mrb[35].mxu1  ;;  %v2566_v58 = vmul.f32 -1.442695, %v1552_v20 }
0x1a1d   :  { %2824 = vtanh.f32 %v1554_v46  ;;  %v2567_v9 = vmul.f32 -1.442695, %v1554_v46 }
0x1a1e   :  { %2826 = vpow2.f32 %v2566_v58 }
0x1a1f   :  { %2828 = vpow2.f32 %v2567_v9 }
0x1a26   :  { %v2823_v54 = vpop.eup %2822 }
0x1a27   :  { %v2825_v61 = vpop.eup %2824  ;;  %1564 = vrot.lane.b32.xlu0 %v2823_v54, %s3028_s3 }
0x1a28   :  { %1588 = vrot.lane.b32.xlu1 %v2825_v61, %s3028_s3  ;;  %v2827_v12 = vpop.eup %2826 }
0x1a29   :  { %v2829_v13 = vpop.eup %2828  ;;  %v1558_v40 = vadd.f32 1.0, %v2827_v12 }
0x1a2a   :  { %v1582_v14 = vadd.f32 1.0, %v2829_v13 }
0x1a2b   :  { %2830 = vrcp.f32 %v1558_v40 }
0x1a2c   :  { %2832 = vrcp.f32 %v1582_v14 }
0x1a35   :  { %v2831_v56 = vpop.eup %2830 }
0x1a36   :  { %v2833_v3 = vpop.eup %2832  ;;  %v1562_v57 = vmul.f32 %v2831_v56, %v1463_v36 }
0x1a37   :  { %v1586_v11 = vmul.f32 %v2833_v3, %v1487_v38 }
0x1a99   :  { %v1565_v18 = vpop.permute.xlu0 %1564 }
0x1a9a   :  { %v1567_v55 = vmul.f32 %v2831_v56, %v1565_v18  ;;  %v1589_v63 = vpop.permute.xlu1 %1588 }
0x1a9b   :  { %v1591_v0 = vmul.f32 %v2833_v3, %v1589_v63 }
0x1a9c   :  { %1569 = vrot.lane.b32.xlu0 %v1567_v55, %s3029_s17 }
0x1a9d   :  { %1593 = vrot.lane.b32.xlu1 %v1591_v0, %s3029_s17 }
0x1b0e   :  { %v1570_v2 = vpop.permute.xlu0 %1569 }
0x1b0f   :  { %v1572_v15 = vadd.f32 %v1570_v2, %v1562_v57  ;;  %v1594_v21 = vpop.permute.xlu1 %1593 }
0x1b10   :  { %v1596_v26 = vadd.f32 %v1594_v21, %v1586_v11 }
0x1b11   :  { %2834 = vtanh.f32 %v1572_v15 }
0x1b12   :  { %2836 = vtanh.f32 %v1596_v26 }
0x1b1b   :  { %v2835_v32 = vpop.eup %2834 }
0x1b1c   :  { %v2837_v33 = vpop.eup %2836  ;;  %1575 = vrot.lane.b32.xlu0 %v2835_v32, %s3028_s3 }
0x1b1d   :  { %1599 = vrot.lane.b32.xlu1 %v2837_v33, %s3028_s3 }
0x1b8e   :  { %v1576_v35 = vpop.permute.xlu0 %1575 }
0x1b8f   :  { %v1578_v37 = vmul.f32 %v2831_v56, %v1576_v35  ;;  %v1600_v16 = vpop.permute.xlu1 %1599 }
0x1b90   :  { %v1602_v10 = vmul.f32 %v2833_v3, %v1600_v16 }
0x1b91   :  { %1604 = vrot.lane.b32.xlu0 %v1578_v37, %s3029_s17 }
0x1b92   :  { %1610 = vrot.lane.b32.xlu1 %v1602_v10, %s3028_s3 }
0x1c03   :  { %v1605_v36 = vpop.permute.xlu0 %1604 }
0x1c04   :  { %1608 = vst.msk [vmem:[#allocation3 + $0x8] sm:$0xff] %vm391_vm1, %v1605_v36  ;;  %v1611_v38 = vpop.permute.xlu1 %1610 }
0x1c05   :  { %1614 = vst.msk [vmem:[#allocation3 + $0x30] sm:$0xff] %vm398_vm2, %v1611_v38  ;;  %v1615_v39 = vsel %vm391_vm1, %v1605_v36, %v1611_v38 }
0x1c06   :  { %v1616_v30 = vpack.c.bf16 %v1615_v39, %v1615_v39 }
0x1c08   :  { %2568 = vmatmul.mubr.msk.bf16.vlgmr.msra.gmra.mrb[36].mxu0 %vm284_vm3, %v1616_v30 }
0x1c09   :  { %1841 = vmatpush1.bf16.msra.mxu0 %v3464_v49  ;;  %1872 = vmatprep.mubr.bf16.mxu0 %v3027_v1 }
0x1c0a   :  { %1842 = vmatprep.subr.bf16.mxu0 %v3470_v50 }
0x1c0d   :  { %1843 = vmatpush1.bf16.msra.mxu0 %v3472_v52 }
0x1c0e   :  { %1844 = vmatprep.subr.bf16.mxu0 %v3475_v60 }
0x1c11   :  { %1845 = vmatpush1.bf16.msra.mxu0 %v3478_v6 }
0x1c12   :  { %1846 = vmatprep.subr.bf16.mxu0 %v3481_v62 }
0x1c15   :  { %1847 = vmatpush1.bf16.msra.mxu0 %v3484_v7 }
0x1c16   :  { %2056 = vmatprep.subr.bf16.mxu0 %v3462_v48 }
0x1cdb   :  { %v1654_v22 = vpop.f32.mrb[36].mxu0 }
0x1cdc   :  { %v1662_v34 = vadd.f32 %v1654_v22, %v3533_v42  ;;  %v1656_v5 = vpop.f32.mrb[37].mxu0 }
0x1cdd   :  { %v1664_v41 = vadd.f32 %v1656_v5, %v3548_v25  ;;  %v1658_v17 = vpop.f32.mrb[38].mxu0 }
0x1cde   :  { %2838 = vtanh.f32 %v1662_v34  ;;  %v1659_v24 = vpop.f32.mrb[39].mxu0  ;;  %v2569_v20 = vmul.f32 -1.442695, %v1662_v34 }
0x1cdf   :  { %2840 = vtanh.f32 %v1664_v41  ;;  %v2570_v44 = vmul.f32 -1.442695, %v1664_v41 }
0x1ce0   :  { %2842 = vpow2.f32 %v2569_v20 }
0x1ce1   :  { %2844 = vpow2.f32 %v2570_v44 }
0x1ce8   :  { %v2839_v19 = vpop.eup %2838 }
0x1ce9   :  { %v2841_v23 = vpop.eup %2840  ;;  %1674 = vrot.lane.b32.xlu0 %v2839_v19, %s3028_s3 }
0x1cea   :  { %1698 = vrot.lane.b32.xlu1 %v2841_v23, %s3028_s3  ;;  %v2843_v46 = vpop.eup %2842 }
0x1ceb   :  { %v2845_v51 = vpop.eup %2844  ;;  %v1668_v42 = vadd.f32 1.0, %v2843_v46 }
0x1cec   :  { %v1692_v27 = vadd.f32 1.0, %v2845_v51 }
0x1ced   :  { %2846 = vrcp.f32 %v1668_v42 }
0x1cee   :  { %2848 = vrcp.f32 %v1692_v27 }
0x1cf7   :  { %v2847_v25 = vpop.eup %2846 }
0x1cf8   :  { %v2849_v61 = vpop.eup %2848  ;;  %v1672_v13 = vmul.f32 %v2847_v25, %v1572_v15 }
0x1cf9   :  { %v1696_v14 = vmul.f32 %v2849_v61, %v1596_v26 }
0x1d5b   :  { %v1675_v54 = vpop.permute.xlu0 %1674 }
0x1d5c   :  { %v1677_v58 = vmul.f32 %v2847_v25, %v1675_v54  ;;  %v1699_v9 = vpop.permute.xlu1 %1698 }
0x1d5d   :  { %v1701_v12 = vmul.f32 %v2849_v61, %v1699_v9 }
0x1d5e   :  { %1679 = vrot.lane.b32.xlu0 %v1677_v58, %s3029_s17 }
0x1d5f   :  { %1703 = vrot.lane.b32.xlu1 %v1701_v12, %s3029_s17 }
0x1dd0   :  { %v1680_v40 = vpop.permute.xlu0 %1679 }
0x1dd1   :  { %v1682_v56 = vadd.f32 %v1680_v40, %v1672_v13  ;;  %v1704_v18 = vpop.permute.xlu1 %1703 }
0x1dd2   :  { %v1706_v3 = vadd.f32 %v1704_v18, %v1696_v14 }
0x1dd3   :  { %2850 = vtanh.f32 %v1682_v56 }
0x1dd4   :  { %2852 = vtanh.f32 %v1706_v3 }
0x1ddd   :  { %v2851_v55 = vpop.eup %2850 }
0x1dde   :  { %v2853_v63 = vpop.eup %2852  ;;  %1685 = vrot.lane.b32.xlu0 %v2851_v55, %s3028_s3 }
0x1ddf   :  { %1709 = vrot.lane.b32.xlu1 %v2853_v63, %s3028_s3 }
0x1e50   :  { %v1686_v0 = vpop.permute.xlu0 %1685 }
0x1e51   :  { %v1688_v57 = vmul.f32 %v2847_v25, %v1686_v0  ;;  %v1710_v2 = vpop.permute.xlu1 %1709 }
0x1e52   :  { %v1712_v11 = vmul.f32 %v2849_v61, %v1710_v2 }
0x1e53   :  { %1714 = vrot.lane.b32.xlu0 %v1688_v57, %s3029_s17 }
0x1e54   :  { %1720 = vrot.lane.b32.xlu1 %v1712_v11, %s3028_s3 }
0x1ec5   :  { %v1715_v15 = vpop.permute.xlu0 %1714 }
0x1ec6   :  { %1718 = vst.msk [vmem:[#allocation3 + $0x10] sm:$0xff] %vm391_vm1, %v1715_v15  ;;  %v1721_v21 = vpop.permute.xlu1 %1720 }
0x1ec7   :  { %1724 = vst.msk [vmem:[#allocation3 + $0x28] sm:$0xff] %vm398_vm2, %v1721_v21  ;;  %v1725_v26 = vsel %vm391_vm1, %v1715_v15, %v1721_v21 }
0x1ec8   :  { %v1726_v32 = vpack.c.bf16 %v1725_v26, %v1725_v26 }
0x1eca   :  { %2571 = vmatmul.mubr.msk.bf16.vlgmr.msra.gmra.mrb[36].mxu1 %vm284_vm3, %v1726_v32 }
0x1ecb   :  { %1949 = vmatpush1.bf16.msra.mxu1 %v3464_v49  ;;  %1980 = vmatprep.mubr.bf16.mxu1 %v3027_v1 }
0x1ecc   :  { %1950 = vmatprep.subr.bf16.mxu1 %v3470_v50 }
0x1ecf   :  { %1951 = vmatpush1.bf16.msra.mxu1 %v3472_v52 }
0x1ed0   :  { %1952 = vmatprep.subr.bf16.mxu1 %v3475_v60 }
0x1ed3   :  { %1953 = vmatpush1.bf16.msra.mxu1 %v3478_v6 }
0x1ed4   :  { %1954 = vmatprep.subr.bf16.mxu1 %v3481_v62 }
0x1ed7   :  { %1955 = vmatpush1.bf16.msra.mxu1 %v3484_v7 }
0x1ed8   :  { %2164 = vmatprep.subr.bf16.mxu1 %v3462_v48 }
0x1f9d   :  { %v1764_v33 = vpop.f32.mrb[36].mxu1 }
0x1f9e   :  { %v1772_v35 = vadd.f32 %v1764_v33, %v3537_v29  ;;  %v1766_v37 = vpop.f32.mrb[37].mxu1 }
0x1f9f   :  { %v1774_v16 = vadd.f32 %v1766_v37, %v3544_v47  ;;  %v1768_v10 = vpop.f32.mrb[38].mxu1 }
0x1fa0   :  { %2854 = vtanh.f32 %v1772_v35  ;;  %v1769_v36 = vpop.f32.mrb[39].mxu1  ;;  %v2572_v30 = vmul.f32 -1.442695, %v1772_v35 }
0x1fa1   :  { %2856 = vtanh.f32 %v1774_v16  ;;  %v2573_v22 = vmul.f32 -1.442695, %v1774_v16 }
0x1fa2   :  { %2858 = vpow2.f32 %v2572_v30 }
0x1fa3   :  { %2860 = vpow2.f32 %v2573_v22 }
0x1faa   :  { %v2855_v38 = vpop.eup %2854 }
0x1fab   :  { %v2857_v39 = vpop.eup %2856  ;;  %1784 = vrot.lane.b32.xlu0 %v2855_v38, %s3028_s3 }
0x1fac   :  { %1808 = vrot.lane.b32.xlu1 %v2857_v39, %s3028_s3  ;;  %v2859_v48 = vpop.eup %2858 }
0x1fad   :  { %v2861_v34 = vpop.eup %2860  ;;  %v1778_v29 = vadd.f32 1.0, %v2859_v48 }
0x1fae   :  { %v1802_v5 = vadd.f32 1.0, %v2861_v34 }
0x1faf   :  { %2862 = vrcp.f32 %v1778_v29 }
0x1fb0   :  { %2864 = vrcp.f32 %v1802_v5 }
0x1fb9   :  { %v2863_v47 = vpop.eup %2862 }
0x1fba   :  { %v2865_v17 = vpop.eup %2864  ;;  %v1782_v20 = vmul.f32 %v2863_v47, %v1682_v56 }
0x1fbb   :  { %v1806_v46 = vmul.f32 %v2865_v17, %v1706_v3 }
0x201d   :  { %v1785_v41 = vpop.permute.xlu0 %1784 }
0x201e   :  { %v1787_v24 = vmul.f32 %v2863_v47, %v1785_v41  ;;  %v1809_v19 = vpop.permute.xlu1 %1808 }
0x201f   :  { %v1811_v23 = vmul.f32 %v2865_v17, %v1809_v19 }
0x2020   :  { %1789 = vrot.lane.b32.xlu0 %v1787_v24, %s3029_s17 }
0x2021   :  { %1813 = vrot.lane.b32.xlu1 %v1811_v23, %s3029_s17 }
0x2092   :  { %v1790_v44 = vpop.permute.xlu0 %1789 }
0x2093   :  { %v1792_v51 = vadd.f32 %v1790_v44, %v1782_v20  ;;  %v1814_v42 = vpop.permute.xlu1 %1813 }
0x2094   :  { %v1816_v27 = vadd.f32 %v1814_v42, %v1806_v46 }
0x2095   :  { %2866 = vtanh.f32 %v1792_v51 }
0x2096   :  { %2868 = vtanh.f32 %v1816_v27 }
0x209f   :  { %v2867_v25 = vpop.eup %2866 }
0x20a0   :  { %v2869_v54 = vpop.eup %2868  ;;  %1795 = vrot.lane.b32.xlu0 %v2867_v25, %s3028_s3 }
0x20a1   :  { %1819 = vrot.lane.b32.xlu1 %v2869_v54, %s3028_s3 }
0x2112   :  { %v1796_v61 = vpop.permute.xlu0 %1795 }
0x2113   :  { %v1798_v58 = vmul.f32 %v2863_v47, %v1796_v61  ;;  %v1820_v9 = vpop.permute.xlu1 %1819 }
0x2114   :  { %v1822_v12 = vmul.f32 %v2865_v17, %v1820_v9 }
0x2115   :  { %1824 = vrot.lane.b32.xlu0 %v1798_v58, %s3029_s17 }
0x2116   :  { %1830 = vrot.lane.b32.xlu1 %v1822_v12, %s3028_s3 }
0x2187   :  { %v1825_v13 = vpop.permute.xlu0 %1824 }
0x2188   :  { %1828 = vst.msk [vmem:[#allocation3 + $0x18] sm:$0xff] %vm391_vm1, %v1825_v13  ;;  %v1831_v40 = vpop.permute.xlu1 %1830 }
0x2189   :  { %1834 = vst.msk [vmem:[#allocation3 + $0x20] sm:$0xff] %vm398_vm2, %v1831_v40  ;;  %v1835_v14 = vsel %vm391_vm1, %v1825_v13, %v1831_v40 }
0x218a   :  { %v1836_v56 = vpack.c.bf16 %v1835_v14, %v1835_v14 }
0x218c   :  { %2574 = vmatmul.mubr.msk.bf16.vlgmr.msra.gmra.mrb[40].mxu0 %vm284_vm3, %v1836_v56 }
0x218d   :  { %2057 = vmatpush1.bf16.msra.mxu0 %v3464_v49  ;;  %2088 = vmatprep.mubr.bf16.mxu0 %v3027_v1 }
0x218e   :  { %2058 = vmatprep.subr.bf16.mxu0 %v3470_v50 }
0x2191   :  { %2059 = vmatpush1.bf16.msra.mxu0 %v3472_v52 }
0x2192   :  { %2060 = vmatprep.subr.bf16.mxu0 %v3475_v60 }
0x2195   :  { %2061 = vmatpush1.bf16.msra.mxu0 %v3478_v6 }
0x2196   :  { %2062 = vmatprep.subr.bf16.mxu0 %v3481_v62 }
0x2199   :  { %2063 = vmatpush1.bf16.msra.mxu0 %v3484_v7 }
0x225f   :  { %v1874_v18 = vpop.f32.mrb[40].mxu0 }
0x2260   :  { %v1882_v3 = vadd.f32 %v1874_v18, %v3542_v45  ;;  %v1876_v55 = vpop.f32.mrb[41].mxu0 }
0x2261   :  { %v1884_v63 = vadd.f32 %v1876_v55, %v3539_v28  ;;  %v1878_v0 = vpop.f32.mrb[42].mxu0 }
0x2262   :  { %2870 = vtanh.f32 %v1882_v3  ;;  %v1879_v57 = vpop.f32.mrb[43].mxu0  ;;  %v2575_v15 = vmul.f32 -1.442695, %v1882_v3 }
0x2263   :  { %2872 = vtanh.f32 %v1884_v63  ;;  %v2576_v21 = vmul.f32 -1.442695, %v1884_v63 }
0x2264   :  { %2874 = vpow2.f32 %v2575_v15 }
0x2265   :  { %2876 = vpow2.f32 %v2576_v21 }
0x226c   :  { %v2871_v2 = vpop.eup %2870 }
0x226d   :  { %v2873_v11 = vpop.eup %2872  ;;  %1894 = vrot.lane.b32.xlu0 %v2871_v2, %s3028_s3 }
0x226e   :  { %1918 = vrot.lane.b32.xlu1 %v2873_v11, %s3028_s3  ;;  %v2875_v26 = vpop.eup %2874 }
0x226f   :  { %v2877_v32 = vpop.eup %2876  ;;  %v1888_v45 = vadd.f32 1.0, %v2875_v26 }
0x2270   :  { %v1912_v33 = vadd.f32 1.0, %v2877_v32 }
0x2271   :  { %2878 = vrcp.f32 %v1888_v45 }
0x2272   :  { %2880 = vrcp.f32 %v1912_v33 }
0x227b   :  { %v2879_v28 = vpop.eup %2878 }
0x227c   :  { %v2881_v37 = vpop.eup %2880  ;;  %v1892_v38 = vmul.f32 %v2879_v28, %v1792_v51 }
0x227d   :  { %v1916_v30 = vmul.f32 %v2881_v37, %v1816_v27 }
0x22df   :  { %v1895_v35 = vpop.permute.xlu0 %1894 }
0x22e0   :  { %v1897_v16 = vmul.f32 %v2879_v28, %v1895_v35  ;;  %v1919_v10 = vpop.permute.xlu1 %1918 }
0x22e1   :  { %v1921_v36 = vmul.f32 %v2881_v37, %v1919_v10 }
0x22e2   :  { %1899 = vrot.lane.b32.xlu0 %v1897_v16, %s3029_s17 }
0x22e3   :  { %1923 = vrot.lane.b32.xlu1 %v1921_v36, %s3029_s17 }
0x2354   :  { %v1900_v39 = vpop.permute.xlu0 %1899 }
0x2355   :  { %v1902_v22 = vadd.f32 %v1900_v39, %v1892_v38  ;;  %v1924_v48 = vpop.permute.xlu1 %1923 }
0x2356   :  { %v1926_v34 = vadd.f32 %v1924_v48, %v1916_v30 }
0x2357   :  { %2882 = vtanh.f32 %v1902_v22 }
0x2358   :  { %2884 = vtanh.f32 %v1926_v34 }
0x2361   :  { %v2883_v29 = vpop.eup %2882 }
0x2362   :  { %v2885_v5 = vpop.eup %2884  ;;  %1905 = vrot.lane.b32.xlu0 %v2883_v29, %s3028_s3 }
0x2363   :  { %1929 = vrot.lane.b32.xlu1 %v2885_v5, %s3028_s3 }
0x23d4   :  { %v1906_v47 = vpop.permute.xlu0 %1905 }
0x23d5   :  { %v1908_v41 = vmul.f32 %v2879_v28, %v1906_v47  ;;  %v1930_v17 = vpop.permute.xlu1 %1929 }
0x23d6   :  { %v1932_v24 = vmul.f32 %v2881_v37, %v1930_v17 }
0x23d7   :  { %1934 = vrot.lane.b32.xlu0 %v1908_v41, %s3029_s17 }
0x23d8   :  { %1939 = vrot.lane.b32.xlu1 %v1932_v24, %s3028_s3 }
0x2449   :  { %v1935_v19 = vpop.permute.xlu0 %1934 }
0x244a   :  { %1937 = vst.msk [vmem:[#allocation3 + $0x20] sm:$0xff] %vm391_vm1, %v1935_v19  ;;  %v1940_v23 = vpop.permute.xlu1 %1939 }
0x244b   :  { %1942 = vst.msk [vmem:[#allocation3 + $0x18] sm:$0xff] %vm398_vm2, %v1940_v23  ;;  %v1943_v20 = vsel %vm391_vm1, %v1935_v19, %v1940_v23 }
0x244c   :  { %v1944_v44 = vpack.c.bf16 %v1943_v20, %v1943_v20 }
0x244e   :  { %2577 = vmatmul.mubr.msk.bf16.vlgmr.msra.gmra.mrb[40].mxu1 %vm284_vm3, %v1944_v44 }
0x244f   :  { %2165 = vmatpush1.bf16.msra.mxu1 %v3464_v49  ;;  %2196 = vmatprep.mubr.bf16.mxu1 %v3027_v1 }
0x2450   :  { %2166 = vmatprep.subr.bf16.mxu1 %v3470_v50 }
0x2453   :  { %2167 = vmatpush1.bf16.msra.mxu1 %v3472_v52 }
0x2454   :  { %2168 = vmatprep.subr.bf16.mxu1 %v3475_v60 }
0x2457   :  { %2169 = vmatpush1.bf16.msra.mxu1 %v3478_v6 }
0x2458   :  { %2170 = vmatprep.subr.bf16.mxu1 %v3481_v62 }
0x245b   :  { %2171 = vmatpush1.bf16.msra.mxu1 %v3484_v7 }
0x2521   :  { %v1982_v46 = vpop.f32.mrb[40].mxu1 }
0x2522   :  { %v1990_v51 = vadd.f32 %v1982_v46, %v3546_v53  ;;  %v1984_v42 = vpop.f32.mrb[41].mxu1 }
0x2523   :  { %v1992_v49 = vadd.f32 %v1984_v42, %v3535_v43  ;;  %v1986_v27 = vpop.f32.mrb[42].mxu1 }
0x2524   :  { %2886 = vtanh.f32 %v1990_v51  ;;  %v1987_v1 = vpop.f32.mrb[43].mxu1  ;;  %v2578_v60 = vmul.f32 -1.442695, %v1990_v51 }
0x2525   :  { %2888 = vtanh.f32 %v1992_v49  ;;  %v2579_v6 = vmul.f32 -1.442695, %v1992_v49 }
0x2526   :  { %2890 = vpow2.f32 %v2578_v60 }
0x2527   :  { %2892 = vpow2.f32 %v2579_v6 }
0x252e   :  { %v2887_v50 = vpop.eup %2886 }
0x252f   :  { %v2889_v52 = vpop.eup %2888  ;;  %2002 = vrot.lane.b32.xlu0 %v2887_v50, %s3028_s3 }
0x2530   :  { %2026 = vrot.lane.b32.xlu1 %v2889_v52, %s3028_s3  ;;  %v2891_v62 = vpop.eup %2890 }
0x2531   :  { %v2893_v7 = vpop.eup %2892  ;;  %v1996_v53 = vadd.f32 1.0, %v2891_v62 }
0x2532   :  { %v2020_v25 = vadd.f32 1.0, %v2893_v7 }
0x2533   :  { %2894 = vrcp.f32 %v1996_v53 }
0x2534   :  { %2896 = vrcp.f32 %v2020_v25 }
0x253d   :  { %v2895_v43 = vpop.eup %2894 }
0x253e   :  { %v2897_v61 = vpop.eup %2896  ;;  %v2000_v13 = vmul.f32 %v2895_v43, %v1902_v22 }
0x253f   :  { %v2024_v14 = vmul.f32 %v2897_v61, %v1926_v34 }
0x25a1   :  { %v2003_v54 = vpop.permute.xlu0 %2002 }
0x25a2   :  { %v2005_v58 = vmul.f32 %v2895_v43, %v2003_v54  ;;  %v2027_v9 = vpop.permute.xlu1 %2026 }
0x25a3   :  { %v2029_v12 = vmul.f32 %v2897_v61, %v2027_v9 }
0x25a4   :  { %2007 = vrot.lane.b32.xlu0 %v2005_v58, %s3029_s17 }
0x25a5   :  { %2031 = vrot.lane.b32.xlu1 %v2029_v12, %s3029_s17 }
0x2616   :  { %v2008_v40 = vpop.permute.xlu0 %2007 }
0x2617   :  { %v2010_v56 = vadd.f32 %v2008_v40, %v2000_v13  ;;  %v2032_v18 = vpop.permute.xlu1 %2031 }
0x2618   :  { %v2034_v3 = vadd.f32 %v2032_v18, %v2024_v14 }
0x2619   :  { %2898 = vtanh.f32 %v2010_v56 }
0x261a   :  { %2900 = vtanh.f32 %v2034_v3 }
0x2623   :  { %v2899_v55 = vpop.eup %2898 }
0x2624   :  { %v2901_v63 = vpop.eup %2900  ;;  %2013 = vrot.lane.b32.xlu0 %v2899_v55, %s3028_s3 }
0x2625   :  { %2037 = vrot.lane.b32.xlu1 %v2901_v63, %s3028_s3 }
0x2696   :  { %v2014_v0 = vpop.permute.xlu0 %2013 }
0x2697   :  { %v2016_v57 = vmul.f32 %v2895_v43, %v2014_v0  ;;  %v2038_v2 = vpop.permute.xlu1 %2037 }
0x2698   :  { %v2040_v11 = vmul.f32 %v2897_v61, %v2038_v2 }
0x2699   :  { %2042 = vrot.lane.b32.xlu0 %v2016_v57, %s3029_s17 }
0x269a   :  { %2047 = vrot.lane.b32.xlu1 %v2040_v11, %s3028_s3 }
0x270b   :  { %v2043_v15 = vpop.permute.xlu0 %2042 }
0x270c   :  { %2045 = vst.msk [vmem:[#allocation3 + $0x28] sm:$0xff] %vm391_vm1, %v2043_v15  ;;  %v2048_v21 = vpop.permute.xlu1 %2047 }
0x270d   :  { %2050 = vst.msk [vmem:[#allocation3 + $0x10] sm:$0xff] %vm398_vm2, %v2048_v21  ;;  %v2051_v26 = vsel %vm391_vm1, %v2043_v15, %v2048_v21 }
0x270e   :  { %v2052_v32 = vpack.c.bf16 %v2051_v26, %v2051_v26  ;;  %v2674_v26 = vld [vmem:[%s3747_s7] sm:$0xff]  }
0x270f   :  { %2605 = vmatprep.subr.bf16.mxu0 %v2674_v26 }
0x2710   :  { %2580 = vmatmul.mubr.msk.bf16.vlgmr.msra.gmra.mrb[44].mxu0 %vm284_vm3, %v2052_v32 }
0x2711   :  { %2606 = vmatpush3.bf16.msra.mxu0 %v2674_v26 }
0x27e3   :  { %v2090_v45 = vpop.f32.mrb[44].mxu0 }
0x27e4   :  { %v2098_v33 = vadd.f32 %v2090_v45, %v3550_v59  ;;  %v2092_v28 = vpop.f32.mrb[45].mxu0 }
0x27e5   :  { %v2100_v35 = vadd.f32 %v2092_v28, %v3531_v4  ;;  %v2094_v37 = vpop.f32.mrb[46].mxu0  ;;  %v2676_v28 = vld [vmem:[%s3747_s7 + $0x10] sm:$0xff]  }
0x27e6   :  { %2902 = vtanh.f32 %v2098_v33  ;;  %v2095_v16 = vpop.f32.mrb[47].mxu0  ;;  %v2581_v38 = vmul.f32 -1.442695, %v2098_v33  ;;  %v2675_v33 = vld [vmem:[%s3747_s7 + $0x8] sm:$0xff]  }
0x27e7   :  { %2904 = vtanh.f32 %v2100_v35  ;;  %v2582_v39 = vmul.f32 -1.442695, %v2100_v35  ;;  %2607 = vmatprep.subr.bf16.mxu0 %v2675_v33  ;;  %v2677_v35 = vld [vmem:[%s3747_s7 + $0x18] sm:$0xff]  }
0x27e8   :  { %2906 = vpow2.f32 %v2581_v38  ;;  %2608 = vmatpush3.bf16.msra.mxu0 %v2675_v33 }
0x27e9   :  { %2908 = vpow2.f32 %v2582_v39  ;;  %2609 = vmatprep.subr.bf16.mxu0 %v2676_v28 }
0x27ec   :  { %2610 = vmatpush3.bf16.msra.mxu0 %v2676_v28 }
0x27ed   :  { %2611 = vmatprep.subr.bf16.mxu0 %v2677_v35 }
0x27f0   :  { %v2903_v10 = vpop.eup %2902  ;;  %2612 = vmatpush3.bf16.msra.mxu0 %v2677_v35 }
0x27f1   :  { %v2905_v36 = vpop.eup %2904  ;;  %2110 = vrot.lane.b32.xlu0 %v2903_v10, %s3028_s3 }
0x27f2   :  { %2134 = vrot.lane.b32.xlu1 %v2905_v36, %s3028_s3  ;;  %v2907_v30 = vpop.eup %2906 }
0x27f3   :  { %v2909_v22 = vpop.eup %2908  ;;  %v2104_v59 = vadd.f32 1.0, %v2907_v30  ;;  %v2269_v30 = vld [vmem:[#allocation3 + $0x10] sm:$0xff] }
0x27f4   :  { %v2128_v48 = vadd.f32 1.0, %v2909_v22 }
0x27f5   :  { %2910 = vrcp.f32 %v2104_v59 }
0x27f6   :  { %2912 = vrcp.f32 %v2128_v48  ;;  %v2272_v48 = vld [vmem:[#allocation3 + $0x28] sm:$0xff] }
0x27ff   :  { %v2911_v4 = vpop.eup %2910 }
0x2800   :  { %v2913_v29 = vpop.eup %2912  ;;  %v2108_v17 = vmul.f32 %v2911_v4, %v2010_v56 }
0x2801   :  { %v2132_v19 = vmul.f32 %v2913_v29, %v2034_v3 }
0x2863   :  { %v2111_v34 = vpop.permute.xlu0 %2110 }
0x2864   :  { %v2113_v5 = vmul.f32 %v2911_v4, %v2111_v34  ;;  %v2135_v47 = vpop.permute.xlu1 %2134  ;;  %v2270_v34 = vld [vmem:[#allocation3 + $0x18] sm:$0xff] }
0x2865   :  { %v2137_v41 = vmul.f32 %v2913_v29, %v2135_v47 }
0x2866   :  { %2115 = vrot.lane.b32.xlu0 %v2113_v5, %s3029_s17  ;;  %v2271_v5 = vld [vmem:[#allocation3 + $0x20] sm:$0xff] }
0x2867   :  { %2139 = vrot.lane.b32.xlu1 %v2137_v41, %s3029_s17  ;;  %v2277_v47 = vpack.c.bf16 %v2272_v48, %v2271_v5 }
0x28d8   :  { %v2116_v24 = vpop.permute.xlu0 %2115 }
0x28d9   :  { %v2118_v23 = vadd.f32 %v2116_v24, %v2108_v17  ;;  %v2140_v20 = vpop.permute.xlu1 %2139 }
0x28da   :  { %v2142_v44 = vadd.f32 %v2140_v20, %v2132_v19  ;;  %v2586_v19 = vld [vmem:[%s3748_s8] ss:$0 sm:$0xff] }
0x28db   :  { %2914 = vtanh.f32 %v2118_v23 }
0x28dc   :  { %2916 = vtanh.f32 %v2142_v44 }
0x28e5   :  { %v2915_v46 = vpop.eup %2914 }
0x28e6   :  { %v2917_v51 = vpop.eup %2916  ;;  %2121 = vrot.lane.b32.xlu0 %v2915_v46, %s3028_s3 }
0x28e7   :  { %2145 = vrot.lane.b32.xlu1 %v2917_v51, %s3028_s3 }
0x2958   :  { %v2122_v42 = vpop.permute.xlu0 %2121 }
0x2959   :  { %v2124_v49 = vmul.f32 %v2911_v4, %v2122_v42  ;;  %v2146_v27 = vpop.permute.xlu1 %2145 }
0x295a   :  { %v2148_v1 = vmul.f32 %v2913_v29, %v2146_v27  ;;  %v2276_v29 = vpack.c.bf16 %v2270_v34, %v2269_v30 }
0x295b   :  { %2150 = vrot.lane.b32.xlu0 %v2124_v49, %s3029_s17 }
0x295c   :  { %2155 = vrot.lane.b32.xlu1 %v2148_v1, %s3028_s3 }
0x29cd   :  { %v2151_v50 = vpop.permute.xlu0 %2150 }
0x29ce   :  { %2153 = vst.msk [vmem:[#allocation3 + $0x30] sm:$0xff] %vm391_vm1, %v2151_v50  ;;  %v2156_v52 = vpop.permute.xlu1 %2155 }
0x29cf   :  { %2158 = vst.msk [vmem:[#allocation3 + $0x8] sm:$0xff] %vm398_vm2, %v2156_v52  ;;  %v2159_v60 = vsel %vm391_vm1, %v2151_v50, %v2156_v52 }
0x29d0   :  { %v2160_v6 = vpack.c.bf16 %v2159_v60, %v2159_v60 }
0x29d2   :  { %2583 = vmatmul.mubr.msk.bf16.vlgmr.msra.gmra.mrb[44].mxu1 %vm284_vm3, %v2160_v6 }
0x29d5   :  { %v2273_v17 = vld [vmem:[#allocation3 + $0x30] sm:$0xff] }
0x29d6   :  { %v2268_v59 = vld [vmem:[#allocation3 + $0x8] sm:$0xff] }
0x2aa5   :  { %v2198_v62 = vpop.f32.mrb[44].mxu1 }
0x2aa6   :  { %v2206_v7 = vadd.f32 %v2198_v62, %v3554_v8  ;;  %v2200_v53 = vpop.f32.mrb[45].mxu1 }
0x2aa7   :  { %v2208_v25 = vadd.f32 %v2200_v53, %v3527_v31  ;;  %v2202_v43 = vpop.f32.mrb[46].mxu1 }
0x2aa8   :  { %2918 = vtanh.f32 %v2206_v7  ;;  %v2203_v54 = vpop.f32.mrb[47].mxu1  ;;  %v2584_v9 = vmul.f32 -1.442695, %v2206_v7 }
0x2aa9   :  { %2920 = vtanh.f32 %v2208_v25  ;;  %v2585_v12 = vmul.f32 -1.442695, %v2208_v25 }
0x2aaa   :  { %2922 = vpow2.f32 %v2584_v9 }
0x2aab   :  { %2924 = vpow2.f32 %v2585_v12 }
0x2ab2   :  { %v2919_v61 = vpop.eup %2918 }
0x2ab3   :  { %v2921_v58 = vpop.eup %2920  ;;  %2218 = vrot.lane.b32.xlu1 %v2919_v61, %s3028_s3 }
0x2ab4   :  { %2242 = vrot.lane.b32.xlu0 %v2921_v58, %s3028_s3  ;;  %v2923_v13 = vpop.eup %2922 }
0x2ab5   :  { %v2925_v40 = vpop.eup %2924  ;;  %v2212_v8 = vadd.f32 1.0, %v2923_v13 }
0x2ab6   :  { %v2236_v14 = vadd.f32 1.0, %v2925_v40 }
0x2ab7   :  { %2926 = vrcp.f32 %v2212_v8 }
0x2ab8   :  { %2928 = vrcp.f32 %v2236_v14 }
0x2ac1   :  { %v2927_v31 = vpop.eup %2926 }
0x2ac2   :  { %v2929_v18 = vpop.eup %2928  ;;  %v2216_v0 = vmul.f32 %v2927_v31, %v2118_v23 }
0x2ac3   :  { %v2240_v2 = vmul.f32 %v2929_v18, %v2142_v44 }
0x2b25   :  { %v2219_v56 = vpop.permute.xlu1 %2218 }
0x2b26   :  { %v2221_v3 = vmul.f32 %v2927_v31, %v2219_v56  ;;  %v2243_v55 = vpop.permute.xlu0 %2242 }
0x2b27   :  { %v2245_v63 = vmul.f32 %v2929_v18, %v2243_v55 }
0x2b28   :  { %2223 = vrot.lane.b32.xlu1 %v2221_v3, %s3029_s17 }
0x2b29   :  { %2247 = vrot.lane.b32.xlu0 %v2245_v63, %s3029_s17 }
0x2b9a   :  { %v2224_v57 = vpop.permute.xlu1 %2223 }
0x2b9b   :  { %v2226_v11 = vadd.f32 %v2224_v57, %v2216_v0  ;;  %v2248_v15 = vpop.permute.xlu0 %2247 }
0x2b9c   :  { %v2250_v21 = vadd.f32 %v2248_v15, %v2240_v2 }
0x2b9d   :  { %2930 = vtanh.f32 %v2226_v11 }
0x2b9e   :  { %2932 = vtanh.f32 %v2250_v21 }
0x2ba7   :  { %v2931_v32 = vpop.eup %2930 }
0x2ba8   :  { %v2933_v45 = vpop.eup %2932  ;;  %2229 = vrot.lane.b32.xlu1 %v2931_v32, %s3028_s3 }
0x2ba9   :  { %2253 = vrot.lane.b32.xlu0 %v2933_v45, %s3028_s3 }
0x2c1a   :  { %v2230_v37 = vpop.permute.xlu1 %2229 }
0x2c1b   :  { %v2232_v16 = vmul.f32 %v2927_v31, %v2230_v37  ;;  %v2254_v10 = vpop.permute.xlu0 %2253 }
0x2c1c   :  { %v2256_v36 = vmul.f32 %v2929_v18, %v2254_v10 }
0x2c1d   :  { %2258 = vrot.lane.b32.xlu1 %v2232_v16, %s3029_s17 }
0x2c1e   :  { %2263 = vrot.lane.b32.xlu0 %v2256_v36, %s3028_s3 }
0x2c8f   :  { %v2259_v38 = vpop.permute.xlu1 %2258 }
0x2c90   :  { %2261 = vst.msk [vmem:[#allocation3 + $0x38] sm:$0xff] %vm391_vm1, %v2259_v38  ;;  %v2264_v39 = vpop.permute.xlu0 %2263 }
0x2c91   :  { %2266 = vst.msk [vmem:[#allocation3] sm:$0xff] %vm398_vm2, %v2264_v39 }
0x2c97   :  { %v2274_v41 = vld [vmem:[#allocation3 + $0x38] sm:$0xff] }
0x2c98   :  { %v2267_v22 = vld [vmem:[#allocation3] sm:$0xff]  ;;  %v2278_v24 = vpack.c.bf16 %v2274_v41, %v2273_v17 }
0x2c99   :  { %v2275_v4 = vpack.c.bf16 %v2268_v59, %v2267_v22 }
0x2c9b   :  { %2613 = vmatprep.mubr.msk.bf16.mxu0 %vm284_vm3, %v2275_v4 }
0x2c9c   :  { %2614 = vmatmul.mubr.msk.bf16.vlgmr.msra.gmra.mrb[48].mxu0 %vm284_vm3, %v2276_v29 }
0x2c9d   :  { %2617 = vmatprep.mubr.msk.bf16.mxu0 %vm284_vm3, %v2277_v47 }
0x2ca4   :  { %2618 = vmatmul.mubr.msk.bf16.gmra.mrb[52].mxu0 %vm284_vm3, %v2278_v24 }
0x2d6f   :  { %v2615_v23 = vpop.f32.mrb[48].mxu0 }
0x2d70   :  { %v2373_v20 = vadd.f32 %v2615_v23, %v2586_v19  ;;  %v2364_v44 = vpop.f32.mrb[49].mxu0 }
0x2d71   :  { %v2365_v46 = vadd.f32 %v2586_v19, %v2364_v44  ;;  %v2616_v51 = vpop.f32.mrb[50].mxu0 }
0x2d72   :  { %2397 = vst.msk [vmem:[#allocation2 + $0x10] sm:$0xff] %vm284_vm3, %v2373_v20  ;;  %v2376_v42 = vadd.f32 %v2616_v51, %v2586_v19  ;;  %v2367_v49 = vpop.f32.mrb[51].mxu0 }
0x2d73   :  { %2395 = vst.msk [vmem:[#allocation2] sm:$0xff] %vm284_vm3, %v2365_v46  ;;  %v2368_v27 = vadd.f32 %v2586_v19, %v2367_v49 }
0x2d74   :  { %2398 = vst.msk [vmem:[#allocation2 + $0x18] sm:$0xff] %vm284_vm3, %v2376_v42 }
0x2d75   :  { %2396 = vst.msk [vmem:[#allocation2 + $0x8] sm:$0xff] %vm284_vm3, %v2368_v27 }
0x2d77   :  { %v2619_v1 = vpop.f32.mrb[52].mxu0 }
0x2d78   :  { %v2389_v50 = vadd.f32 %v2619_v1, %v2586_v19  ;;  %v2380_v52 = vpop.f32.mrb[53].mxu0 }
0x2d79   :  { %v2381_v60 = vadd.f32 %v2586_v19, %v2380_v52  ;;  %v2620_v6 = vpop.f32.mrb[54].mxu0  ;;  %v2406_v61 = vld [vmem:[#allocation2 + $0x10] sm:$0xff] }
0x2d7a   :  { %2401 = vst.msk [vmem:[#allocation2 + $0x30] sm:$0xff] %vm284_vm3, %v2389_v50  ;;  %v2392_v62 = vadd.f32 %v2620_v6, %v2586_v19  ;;  %v2383_v7 = vpop.f32.mrb[55].mxu0  ;;  %v2403_v25 = vld [vmem:[#allocation2] sm:$0xff] }
0x2d7b   :  { %2399 = vst.msk [vmem:[#allocation2 + $0x20] sm:$0xff] %vm284_vm3, %v2381_v60  ;;  %v2384_v53 = vadd.f32 %v2586_v19, %v2383_v7  ;;  %v2408_v9 = vld [vmem:[#allocation2 + $0x18] sm:$0xff]  ;;  %v2595_v7 = vld [vmem:[%s3749_s9] ss:$0 sm:$0xff] }
0x2d7c   :  { %2402 = vst.msk [vmem:[#allocation2 + $0x38] sm:$0xff] %vm284_vm3, %v2392_v62  ;;  %v2404_v43 = vld [vmem:[#allocation2 + $0x8] sm:$0xff] }
0x2d7d   :  { %2400 = vst.msk [vmem:[#allocation2 + $0x28] sm:$0xff] %vm284_vm3, %v2384_v53  ;;  %v2405_v54 = vmax.f32 %v2403_v25, %v2404_v43 }
0x2d7f   :  { %v2407_v58 = vmax.f32 %v2405_v54, %v2406_v61  ;;  %v2596_v54 = vld [vmem:[#allocation5] ss:$0 sm:$0xff] }
0x2d81   :  { %v2409_v12 = vmax.f32 %v2407_v58, %v2408_v9  ;;  %v2414_v31 = vld [vmem:[#allocation2 + $0x30] sm:$0xff] }
0x2d82   :  { %v2410_v13 = vld [vmem:[#allocation2 + $0x20] sm:$0xff] }
0x2d83   :  { %v2411_v40 = vmax.f32 %v2409_v12, %v2410_v13  ;;  %v2416_v18 = vld [vmem:[#allocation2 + $0x38] sm:$0xff] }
0x2d84   :  { %v2412_v8 = vld [vmem:[#allocation2 + $0x28] sm:$0xff] }
0x2d85   :  { %v2413_v14 = vmax.f32 %v2411_v40, %v2412_v8 }
0x2d87   :  { %v2415_v56 = vmax.f32 %v2413_v14, %v2414_v31 }
0x2d89   :  { %v2417_v3 = vmax.f32 %v2415_v56, %v2416_v18 }
0x2d8b   :  { %v2418_v55 = vsub.f32 %v2403_v25, %v2417_v3  ;;  %v2424_v63 = vsub.f32 %v2404_v43, %v2417_v3  ;;  %v2430_v0 = vsub.f32 %v2406_v61, %v2417_v3  ;;  %v2436_v57 = vsub.f32 %v2408_v9, %v2417_v3 }
0x2d8c   :  { %v2442_v21 = vsub.f32 %v2410_v13, %v2417_v3  ;;  %v2448_v32 = vsub.f32 %v2412_v8, %v2417_v3  ;;  %v2454_v33 = vsub.f32 %v2414_v31, %v2417_v3  ;;  %v2460_v35 = vsub.f32 %v2416_v18, %v2417_v3 }
0x2d8d   :  { %v2419_v2 = vmul.f32 1.442695, %v2418_v55  ;;  %v2425_v11 = vmul.f32 1.442695, %v2424_v63  ;;  %v2431_v15 = vmul.f32 1.442695, %v2430_v0 }
0x2d8e   :  { %v2437_v26 = vmul.f32 1.442695, %v2436_v57  ;;  %v2443_v45 = vmul.f32 1.442695, %v2442_v21  ;;  %v2449_v28 = vmul.f32 1.442695, %v2448_v32 }
0x2d8f   :  { %2934 = vpow2.f32 %v2419_v2  ;;  %v2455_v37 = vmul.f32 1.442695, %v2454_v33  ;;  %v2461_v16 = vmul.f32 1.442695, %v2460_v35 }
0x2d90   :  { %2936 = vpow2.f32 %v2425_v11 }
0x2d91   :  { %2938 = vpow2.f32 %v2431_v15 }
0x2d92   :  { %2940 = vpow2.f32 %v2437_v26 }
0x2d93   :  { %2942 = vpow2.f32 %v2443_v45 }
0x2d94   :  { %2944 = vpow2.f32 %v2449_v28 }
0x2d95   :  { %2946 = vpow2.f32 %v2455_v37 }
0x2d96   :  { %2948 = vpow2.f32 %v2461_v16 }
0x2d99   :  { %v2935_v10 = vpop.eup %2934 }
0x2d9a   :  { %v2937_v36 = vpop.eup %2936  ;;  %v2422_v38 = vmul.f32 %v2935_v10, %v2403_v25 }
0x2d9b   :  { %v2939_v39 = vpop.eup %2938  ;;  %v2427_v30 = vadd.f32 %v2937_v36, %v2935_v10  ;;  %v2428_v22 = vmul.f32 %v2937_v36, %v2404_v43 }
0x2d9c   :  { %v2941_v59 = vpop.eup %2940  ;;  %v2434_v34 = vmul.f32 %v2939_v39, %v2406_v61 }
0x2d9d   :  { %v2429_v48 = vadd.f32 %v2428_v22, %v2422_v38  ;;  %v2433_v4 = vadd.f32 %v2939_v39, %v2427_v30  ;;  %v2943_v47 = vpop.eup %2942  ;;  %v2440_v41 = vmul.f32 %v2941_v59, %v2408_v9 }
0x2d9e   :  { %v2945_v24 = vpop.eup %2944  ;;  %v2446_v44 = vmul.f32 %v2943_v47, %v2410_v13 }
0x2d9f   :  { %v2435_v29 = vadd.f32 %v2434_v34, %v2429_v48  ;;  %v2439_v5 = vadd.f32 %v2941_v59, %v2433_v4  ;;  %v2947_v20 = vpop.eup %2946  ;;  %v2452_v27 = vmul.f32 %v2945_v24, %v2412_v8 }
0x2da0   :  { %v2949_v51 = vpop.eup %2948  ;;  %v2458_v50 = vmul.f32 %v2947_v20, %v2414_v31 }
0x2da1   :  { %v2445_v17 = vadd.f32 %v2943_v47, %v2439_v5  ;;  %v2441_v19 = vadd.f32 %v2440_v41, %v2435_v29  ;;  %v2464_v60 = vmul.f32 %v2949_v51, %v2416_v18 }
0x2da3   :  { %v2451_v23 = vadd.f32 %v2945_v24, %v2445_v17  ;;  %v2447_v42 = vadd.f32 %v2446_v44, %v2441_v19 }
0x2da5   :  { %v2457_v46 = vadd.f32 %v2947_v20, %v2451_v23  ;;  %v2453_v1 = vadd.f32 %v2452_v27, %v2447_v42 }
0x2da7   :  { %v2463_v49 = vadd.f32 %v2949_v51, %v2457_v46  ;;  %v2459_v52 = vadd.f32 %v2458_v50, %v2453_v1 }
0x2da9   :  { %2950 = vrcp.f32 %v2463_v49  ;;  %v2465_v6 = vadd.f32 %v2464_v60, %v2459_v52 }
0x2db3   :  { %v2951_v62 = vpop.eup %2950 }
0x2db4   :  { %v2467_v53 = vmul.f32 %v2951_v62, %v2465_v6 }
0x2db6   :  { %v2475_v25 = vmul.f32 %v2595_v7, %v2467_v53 }
0x2db8   :  { %v2476_v43 = vsel %vm284_vm3, %v2475_v25, 0.0 }
0x2db9   :  { %2477 = vadd.xlane.f32.xlu0 %v2476_v43 }
0x2e46   :  { %v2478_v61 = vpop.xlane.xlu0 %2477 }
0x2e47   :  { %v2486_v58 = vadd.f32 %v2596_v54, %v2478_v61 }
0x2e49   :  { %2488 = vst.msk [vmem:[%s3751_s11] sm:$0xff] %vm2487_vm4, %v2486_v58 }
0x2e4a   :  { %2493 = vsyncpa [#allocation7], 1 }
0x2e4b   :  { %2494 = vsyncpa [#allocation9], 1 }

</bundles_post_ra>
